<compile_context>
chip_gen: v5e
topology: v5e:2x2
jax: 0.10.0
libtpu: 0.0.40
codegen_flags: <defaults>
</compile_context>

<pallas_src>
import functools

import jax
import jax.numpy as jnp
from jax.experimental import pallas as pl
from jax.experimental.pallas import tpu as pltpu


def _round_up(n, m):
    return ((n + m - 1) // m) * m


def _make_kernel(k_is_one: bool, out_is_one: bool):
    """Kernel specialized (at trace time) on degenerate contraction / output widths."""

    def kernel(x_ref, w1_ref, b1_ref, w2_ref, b2_ref, w3_ref, b3_ref, o_ref):
        x = x_ref[...]

        # ---- layer 1: Linear + ReLU ----
        if k_is_one:
            # K == 1: (TM,1) * (1,Hp) broadcast on the VPU; no MXU push for 1-deep matmul.
            h1 = x * w1_ref[...]
        else:
            h1 = jnp.dot(x, w1_ref[...], preferred_element_type=jnp.float32)
        h1 = jnp.maximum(h1 + b1_ref[...], 0.0)

        # ---- layer 2: Linear + ReLU (the only real MXU matmul) ----
        h2 = jnp.dot(h1, w2_ref[...], preferred_element_type=jnp.float32)
        h2 = jnp.maximum(h2 + b2_ref[...], 0.0)

        # ---- layer 3: Linear ----
        if out_is_one:
            # out_size == 1: lane reduce (XLU) instead of a 1-column MXU matmul.
            out = jnp.sum(h2 * w3_ref[...], axis=-1, keepdims=True)
        else:
            out = jnp.dot(h2, w3_ref[...], preferred_element_type=jnp.float32)
        o_ref[...] = (out + b3_ref[...]).astype(o_ref.dtype)

    return kernel


@functools.partial(jax.jit, static_argnames=("tile_m",))
def mlp_forward(x, w1, b1, w2, b2, w3, b3, *, tile_m=128):
    n, in_size = x.shape
    hidden = w1.shape[1]
    out_size = w3.shape[1]

    # --- pad hidden dim to a multiple of 128 (zero padding keeps results exact:
    #     ReLU(0 + 0) = 0, and padded W2/W3 rows are zero) ---
    hp = _round_up(hidden, 128)
    if hp != hidden:
        pad_h = hp - hidden
        w1 = jnp.pad(w1, ((0, 0), (0, pad_h)))
        b1 = jnp.pad(b1, ((0, 0), (0, pad_h)))
        w2 = jnp.pad(w2, ((0, pad_h), (0, pad_h)))
        b2 = jnp.pad(b2, ((0, 0), (0, pad_h)))
        w3 = jnp.pad(w3, ((0, pad_h), (0, 0)))

    k_is_one = (in_size == 1)
    out_is_one = (out_size == 1)
    # For the lane-reduce path, pass W3 as a (1, Hp) row vector.
    w3k = w3.T if out_is_one else w3

    # --- pad / tile the batch rows; weights stay VMEM-resident across the grid ---
    tm = min(tile_m, _round_up(n, 8))
    n_pad = _round_up(n, tm)
    if n_pad != n:
        x = jnp.pad(x, ((0, n_pad - n), (0, 0)))
    grid = (n_pad // tm,)

    const2 = lambda i: (0, 0)  # weights/biases: same block every grid step (DMA'd once)

    out = pl.pallas_call(
        _make_kernel(k_is_one, out_is_one),
        out_shape=jax.ShapeDtypeStruct((n_pad, out_size), jnp.float32),
        grid=grid,
        in_specs=[
            pl.BlockSpec((tm, in_size), lambda i: (i, 0)),  # x: row-tiled
            pl.BlockSpec(w1.shape, const2),
            pl.BlockSpec(b1.shape, const2),
            pl.BlockSpec(w2.shape, const2),
            pl.BlockSpec(b2.shape, const2),
            pl.BlockSpec(w3k.shape, const2),
            pl.BlockSpec(b3.shape, const2),
        ],
        out_specs=pl.BlockSpec((tm, out_size), lambda i: (i, 0)),
        compiler_params=pltpu.CompilerParams(
            dimension_semantics=("parallel",),  # row tiles shard across TCs on v7x
            vmem_limit_bytes=32 << 20,          # ~4 MiB W2 + buffers; safe on v7x's 64 MiB
        ),
    )(x, w1, b1, w2, b2, w3k, b3)
    return out[:n]


def init_linear_params(key, fan_in, fan_out):
    # PyTorch nn.Linear default init: U(-1/sqrt(fan_in), 1/sqrt(fan_in))
    kw, kb = jax.random.split(key)
    bound = 1.0 / jnp.sqrt(jnp.float32(fan_in))
    # Stored as (in_features, out_features) == torch weight.T
    w = jax.random.uniform(kw, (fan_in, fan_out), jnp.float32, -bound, bound)
    b = jax.random.uniform(kb, (1, fan_out), jnp.float32, -bound, bound)
    return w, b


if __name__ == "__main__":
    input_size = 1
    output_size = 1
    hidden_size = 1000

    key = jax.random.PRNGKey(0)
    k1, k2, k3 = jax.random.split(key, 3)
    w1, b1 = init_linear_params(k1, input_size, hidden_size)
    w2, b2 = init_linear_params(k2, hidden_size, hidden_size)
    w3, b3 = init_linear_params(k3, hidden_size, output_size)

    # Same input as the original script: x = np.linspace(-1, 1, 11), as a column.
    x = jnp.linspace(-1.0, 1.0, 11, dtype=jnp.float32).reshape(11, 1)

    out = mlp_forward(x, w1, b1, w2, b2, w3, b3)
    out = jax.block_until_ready(out)

    # Sanity check against plain-JAX reference (unpadded).
    h1 = jnp.maximum(x @ w1 + b1, 0.0)
    h2 = jnp.maximum(h1 @ w2 + b2, 0.0)
    ref = h2 @ w3 + b3
    assert out.shape == (11, output_size)
    assert jnp.allclose(out, ref, atol=1e-4, rtol=1e-4)

    print("KERNEL_OK")
</pallas_src>

<mosaic_0001>
module attributes {stable_mosaic.version = 11 : i64} {
  func.func @kernel(%arg0: i32, %arg1: memref<16x1xf32, #tpu.memory_space<vmem>>, %arg2: memref<1x1024xf32, #tpu.memory_space<vmem>>, %arg3: memref<1x1024xf32, #tpu.memory_space<vmem>>, %arg4: memref<1024x1024xf32, #tpu.memory_space<vmem>>, %arg5: memref<1x1024xf32, #tpu.memory_space<vmem>>, %arg6: memref<1x1024xf32, #tpu.memory_space<vmem>>, %arg7: memref<1x1xf32, #tpu.memory_space<vmem>>, %arg8: memref<16x1xf32, #tpu.memory_space<vmem>>) attributes {dimension_semantics = [#tpu.dimension_semantics<parallel>], iteration_bounds = array<i64: 1>, scalar_prefetch = 0 : i64, scratch_operands = 0 : i64, tpu.core_type = #tpu.core_type<tc>, window_params = [{transform_indices = @transform_0, window_bounds = array<i64: 16, 1>}, {pipeline_mode = #tpu.pipeline_mode<synchronous>, transform_indices = @transform_1, window_bounds = array<i64: 1, 1024>}, {pipeline_mode = #tpu.pipeline_mode<synchronous>, transform_indices = @transform_2, window_bounds = array<i64: 1, 1024>}, {pipeline_mode = #tpu.pipeline_mode<synchronous>, transform_indices = @transform_3, window_bounds = array<i64: 1024, 1024>}, {pipeline_mode = #tpu.pipeline_mode<synchronous>, transform_indices = @transform_4, window_bounds = array<i64: 1, 1024>}, {pipeline_mode = #tpu.pipeline_mode<synchronous>, transform_indices = @transform_5, window_bounds = array<i64: 1, 1024>}, {pipeline_mode = #tpu.pipeline_mode<synchronous>, transform_indices = @transform_6, window_bounds = array<i64: 1, 1>}, {transform_indices = @transform_7, window_bounds = array<i64: 16, 1>}]} {
    %c0 = arith.constant 0 : index
    %c0_0 = arith.constant 0 : index
    %0 = vector.load %arg1[%c0, %c0_0] : memref<16x1xf32, #tpu.memory_space<vmem>>, vector<16x1xf32>
    %c0_1 = arith.constant 0 : index
    %c0_2 = arith.constant 0 : index
    %1 = vector.load %arg2[%c0_1, %c0_2] : memref<1x1024xf32, #tpu.memory_space<vmem>>, vector<1x1024xf32>
    %2 = vector.broadcast %0 : vector<16x1xf32> to vector<16x1024xf32>
    %3 = vector.broadcast %1 : vector<1x1024xf32> to vector<16x1024xf32>
    %4 = arith.mulf %2, %3 : vector<16x1024xf32>
    %c0_3 = arith.constant 0 : index
    %c0_4 = arith.constant 0 : index
    %5 = vector.load %arg3[%c0_3, %c0_4] : memref<1x1024xf32, #tpu.memory_space<vmem>>, vector<1x1024xf32>
    %6 = vector.broadcast %5 : vector<1x1024xf32> to vector<16x1024xf32>
    %7 = arith.addf %4, %6 : vector<16x1024xf32>
    %cst = arith.constant 0.000000e+00 : f32
    %8 = vector.broadcast %cst : f32 to vector<16x1024xf32>
    %9 = arith.maximumf %7, %8 : vector<16x1024xf32>
    %c0_5 = arith.constant 0 : index
    %c0_6 = arith.constant 0 : index
    %10 = vector.load %arg4[%c0_5, %c0_6] : memref<1024x1024xf32, #tpu.memory_space<vmem>>, vector<1024x1024xf32>
    %cst_7 = arith.constant dense<0.000000e+00> : vector<16x1024xf32>
    %11 = tpu.matmul %9, %10, %cst_7 {dimension_numbers = #tpu.dot_dimension_numbers<[1], [0], [0], [1], [0, 0, 1, 1], [], []>} : vector<16x1024xf32>, vector<1024x1024xf32>, vector<16x1024xf32> -> vector<16x1024xf32>
    %c0_8 = arith.constant 0 : index
    %c0_9 = arith.constant 0 : index
    %12 = vector.load %arg5[%c0_8, %c0_9] : memref<1x1024xf32, #tpu.memory_space<vmem>>, vector<1x1024xf32>
    %13 = vector.broadcast %12 : vector<1x1024xf32> to vector<16x1024xf32>
    %14 = arith.addf %11, %13 : vector<16x1024xf32>
    %cst_10 = arith.constant 0.000000e+00 : f32
    %15 = vector.broadcast %cst_10 : f32 to vector<16x1024xf32>
    %16 = arith.maximumf %14, %15 : vector<16x1024xf32>
    %c0_11 = arith.constant 0 : index
    %c0_12 = arith.constant 0 : index
    %17 = vector.load %arg6[%c0_11, %c0_12] : memref<1x1024xf32, #tpu.memory_space<vmem>>, vector<1x1024xf32>
    %18 = vector.broadcast %17 : vector<1x1024xf32> to vector<16x1024xf32>
    %19 = arith.mulf %16, %18 : vector<16x1024xf32>
    %cst_13 = arith.constant dense<0.000000e+00> : vector<16xf32>
    %20 = vector.multi_reduction <add>, %19, %cst_13 [1] : vector<16x1024xf32> to vector<16xf32>
    %21 = vector.shape_cast %20 : vector<16xf32> to vector<16x1xf32>
    %c0_14 = arith.constant 0 : index
    %c0_15 = arith.constant 0 : index
    %22 = vector.load %arg7[%c0_14, %c0_15] : memref<1x1xf32, #tpu.memory_space<vmem>>, vector<1x1xf32>
    %23 = vector.broadcast %22 : vector<1x1xf32> to vector<16x1xf32>
    %24 = arith.addf %21, %23 : vector<16x1xf32>
    %c0_16 = arith.constant 0 : index
    %c0_17 = arith.constant 0 : index
    %25 = vector.load %arg8[%c0_16, %c0_17] : memref<16x1xf32, #tpu.memory_space<vmem>>, vector<16x1xf32>
    tpu.vector_store %arg8[%c0_16, %c0_17], %24 {strides = array<i32>} : memref<16x1xf32, #tpu.memory_space<vmem>>, vector<16x1xf32>,
    return
  }
  func.func @transform_0(%arg0: i32) -> (i32, i32) {
    %c0_i32 = arith.constant 0 : i32
    %c0_i32_0 = arith.constant 0 : i32
    return %arg0, %c0_i32 : i32, i32
  }
  func.func @transform_1(%arg0: i32) -> (i32, i32) {
    %c0_i32 = arith.constant 0 : i32
    %c0_i32_0 = arith.constant 0 : i32
    %c0_i32_1 = arith.constant 0 : i32
    return %c0_i32, %c0_i32_0 : i32, i32
  }
  func.func @transform_2(%arg0: i32) -> (i32, i32) {
    %c0_i32 = arith.constant 0 : i32
    %c0_i32_0 = arith.constant 0 : i32
    %c0_i32_1 = arith.constant 0 : i32
    return %c0_i32, %c0_i32_0 : i32, i32
  }
  func.func @transform_3(%arg0: i32) -> (i32, i32) {
    %c0_i32 = arith.constant 0 : i32
    %c0_i32_0 = arith.constant 0 : i32
    %c0_i32_1 = arith.constant 0 : i32
    return %c0_i32, %c0_i32_0 : i32, i32
  }
  func.func @transform_4(%arg0: i32) -> (i32, i32) {
    %c0_i32 = arith.constant 0 : i32
    %c0_i32_0 = arith.constant 0 : i32
    %c0_i32_1 = arith.constant 0 : i32
    return %c0_i32, %c0_i32_0 : i32, i32
  }
  func.func @transform_5(%arg0: i32) -> (i32, i32) {
    %c0_i32 = arith.constant 0 : i32
    %c0_i32_0 = arith.constant 0 : i32
    %c0_i32_1 = arith.constant 0 : i32
    return %c0_i32, %c0_i32_0 : i32, i32
  }
  func.func @transform_6(%arg0: i32) -> (i32, i32) {
    %c0_i32 = arith.constant 0 : i32
    %c0_i32_0 = arith.constant 0 : i32
    %c0_i32_1 = arith.constant 0 : i32
    return %c0_i32, %c0_i32_0 : i32, i32
  }
  func.func @transform_7(%arg0: i32) -> (i32, i32) {
    %c0_i32 = arith.constant 0 : i32
    %c0_i32_0 = arith.constant 0 : i32
    return %arg0, %c0_i32 : i32, i32
  }
}

</mosaic_0001>

<bundles_post_ra>
// kernel: mlp_forward.1
= control target key start
LH: loop header
LB: loop body
LE: loop exit
PB: predicated region body
PF: predicated region fallthrough
CT: control target
= control target key end

     0   :  { %v2725_v0 = vmov 0   ;;  %vm2712_vm0 = vcmask 7168   ;;  %s6316_s0 = inlined_call_operand.vmem [shape: f32[16,1], index: 0, kind: input, shape index: {}]   ;;  %s6317_s3 = inlined_call_operand.vmem [shape: f32[1024,1024], index: 3, kind: input, shape index: {}]   ;;  %s6318_s1 = inlined_call_operand.vmem [shape: f32[1,1024], index: 1, kind: input, shape index: {}]   ;;  %s6319_s2 = inlined_call_operand.vmem [shape: f32[1,1024], index: 2, kind: input, shape index: {}]   ;;  %s6320_s4 = inlined_call_operand.vmem [shape: f32[1,1024], index: 4, kind: input, shape index: {}]   ;;  %s6321_s5 = inlined_call_operand.vmem [shape: f32[1,1024], index: 5, kind: input, shape index: {}]   ;;  %s6322_s6 = inlined_call_operand.<no memory space> [shape: f32[1,1], index: 6, kind: input, shape index: {}]   ;;  %s6323_s7 = inlined_call_operand.vmem [shape: f32[16,1], index: 7, kind: output, shape index: {}]  }
   0x1   :  { %2720 = vset.pattern.permute.xlu0 %v2725_v0  ;;  %v28_v1 = vld [vmem:[%s6316_s0] sm:$0xff]  ;;  %v29_v17 = vld [vmem:[%s6316_s0 + $0x8] sm:$0xff] }
   0x2   :  { %v244_v2 = vld [vmem:[%s6317_s3 + $0x3c0] sm:$0xff]  ;;  %33 = vperm.xlu0 %2720, %v28_v1  }
   0x3   :  { %1166 = vmatpush.msra.mxu0 %v244_v2  ;;  %v372_v3 = vld [vmem:[%s6317_s3 + $0x7c0] sm:$0xff] }
   0x4   :  { %v500_v4 = vld [vmem:[%s6317_s3 + $0xbc0] sm:$0xff]  ;;  %1189 = vmatpush.msra.mxu1 %v372_v3 }
   0x5   :  { %v628_v5 = vld [vmem:[%s6317_s3 + $0xfc0] sm:$0xff]  ;;  %1212 = vmatpush.msra.mxu2 %v500_v4 }
   0x6   :  { %v236_v6 = vld [vmem:[%s6317_s3 + $0x380] sm:$0xff]  ;;  %1235 = vmatpush.msra.mxu3 %v628_v5 }
   0x7   :  { %v364_v7 = vld [vmem:[%s6317_s3 + $0x780] sm:$0xff]  ;;  %1167 = vmatpush.msra.mxu0 %v236_v6 }
   0x8   :  { %v492_v8 = vld [vmem:[%s6317_s3 + $0xb80] sm:$0xff]  ;;  %1190 = vmatpush.msra.mxu1 %v364_v7 }
   0x9   :  { %v620_v9 = vld [vmem:[%s6317_s3 + $0xf80] sm:$0xff]  ;;  %1213 = vmatpush.msra.mxu2 %v492_v8 }
   0xa   :  { %v228_v10 = vld [vmem:[%s6317_s3 + $0x340] sm:$0xff]  ;;  %1236 = vmatpush.msra.mxu3 %v620_v9  ;;  %38 = vperm.xlu0 %2720, %v29_v17  }
   0xb   :  { %v356_v11 = vld [vmem:[%s6317_s3 + $0x740] sm:$0xff]  ;;  %1168 = vmatpush.msra.mxu0 %v228_v10 }
   0xc   :  { %v484_v12 = vld [vmem:[%s6317_s3 + $0xb40] sm:$0xff]  ;;  %1191 = vmatpush.msra.mxu1 %v356_v11 }
   0xd   :  { %v612_v13 = vld [vmem:[%s6317_s3 + $0xf40] sm:$0xff]  ;;  %1214 = vmatpush.msra.mxu2 %v484_v12 }
   0xe   :  { %v220_v14 = vld [vmem:[%s6317_s3 + $0x300] sm:$0xff]  ;;  %1237 = vmatpush.msra.mxu3 %v612_v13 }
   0xf   :  { %v348_v15 = vld [vmem:[%s6317_s3 + $0x700] sm:$0xff]  ;;  %1169 = vmatpush.msra.mxu0 %v220_v14 }
  0x10   :  { %v476_v16 = vld [vmem:[%s6317_s3 + $0xb00] sm:$0xff]  ;;  %1192 = vmatpush.msra.mxu1 %v348_v15 }
  0x11   :  { %v604_v18 = vld [vmem:[%s6317_s3 + $0xf00] sm:$0xff]  ;;  %1215 = vmatpush.msra.mxu2 %v476_v16 }
  0x12   :  { %v212_v19 = vld [vmem:[%s6317_s3 + $0x2c0] sm:$0xff]  ;;  %1238 = vmatpush.msra.mxu3 %v604_v18 }
  0x13   :  { %v340_v20 = vld [vmem:[%s6317_s3 + $0x6c0] sm:$0xff]  ;;  %1170 = vmatpush.msra.mxu0 %v212_v19 }
  0x14   :  { %v468_v21 = vld [vmem:[%s6317_s3 + $0xac0] sm:$0xff]  ;;  %1193 = vmatpush.msra.mxu1 %v340_v20 }
  0x15   :  { %v596_v22 = vld [vmem:[%s6317_s3 + $0xec0] sm:$0xff]  ;;  %1216 = vmatpush.msra.mxu2 %v468_v21 }
  0x16   :  { %v204_v23 = vld [vmem:[%s6317_s3 + $0x280] sm:$0xff]  ;;  %1239 = vmatpush.msra.mxu3 %v596_v22 }
  0x17   :  { %v332_v24 = vld [vmem:[%s6317_s3 + $0x680] sm:$0xff]  ;;  %1171 = vmatpush.msra.mxu0 %v204_v23 }
  0x18   :  { %v460_v25 = vld [vmem:[%s6317_s3 + $0xa80] sm:$0xff]  ;;  %1194 = vmatpush.msra.mxu1 %v332_v24 }
  0x19   :  { %v588_v26 = vld [vmem:[%s6317_s3 + $0xe80] sm:$0xff]  ;;  %1217 = vmatpush.msra.mxu2 %v460_v25 }
  0x1a   :  { %v196_v27 = vld [vmem:[%s6317_s3 + $0x240] sm:$0xff]  ;;  %1240 = vmatpush.msra.mxu3 %v588_v26 }
  0x1b   :  { %v324_v28 = vld [vmem:[%s6317_s3 + $0x640] sm:$0xff]  ;;  %1172 = vmatpush.msra.mxu0 %v196_v27 }
  0x1c   :  { %v452_v29 = vld [vmem:[%s6317_s3 + $0xa40] sm:$0xff]  ;;  %1195 = vmatpush.msra.mxu1 %v324_v28 }
  0x1d   :  { %v580_v30 = vld [vmem:[%s6317_s3 + $0xe40] sm:$0xff]  ;;  %1218 = vmatpush.msra.mxu2 %v452_v29 }
  0x1e   :  { %v188_v31 = vld [vmem:[%s6317_s3 + $0x200] sm:$0xff]  ;;  %1241 = vmatpush.msra.mxu3 %v580_v30 }
  0x1f   :  { %v316_v32 = vld [vmem:[%s6317_s3 + $0x600] sm:$0xff]  ;;  %1173 = vmatpush.msra.mxu0 %v188_v31 }
  0x20   :  { %v444_v33 = vld [vmem:[%s6317_s3 + $0xa00] sm:$0xff]  ;;  %1196 = vmatpush.msra.mxu1 %v316_v32 }
  0x21   :  { %v572_v34 = vld [vmem:[%s6317_s3 + $0xe00] sm:$0xff]  ;;  %1219 = vmatpush.msra.mxu2 %v444_v33 }
  0x22   :  { %v180_v35 = vld [vmem:[%s6317_s3 + $0x1c0] sm:$0xff]  ;;  %1242 = vmatpush.msra.mxu3 %v572_v34 }
  0x23   :  { %v308_v36 = vld [vmem:[%s6317_s3 + $0x5c0] sm:$0xff]  ;;  %1174 = vmatpush.msra.mxu0 %v180_v35 }
  0x24   :  { %v436_v37 = vld [vmem:[%s6317_s3 + $0x9c0] sm:$0xff]  ;;  %1197 = vmatpush.msra.mxu1 %v308_v36 }
  0x25   :  { %v564_v38 = vld [vmem:[%s6317_s3 + $0xdc0] sm:$0xff]  ;;  %1220 = vmatpush.msra.mxu2 %v436_v37 }
  0x26   :  { %v172_v39 = vld [vmem:[%s6317_s3 + $0x180] sm:$0xff]  ;;  %1243 = vmatpush.msra.mxu3 %v564_v38 }
  0x27   :  { %v300_v40 = vld [vmem:[%s6317_s3 + $0x580] sm:$0xff]  ;;  %1175 = vmatpush.msra.mxu0 %v172_v39 }
  0x28   :  { %v428_v41 = vld [vmem:[%s6317_s3 + $0x980] sm:$0xff]  ;;  %1198 = vmatpush.msra.mxu1 %v300_v40 }
  0x29   :  { %v556_v42 = vld [vmem:[%s6317_s3 + $0xd80] sm:$0xff]  ;;  %1221 = vmatpush.msra.mxu2 %v428_v41 }
  0x2a   :  { %v164_v43 = vld [vmem:[%s6317_s3 + $0x140] sm:$0xff]  ;;  %1244 = vmatpush.msra.mxu3 %v556_v42 }
  0x2b   :  { %v292_v44 = vld [vmem:[%s6317_s3 + $0x540] sm:$0xff]  ;;  %1176 = vmatpush.msra.mxu0 %v164_v43 }
  0x2c   :  { %v420_v45 = vld [vmem:[%s6317_s3 + $0x940] sm:$0xff]  ;;  %1199 = vmatpush.msra.mxu1 %v292_v44 }
  0x2d   :  { %v548_v46 = vld [vmem:[%s6317_s3 + $0xd40] sm:$0xff]  ;;  %1222 = vmatpush.msra.mxu2 %v420_v45 }
  0x2e   :  { %v156_v47 = vld [vmem:[%s6317_s3 + $0x100] sm:$0xff]  ;;  %1245 = vmatpush.msra.mxu3 %v548_v46 }
  0x2f   :  { %v284_v48 = vld [vmem:[%s6317_s3 + $0x500] sm:$0xff]  ;;  %1177 = vmatpush.msra.mxu0 %v156_v47 }
  0x30   :  { %v412_v49 = vld [vmem:[%s6317_s3 + $0x900] sm:$0xff]  ;;  %1200 = vmatpush.msra.mxu1 %v284_v48 }
  0x31   :  { %v540_v50 = vld [vmem:[%s6317_s3 + $0xd00] sm:$0xff]  ;;  %1223 = vmatpush.msra.mxu2 %v412_v49 }
  0x32   :  { %v148_v51 = vld [vmem:[%s6317_s3 + $0xc0] sm:$0xff]  ;;  %1246 = vmatpush.msra.mxu3 %v540_v50 }
  0x33   :  { %v276_v52 = vld [vmem:[%s6317_s3 + $0x4c0] sm:$0xff]  ;;  %1178 = vmatpush.msra.mxu0 %v148_v51 }
  0x34   :  { %v404_v53 = vld [vmem:[%s6317_s3 + $0x8c0] sm:$0xff]  ;;  %1201 = vmatpush.msra.mxu1 %v276_v52 }
  0x35   :  { %v532_v54 = vld [vmem:[%s6317_s3 + $0xcc0] sm:$0xff]  ;;  %1224 = vmatpush.msra.mxu2 %v404_v53 }
  0x36   :  { %v140_v55 = vld [vmem:[%s6317_s3 + $0x80] sm:$0xff]  ;;  %1247 = vmatpush.msra.mxu3 %v532_v54 }
  0x37   :  { %v268_v56 = vld [vmem:[%s6317_s3 + $0x480] sm:$0xff]  ;;  %1179 = vmatpush.msra.mxu0 %v140_v55 }
  0x38   :  { %v396_v57 = vld [vmem:[%s6317_s3 + $0x880] sm:$0xff]  ;;  %1202 = vmatpush.msra.mxu1 %v268_v56 }
  0x39   :  { %v524_v58 = vld [vmem:[%s6317_s3 + $0xc80] sm:$0xff]  ;;  %1225 = vmatpush.msra.mxu2 %v396_v57 }
  0x3a   :  { %v132_v59 = vld [vmem:[%s6317_s3 + $0x40] sm:$0xff]  ;;  %1248 = vmatpush.msra.mxu3 %v524_v58 }
  0x3b   :  { %v260_v60 = vld [vmem:[%s6317_s3 + $0x440] sm:$0xff]  ;;  %1180 = vmatpush.msra.mxu0 %v132_v59 }
  0x3c   :  { %v388_v61 = vld [vmem:[%s6317_s3 + $0x840] sm:$0xff]  ;;  %1203 = vmatpush.msra.mxu1 %v260_v60 }
  0x3d   :  { %v516_v62 = vld [vmem:[%s6317_s3 + $0xc40] sm:$0xff]  ;;  %1226 = vmatpush.msra.mxu2 %v388_v61 }
  0x3e   :  { %v124_v63 = vld [vmem:[%s6317_s3] sm:$0xff]  ;;  %1249 = vmatpush.msra.mxu3 %v516_v62 }
  0x3f   :  { %v252_v0 = vld [vmem:[%s6317_s3 + $0x400] sm:$0xff]  ;;  %1181 = vmatpush.msra.mxu0 %v124_v63 }
  0x40   :  { %v380_v1 = vld [vmem:[%s6317_s3 + $0x800] sm:$0xff]  ;;  %1204 = vmatpush.msra.mxu1 %v252_v0 }
  0x41   :  { %v508_v2 = vld [vmem:[%s6317_s3 + $0xc00] sm:$0xff]  ;;  %1227 = vmatpush.msra.mxu2 %v380_v1 }
  0x42   :  { %v756_v3 = vld [vmem:[%s6317_s3 + $0x13c0] sm:$0xff]  ;;  %1250 = vmatpush.msra.mxu3 %v508_v2 }
  0x43   :  { %v884_v4 = vld [vmem:[%s6317_s3 + $0x17c0] sm:$0xff]  ;;  %1258 = vmatpush.msrb.mxu0 %v756_v3 }
  0x44   :  { %v1012_v5 = vld [vmem:[%s6317_s3 + $0x1bc0] sm:$0xff]  ;;  %1281 = vmatpush.msrb.mxu1 %v884_v4 }
  0x45   :  { %v1140_v6 = vld [vmem:[%s6317_s3 + $0x1fc0] sm:$0xff]  ;;  %1304 = vmatpush.msrb.mxu2 %v1012_v5 }
  0x46   :  { %v748_v7 = vld [vmem:[%s6317_s3 + $0x1380] sm:$0xff]  ;;  %1327 = vmatpush.msrb.mxu3 %v1140_v6 }
  0x47   :  { %v876_v8 = vld [vmem:[%s6317_s3 + $0x1780] sm:$0xff]  ;;  %1259 = vmatpush.msrb.mxu0 %v748_v7 }
  0x48   :  { %v1004_v9 = vld [vmem:[%s6317_s3 + $0x1b80] sm:$0xff]  ;;  %1282 = vmatpush.msrb.mxu1 %v876_v8 }
  0x49   :  { %v1132_v10 = vld [vmem:[%s6317_s3 + $0x1f80] sm:$0xff]  ;;  %1305 = vmatpush.msrb.mxu2 %v1004_v9 }
  0x4a   :  { %v740_v11 = vld [vmem:[%s6317_s3 + $0x1340] sm:$0xff]  ;;  %1328 = vmatpush.msrb.mxu3 %v1132_v10 }
  0x4b   :  { %v868_v12 = vld [vmem:[%s6317_s3 + $0x1740] sm:$0xff]  ;;  %1260 = vmatpush.msrb.mxu0 %v740_v11 }
  0x4c   :  { %v996_v13 = vld [vmem:[%s6317_s3 + $0x1b40] sm:$0xff]  ;;  %1283 = vmatpush.msrb.mxu1 %v868_v12 }
  0x4d   :  { %v1124_v14 = vld [vmem:[%s6317_s3 + $0x1f40] sm:$0xff]  ;;  %1306 = vmatpush.msrb.mxu2 %v996_v13 }
  0x4e   :  { %v732_v15 = vld [vmem:[%s6317_s3 + $0x1300] sm:$0xff]  ;;  %1329 = vmatpush.msrb.mxu3 %v1124_v14 }
  0x4f   :  { %v860_v16 = vld [vmem:[%s6317_s3 + $0x1700] sm:$0xff]  ;;  %1261 = vmatpush.msrb.mxu0 %v732_v15 }
  0x50   :  { %v988_v17 = vld [vmem:[%s6317_s3 + $0x1b00] sm:$0xff]  ;;  %1284 = vmatpush.msrb.mxu1 %v860_v16 }
  0x51   :  { %v1116_v18 = vld [vmem:[%s6317_s3 + $0x1f00] sm:$0xff]  ;;  %1307 = vmatpush.msrb.mxu2 %v988_v17 }
  0x52   :  { %v724_v19 = vld [vmem:[%s6317_s3 + $0x12c0] sm:$0xff]  ;;  %1330 = vmatpush.msrb.mxu3 %v1116_v18 }
  0x53   :  { %v852_v20 = vld [vmem:[%s6317_s3 + $0x16c0] sm:$0xff]  ;;  %1262 = vmatpush.msrb.mxu0 %v724_v19 }
  0x54   :  { %v980_v21 = vld [vmem:[%s6317_s3 + $0x1ac0] sm:$0xff]  ;;  %1285 = vmatpush.msrb.mxu1 %v852_v20 }
  0x55   :  { %v1108_v22 = vld [vmem:[%s6317_s3 + $0x1ec0] sm:$0xff]  ;;  %1308 = vmatpush.msrb.mxu2 %v980_v21 }
  0x56   :  { %v716_v23 = vld [vmem:[%s6317_s3 + $0x1280] sm:$0xff]  ;;  %1331 = vmatpush.msrb.mxu3 %v1108_v22 }
  0x57   :  { %v844_v24 = vld [vmem:[%s6317_s3 + $0x1680] sm:$0xff]  ;;  %1263 = vmatpush.msrb.mxu0 %v716_v23 }
  0x58   :  { %v972_v25 = vld [vmem:[%s6317_s3 + $0x1a80] sm:$0xff]  ;;  %1286 = vmatpush.msrb.mxu1 %v844_v24 }
  0x59   :  { %v1100_v26 = vld [vmem:[%s6317_s3 + $0x1e80] sm:$0xff]  ;;  %1309 = vmatpush.msrb.mxu2 %v972_v25 }
  0x5a   :  { %v708_v27 = vld [vmem:[%s6317_s3 + $0x1240] sm:$0xff]  ;;  %1332 = vmatpush.msrb.mxu3 %v1100_v26  ;;  %v245_v26 = vld [vmem:[%s6317_s3 + $0x3c8] sm:$0xff] }
  0x5b   :  { %v836_v28 = vld [vmem:[%s6317_s3 + $0x1640] sm:$0xff]  ;;  %1264 = vmatpush.msrb.mxu0 %v708_v27  ;;  %v373_v27 = vld [vmem:[%s6317_s3 + $0x7c8] sm:$0xff] }
  0x5c   :  { %v964_v29 = vld [vmem:[%s6317_s3 + $0x1a40] sm:$0xff]  ;;  %1287 = vmatpush.msrb.mxu1 %v836_v28  ;;  %v501_v28 = vld [vmem:[%s6317_s3 + $0xbc8] sm:$0xff] }
  0x5d   :  { %v1092_v30 = vld [vmem:[%s6317_s3 + $0x1e40] sm:$0xff]  ;;  %1310 = vmatpush.msrb.mxu2 %v964_v29  ;;  %v629_v29 = vld [vmem:[%s6317_s3 + $0xfc8] sm:$0xff] }
  0x5e   :  { %v700_v31 = vld [vmem:[%s6317_s3 + $0x1200] sm:$0xff]  ;;  %1333 = vmatpush.msrb.mxu3 %v1092_v30 }
  0x5f   :  { %v828_v32 = vld [vmem:[%s6317_s3 + $0x1600] sm:$0xff]  ;;  %1265 = vmatpush.msrb.mxu0 %v700_v31  ;;  %v237_v31 = vld [vmem:[%s6317_s3 + $0x388] sm:$0xff] }
  0x60   :  { %v956_v33 = vld [vmem:[%s6317_s3 + $0x1a00] sm:$0xff]  ;;  %1288 = vmatpush.msrb.mxu1 %v828_v32 }
  0x61   :  { %v1084_v34 = vld [vmem:[%s6317_s3 + $0x1e00] sm:$0xff]  ;;  %1311 = vmatpush.msrb.mxu2 %v956_v33 }
  0x62   :  { %v692_v35 = vld [vmem:[%s6317_s3 + $0x11c0] sm:$0xff]  ;;  %1334 = vmatpush.msrb.mxu3 %v1084_v34 }
  0x63   :  { %v820_v36 = vld [vmem:[%s6317_s3 + $0x15c0] sm:$0xff]  ;;  %1266 = vmatpush.msrb.mxu0 %v692_v35  ;;  %v365_v35 = vld [vmem:[%s6317_s3 + $0x788] sm:$0xff] }
  0x64   :  { %v948_v37 = vld [vmem:[%s6317_s3 + $0x19c0] sm:$0xff]  ;;  %1289 = vmatpush.msrb.mxu1 %v820_v36 }
  0x65   :  { %v1076_v38 = vld [vmem:[%s6317_s3 + $0x1dc0] sm:$0xff]  ;;  %1312 = vmatpush.msrb.mxu2 %v948_v37  ;;  %v493_v37 = vld [vmem:[%s6317_s3 + $0xb88] sm:$0xff] }
  0x66   :  { %v684_v39 = vld [vmem:[%s6317_s3 + $0x1180] sm:$0xff]  ;;  %1335 = vmatpush.msrb.mxu3 %v1076_v38  ;;  %v621_v38 = vld [vmem:[%s6317_s3 + $0xf88] sm:$0xff] }
  0x67   :  { %v812_v40 = vld [vmem:[%s6317_s3 + $0x1580] sm:$0xff]  ;;  %1267 = vmatpush.msrb.mxu0 %v684_v39 }
  0x68   :  { %v940_v41 = vld [vmem:[%s6317_s3 + $0x1980] sm:$0xff]  ;;  %1290 = vmatpush.msrb.mxu1 %v812_v40 }
  0x69   :  { %v1068_v42 = vld [vmem:[%s6317_s3 + $0x1d80] sm:$0xff]  ;;  %1313 = vmatpush.msrb.mxu2 %v940_v41  ;;  %v229_v41 = vld [vmem:[%s6317_s3 + $0x348] sm:$0xff] }
  0x6a   :  { %v676_v43 = vld [vmem:[%s6317_s3 + $0x1140] sm:$0xff]  ;;  %1336 = vmatpush.msrb.mxu3 %v1068_v42  ;;  %v357_v42 = vld [vmem:[%s6317_s3 + $0x748] sm:$0xff] }
  0x6b   :  { %v804_v44 = vld [vmem:[%s6317_s3 + $0x1540] sm:$0xff]  ;;  %1268 = vmatpush.msrb.mxu0 %v676_v43 }
  0x6c   :  { %v932_v45 = vld [vmem:[%s6317_s3 + $0x1940] sm:$0xff]  ;;  %1291 = vmatpush.msrb.mxu1 %v804_v44 }
  0x6d   :  { %v1060_v46 = vld [vmem:[%s6317_s3 + $0x1d40] sm:$0xff]  ;;  %1314 = vmatpush.msrb.mxu2 %v932_v45  ;;  %v485_v45 = vld [vmem:[%s6317_s3 + $0xb48] sm:$0xff] }
  0x6e   :  { %v668_v47 = vld [vmem:[%s6317_s3 + $0x1100] sm:$0xff]  ;;  %1337 = vmatpush.msrb.mxu3 %v1060_v46  ;;  %v613_v46 = vld [vmem:[%s6317_s3 + $0xf48] sm:$0xff] }
  0x6f   :  { %v796_v48 = vld [vmem:[%s6317_s3 + $0x1500] sm:$0xff]  ;;  %1269 = vmatpush.msrb.mxu0 %v668_v47  ;;  %v221_v47 = vld [vmem:[%s6317_s3 + $0x308] sm:$0xff] }
  0x70   :  { %v924_v49 = vld [vmem:[%s6317_s3 + $0x1900] sm:$0xff]  ;;  %1292 = vmatpush.msrb.mxu1 %v796_v48  ;;  %v349_v48 = vld [vmem:[%s6317_s3 + $0x708] sm:$0xff] }
  0x71   :  { %v1052_v50 = vld [vmem:[%s6317_s3 + $0x1d00] sm:$0xff]  ;;  %1315 = vmatpush.msrb.mxu2 %v924_v49 }
  0x72   :  { %v660_v51 = vld [vmem:[%s6317_s3 + $0x10c0] sm:$0xff]  ;;  %1338 = vmatpush.msrb.mxu3 %v1052_v50 }
  0x73   :  { %v788_v52 = vld [vmem:[%s6317_s3 + $0x14c0] sm:$0xff]  ;;  %1270 = vmatpush.msrb.mxu0 %v660_v51 }
  0x74   :  { %v916_v53 = vld [vmem:[%s6317_s3 + $0x18c0] sm:$0xff]  ;;  %1293 = vmatpush.msrb.mxu1 %v788_v52  ;;  %v3174_v13 = vpop.permute.xlu0 %33 }
  0x75   :  { %v1044_v54 = vld [vmem:[%s6317_s3 + $0x1cc0] sm:$0xff]  ;;  %1316 = vmatpush.msrb.mxu2 %v916_v53  ;;  %v477_v53 = vld [vmem:[%s6317_s3 + $0xb08] sm:$0xff] }
  0x76   :  { %1339 = vmatpush.msrb.mxu3 %v1044_v54  ;;  %v652_v55 = vld [vmem:[%s6317_s3 + $0x1080] sm:$0xff]  ;;  %v605_v54 = vld [vmem:[%s6317_s3 + $0xf08] sm:$0xff] }
  0x77   :  { %v780_v56 = vld [vmem:[%s6317_s3 + $0x1480] sm:$0xff]  ;;  %1271 = vmatpush.msrb.mxu0 %v652_v55 }
  0x78   :  { %v908_v57 = vld [vmem:[%s6317_s3 + $0x1880] sm:$0xff]  ;;  %1294 = vmatpush.msrb.mxu1 %v780_v56 }
  0x79   :  { %v1036_v58 = vld [vmem:[%s6317_s3 + $0x1c80] sm:$0xff]  ;;  %1317 = vmatpush.msrb.mxu2 %v908_v57 }
  0x7a   :  { %1340 = vmatpush.msrb.mxu3 %v1036_v58  ;;  %v644_v59 = vld [vmem:[%s6317_s3 + $0x1040] sm:$0xff] }
  0x7b   :  { %v772_v60 = vld [vmem:[%s6317_s3 + $0x1440] sm:$0xff]  ;;  %1272 = vmatpush.msrb.mxu0 %v644_v59  ;;  %v213_v59 = vld [vmem:[%s6317_s3 + $0x2c8] sm:$0xff] }
  0x7c   :  { %v900_v61 = vld [vmem:[%s6317_s3 + $0x1840] sm:$0xff]  ;;  %1295 = vmatpush.msrb.mxu1 %v772_v60  ;;  %v3204_v30 = vpop.permute.xlu0 %38  ;;  %v341_v60 = vld [vmem:[%s6317_s3 + $0x6c8] sm:$0xff] }
  0x7d   :  { %v1028_v62 = vld [vmem:[%s6317_s3 + $0x1c40] sm:$0xff]  ;;  %1318 = vmatpush.msrb.mxu2 %v900_v61 }
  0x7e   :  { %1341 = vmatpush.msrb.mxu3 %v1028_v62  ;;  %v636_v63 = vld [vmem:[%s6317_s3 + $0x1000] sm:$0xff] }
  0x7f   :  { %v764_v0 = vld [vmem:[%s6317_s3 + $0x1400] sm:$0xff]  ;;  %1273 = vmatpush.msrb.mxu0 %v636_v63 }
  0x80   :  { %v892_v1 = vld [vmem:[%s6317_s3 + $0x1800] sm:$0xff]  ;;  %1296 = vmatpush.msrb.mxu1 %v764_v0 }
  0x81   :  { %v1020_v2 = vld [vmem:[%s6317_s3 + $0x1c00] sm:$0xff]  ;;  %1319 = vmatpush.msrb.mxu2 %v892_v1  ;;  %v469_v1 = vld [vmem:[%s6317_s3 + $0xac8] sm:$0xff] }
  0x82   :  { %1342 = vmatpush.msrb.mxu3 %v1020_v2  ;;  %v3159_v3 = vld [vmem:[%s6318_s1] sm:$0xff]  ;;  %v597_v2 = vld [vmem:[%s6317_s3 + $0xec8] sm:$0xff] }
  0x83   :  { %v3164_v4 = vld [vmem:[%s6319_s2] sm:$0xff]  ;;  %v42_v5 = vperm.slane %v3159_v3, 0  ;;  %v43_v6 = vperm.slane %v3159_v3, 1  ;;  %v44_v7 = vperm.slane %v3159_v3, 2  ;;  %v45_v8 = vperm.slane %v3159_v3, 3 }
  0x84   :  { %v76_v9 = vperm.slane %v3164_v4, 0  ;;  %v77_v10 = vperm.slane %v3164_v4, 1  ;;  %v78_v11 = vperm.slane %v3164_v4, 2  ;;  %v79_v12 = vperm.slane %v3164_v4, 3 }
  0x85   :  { %v58_v14 = vmul.f32 %v42_v5, %v3174_v13  ;;  %v59_v15 = vmul.f32 %v43_v6, %v3174_v13  ;;  %v60_v16 = vmul.f32 %v44_v7, %v3174_v13  ;;  %v61_v17 = vmul.f32 %v45_v8, %v3174_v13 }
  0x86   :  { %v66_v32 = vmul.f32 %v42_v5, %v3204_v30  ;;  %v67_v33 = vmul.f32 %v43_v6, %v3204_v30  ;;  %v68_v34 = vmul.f32 %v44_v7, %v3204_v30  ;;  %v69_v36 = vmul.f32 %v45_v8, %v3204_v30 }
  0x87   :  { %v92_v18 = vadd.f32 %v76_v9, %v58_v14  ;;  %v93_v19 = vadd.f32 %v77_v10, %v59_v15  ;;  %v94_v20 = vadd.f32 %v78_v11, %v60_v16  ;;  %v95_v21 = vadd.f32 %v79_v12, %v61_v17  ;;  %v325_v14 = vld [vmem:[%s6317_s3 + $0x648] sm:$0xff] }
  0x88   :  { %v100_v39 = vadd.f32 %v76_v9, %v66_v32  ;;  %v101_v40 = vadd.f32 %v77_v10, %v67_v33  ;;  %v102_v43 = vadd.f32 %v78_v11, %v68_v34  ;;  %v103_v44 = vadd.f32 %v79_v12, %v69_v36  ;;  %v205_v9 = vld [vmem:[%s6317_s3 + $0x288] sm:$0xff] }
  0x89   :  { %v3180_v22 = vmax.f32 %v92_v18, 0.0  ;;  %v3182_v23 = vmax.f32 %v93_v19, 0.0  ;;  %v3184_v24 = vmax.f32 %v94_v20, 0.0  ;;  %v3186_v25 = vmax.f32 %v95_v21, 0.0  ;;  %v333_v10 = vld [vmem:[%s6317_s3 + $0x688] sm:$0xff] }
  0x8a   :  { %v46_v49 = vperm.slane %v3159_v3, 4  ;;  %v47_v50 = vperm.slane %v3159_v3, 5  ;;  %v3242_v51 = vmax.f32 %v100_v39, 0.0  ;;  %v3244_v52 = vmax.f32 %v101_v40, 0.0  ;;  %v461_v11 = vld [vmem:[%s6317_s3 + $0xa88] sm:$0xff] }
  0x8b   :  { %1182 = vmatmul.f32.vlgmr.msra.gmra.mxu0 %v3180_v22  ;;  %1205 = vmatmul.f32.vlgmr.msra.gmra.mxu1 %v3182_v23  ;;  %v48_v55 = vperm.slane %v3159_v3, 6  ;;  %v49_v56 = vperm.slane %v3159_v3, 7  ;;  %v3254_v57 = vmax.f32 %v102_v43, 0.0  ;;  %v3256_v58 = vmax.f32 %v103_v44, 0.0  ;;  %v589_v12 = vld [vmem:[%s6317_s3 + $0xe88] sm:$0xff] }
  0x8c   :  { %1228 = vmatmul.f32.vlgmr.msra.gmra.mxu2 %v3184_v24  ;;  %1251 = vmatmul.f32.vlgmr.msra.gmra.mxu3 %v3186_v25  ;;  %v62_v61 = vmul.f32 %v46_v49, %v3174_v13  ;;  %v63_v62 = vmul.f32 %v47_v50, %v3174_v13  ;;  %v80_v63 = vperm.slane %v3164_v4, 4  ;;  %v81_v0 = vperm.slane %v3164_v4, 5  ;;  %v453_v17 = vld [vmem:[%s6317_s3 + $0xa48] sm:$0xff] }
  0x8d   :  { %1350 = vmatpush.msra.mxu0 %v245_v26  ;;  %1373 = vmatpush.msra.mxu1 %v373_v27  ;;  %v64_v5 = vmul.f32 %v48_v55, %v3174_v13  ;;  %v65_v6 = vmul.f32 %v49_v56, %v3174_v13  ;;  %v82_v7 = vperm.slane %v3164_v4, 6  ;;  %v83_v8 = vperm.slane %v3164_v4, 7  ;;  %v197_v13 = vld [vmem:[%s6317_s3 + $0x248] sm:$0xff] }
  0x8e   :  { %1396 = vmatpush.msra.mxu2 %v501_v28  ;;  %1419 = vmatpush.msra.mxu3 %v629_v29  ;;  %v96_v15 = vadd.f32 %v80_v63, %v62_v61  ;;  %v97_v16 = vadd.f32 %v81_v0, %v63_v62  ;;  %v581_v18 = vld [vmem:[%s6317_s3 + $0xe48] sm:$0xff]  ;;  %v70_v36 = vmul.f32 %v46_v49, %v3204_v30 }
  0x8f   :  { %1351 = vmatpush.msra.mxu0 %v237_v31  ;;  %1374 = vmatpush.msra.mxu1 %v365_v35  ;;  %v98_v19 = vadd.f32 %v82_v7, %v64_v5  ;;  %v99_v20 = vadd.f32 %v83_v8, %v65_v6  ;;  %v189_v21 = vld [vmem:[%s6317_s3 + $0x208] sm:$0xff]  ;;  %v72_v40 = vmul.f32 %v48_v55, %v3204_v30 }
  0x90   :  { %1397 = vmatpush.msra.mxu2 %v493_v37  ;;  %1420 = vmatpush.msra.mxu3 %v621_v38  ;;  %v317_v26 = vld [vmem:[%s6317_s3 + $0x608] sm:$0xff]  ;;  %v3334_v29 = vmax.f32 %v96_v15, 0.0  ;;  %v3336_v31 = vmax.f32 %v97_v16, 0.0  ;;  %v71_v37 = vmul.f32 %v47_v50, %v3204_v30 }
  0x91   :  { %1352 = vmatpush.msra.mxu0 %v229_v41  ;;  %1375 = vmatpush.msra.mxu1 %v357_v42  ;;  %v445_v27 = vld [vmem:[%s6317_s3 + $0xa08] sm:$0xff]  ;;  %v3338_v32 = vmax.f32 %v98_v19, 0.0  ;;  %v3340_v33 = vmax.f32 %v99_v20, 0.0  ;;  %v73_v41 = vmul.f32 %v49_v56, %v3204_v30  ;;  %v106_v50 = vadd.f32 %v82_v7, %v72_v40 }
  0x92   :  { %1398 = vmatpush.msra.mxu2 %v485_v45  ;;  %1421 = vmatpush.msra.mxu3 %v613_v46  ;;  %v573_v28 = vld [vmem:[%s6317_s3 + $0xe08] sm:$0xff]  ;;  %v104_v46 = vadd.f32 %v80_v63, %v70_v36 }
  0x93   :  { %1353 = vmatpush.msra.mxu0 %v221_v47  ;;  %1376 = vmatpush.msra.mxu1 %v349_v48  ;;  %v181_v34 = vld [vmem:[%s6317_s3 + $0x1c8] sm:$0xff]  ;;  %v105_v47 = vadd.f32 %v81_v0, %v71_v37  ;;  %v3418_v61 = vmax.f32 %v106_v50, 0.0 }
  0x94   :  { %1399 = vmatpush.msra.mxu2 %v477_v53  ;;  %1422 = vmatpush.msra.mxu3 %v605_v54  ;;  %v309_v35 = vld [vmem:[%s6317_s3 + $0x5c8] sm:$0xff]  ;;  %v107_v53 = vadd.f32 %v83_v8, %v73_v41 }
  0x95   :  { %1185 = vmatmul.f32.gmra.mxu0 %v3242_v51  ;;  %1208 = vmatmul.f32.gmra.mxu1 %v3244_v52  ;;  %v437_v38 = vld [vmem:[%s6317_s3 + $0x9c8] sm:$0xff]  ;;  %6332 = vst [vmem:[#allocation4_spill] sm:$0xff] %v3418_v61 }
  0x96   :  { %1231 = vmatmul.f32.gmra.mxu2 %v3254_v57  ;;  %1254 = vmatmul.f32.gmra.mxu3 %v3256_v58  ;;  %v565_v39 = vld [vmem:[%s6317_s3 + $0xdc8] sm:$0xff]  ;;  %v3420_v62 = vmax.f32 %v107_v53, 0.0 }
  0x97   :  { %1354 = vmatpush.msra.mxu0 %v213_v59  ;;  %1377 = vmatpush.msra.mxu1 %v341_v60  ;;  %v173_v42 = vld [vmem:[%s6317_s3 + $0x188] sm:$0xff]  ;;  %v3414_v59 = vmax.f32 %v104_v46, 0.0  ;;  %v3416_v60 = vmax.f32 %v105_v47, 0.0 }
  0x98   :  { %1400 = vmatpush.msra.mxu2 %v469_v1  ;;  %1423 = vmatpush.msra.mxu3 %v597_v2  ;;  %v301_v43 = vld [vmem:[%s6317_s3 + $0x588] sm:$0xff]  ;;  %6333 = vst [vmem:[#allocation5_spill] sm:$0xff] %v3420_v62 }
  0x99   :  { %1355 = vmatpush.msra.mxu0 %v205_v9  ;;  %1378 = vmatpush.msra.mxu1 %v333_v10  ;;  %v429_v44 = vld [vmem:[%s6317_s3 + $0x988] sm:$0xff]  ;;  %6331 = vst [vmem:[#allocation3_spill] sm:$0xff] %v3416_v60 }
  0x9a   :  { %1401 = vmatpush.msra.mxu2 %v461_v11  ;;  %1424 = vmatpush.msra.mxu3 %v589_v12  ;;  %v557_v3 = vld [vmem:[%s6317_s3 + $0xd88] sm:$0xff] }
  0x9b   :  { %1356 = vmatpush.msra.mxu0 %v197_v13  ;;  %1379 = vmatpush.msra.mxu1 %v325_v14  ;;  %v165_v30 = vld [vmem:[%s6317_s3 + $0x148] sm:$0xff] }
  0x9c   :  { %1402 = vmatpush.msra.mxu2 %v453_v17  ;;  %1425 = vmatpush.msra.mxu3 %v581_v18  ;;  %v293_v45 = vld [vmem:[%s6317_s3 + $0x548] sm:$0xff] }
  0x9d   :  { %1357 = vmatpush.msra.mxu0 %v189_v21  ;;  %1380 = vmatpush.msra.mxu1 %v317_v26  ;;  %v421_v48 = vld [vmem:[%s6317_s3 + $0x948] sm:$0xff] }
  0x9e   :  { %1403 = vmatpush.msra.mxu2 %v445_v27  ;;  %1426 = vmatpush.msra.mxu3 %v573_v28  ;;  %v549_v49 = vld [vmem:[%s6317_s3 + $0xd48] sm:$0xff] }
  0x9f   :  { %1274 = vmatmul.f32.vlgmr.msrb.gmra.mxu0 %v3334_v29  ;;  %1297 = vmatmul.f32.vlgmr.msrb.gmra.mxu1 %v3336_v31  ;;  %v157_v54 = vld [vmem:[%s6317_s3 + $0x108] sm:$0xff] }
  0xa0   :  { %1320 = vmatmul.f32.vlgmr.msrb.gmra.mxu2 %v3338_v32  ;;  %1343 = vmatmul.f32.vlgmr.msrb.gmra.mxu3 %v3340_v33  ;;  %v285_v55 = vld [vmem:[%s6317_s3 + $0x508] sm:$0xff] }
  0xa1   :  { %1358 = vmatpush.msra.mxu0 %v181_v34  ;;  %1381 = vmatpush.msra.mxu1 %v309_v35  ;;  %v413_v56 = vld [vmem:[%s6317_s3 + $0x908] sm:$0xff] }
  0xa2   :  { %1404 = vmatpush.msra.mxu2 %v437_v38  ;;  %1427 = vmatpush.msra.mxu3 %v565_v39  ;;  %v541_v4 = vld [vmem:[%s6317_s3 + $0xd08] sm:$0xff] }
  0xa3   :  { %1359 = vmatpush.msra.mxu0 %v173_v42  ;;  %1382 = vmatpush.msra.mxu1 %v301_v43  ;;  %v149_v63 = vld [vmem:[%s6317_s3 + $0xc8] sm:$0xff] }
  0xa4   :  { %1405 = vmatpush.msra.mxu2 %v429_v44  ;;  %1428 = vmatpush.msra.mxu3 %v557_v3  ;;  %v277_v0 = vld [vmem:[%s6317_s3 + $0x4c8] sm:$0xff] }
  0xa5   :  { %1360 = vmatpush.msra.mxu0 %v165_v30  ;;  %1383 = vmatpush.msra.mxu1 %v293_v45  ;;  %v405_v1 = vld [vmem:[%s6317_s3 + $0x8c8] sm:$0xff] }
  0xa6   :  { %1406 = vmatpush.msra.mxu2 %v421_v48  ;;  %1429 = vmatpush.msra.mxu3 %v549_v49  ;;  %v533_v2 = vld [vmem:[%s6317_s3 + $0xcc8] sm:$0xff] }
  0xa7   :  { %1361 = vmatpush.msra.mxu0 %v157_v54  ;;  %1384 = vmatpush.msra.mxu1 %v285_v55  ;;  %v141_v5 = vld [vmem:[%s6317_s3 + $0x88] sm:$0xff] }
  0xa8   :  { %1407 = vmatpush.msra.mxu2 %v413_v56  ;;  %1430 = vmatpush.msra.mxu3 %v541_v4  ;;  %v269_v6 = vld [vmem:[%s6317_s3 + $0x488] sm:$0xff] }
  0xa9   :  { %1277 = vmatmul.f32.gmra.mxu0 %v3414_v59  ;;  %1300 = vmatmul.f32.gmra.mxu1 %v3416_v60  ;;  %v397_v7 = vld [vmem:[%s6317_s3 + $0x888] sm:$0xff] }
  0xaa   :  { %1323 = vmatmul.f32.gmra.mxu2 %v3418_v61  ;;  %1346 = vmatmul.f32.gmra.mxu3 %v3420_v62  ;;  %v525_v8 = vld [vmem:[%s6317_s3 + $0xc88] sm:$0xff] }
  0xab   :  { %1362 = vmatpush.msra.mxu0 %v149_v63  ;;  %1385 = vmatpush.msra.mxu1 %v277_v0  ;;  %v133_v9 = vld [vmem:[%s6317_s3 + $0x48] sm:$0xff] }
  0xac   :  { %1408 = vmatpush.msra.mxu2 %v405_v1  ;;  %1431 = vmatpush.msra.mxu3 %v533_v2  ;;  %v261_v10 = vld [vmem:[%s6317_s3 + $0x448] sm:$0xff] }
  0xad   :  { %1363 = vmatpush.msra.mxu0 %v141_v5  ;;  %1386 = vmatpush.msra.mxu1 %v269_v6  ;;  %v389_v11 = vld [vmem:[%s6317_s3 + $0x848] sm:$0xff] }
  0xae   :  { %v517_v12 = vld [vmem:[%s6317_s3 + $0xc48] sm:$0xff]  ;;  %1409 = vmatpush.msra.mxu2 %v397_v7  ;;  %1432 = vmatpush.msra.mxu3 %v525_v8 }
  0xaf   :  { %v125_v13 = vld [vmem:[%s6317_s3 + $0x8] sm:$0xff]  ;;  %1364 = vmatpush.msra.mxu0 %v133_v9  ;;  %1387 = vmatpush.msra.mxu1 %v261_v10 }
  0xb0   :  { %v253_v14 = vld [vmem:[%s6317_s3 + $0x408] sm:$0xff]  ;;  %1410 = vmatpush.msra.mxu2 %v389_v11  ;;  %1433 = vmatpush.msra.mxu3 %v517_v12 }
  0xb1   :  { %v381_v15 = vld [vmem:[%s6317_s3 + $0x808] sm:$0xff]  ;;  %1365 = vmatpush.msra.mxu0 %v125_v13  ;;  %1388 = vmatpush.msra.mxu1 %v253_v14 }
  0xb2   :  { %v509_v16 = vld [vmem:[%s6317_s3 + $0xc08] sm:$0xff]  ;;  %1411 = vmatpush.msra.mxu2 %v381_v15  ;;  %1366 = vmatmul.f32.vlgmr.msra.gmra.mxu0 %v3180_v22 }
  0xb3   :  { %v757_v17 = vld [vmem:[%s6317_s3 + $0x13c8] sm:$0xff]  ;;  %1434 = vmatpush.msra.mxu3 %v509_v16  ;;  %1389 = vmatmul.f32.vlgmr.msra.gmra.mxu1 %v3182_v23 }
  0xb4   :  { %v885_v18 = vld [vmem:[%s6317_s3 + $0x17c8] sm:$0xff]  ;;  %1442 = vmatpush.msrb.mxu0 %v757_v17  ;;  %1412 = vmatmul.f32.vlgmr.msra.gmra.mxu2 %v3184_v24 }
  0xb5   :  { %v1013_v19 = vld [vmem:[%s6317_s3 + $0x1bc8] sm:$0xff]  ;;  %1465 = vmatpush.msrb.mxu1 %v885_v18  ;;  %1435 = vmatmul.f32.vlgmr.msra.gmra.mxu3 %v3186_v25 }
  0xb6   :  { %v1141_v20 = vld [vmem:[%s6317_s3 + $0x1fc8] sm:$0xff]  ;;  %1488 = vmatpush.msrb.mxu2 %v1013_v19 }
  0xb7   :  { %1511 = vmatpush.msrb.mxu3 %v1141_v20  ;;  %v749_v21 = vld [vmem:[%s6317_s3 + $0x1388] sm:$0xff] }
  0xb8   :  { %v877_v26 = vld [vmem:[%s6317_s3 + $0x1788] sm:$0xff]  ;;  %1443 = vmatpush.msrb.mxu0 %v749_v21 }
  0xb9   :  { %v1005_v27 = vld [vmem:[%s6317_s3 + $0x1b88] sm:$0xff]  ;;  %1466 = vmatpush.msrb.mxu1 %v877_v26 }
  0xba   :  { %v1133_v28 = vld [vmem:[%s6317_s3 + $0x1f88] sm:$0xff]  ;;  %1489 = vmatpush.msrb.mxu2 %v1005_v27  ;;  %1369 = vmatmul.f32.gmra.mxu0 %v3242_v51 }
  0xbb   :  { %v741_v34 = vld [vmem:[%s6317_s3 + $0x1348] sm:$0xff]  ;;  %1512 = vmatpush.msrb.mxu3 %v1133_v28  ;;  %1392 = vmatmul.f32.gmra.mxu1 %v3244_v52 }
  0xbc   :  { %v869_v35 = vld [vmem:[%s6317_s3 + $0x1748] sm:$0xff]  ;;  %1444 = vmatpush.msrb.mxu0 %v741_v34  ;;  %1415 = vmatmul.f32.gmra.mxu2 %v3254_v57 }
  0xbd   :  { %v997_v36 = vld [vmem:[%s6317_s3 + $0x1b48] sm:$0xff]  ;;  %1467 = vmatpush.msrb.mxu1 %v869_v35  ;;  %1438 = vmatmul.f32.gmra.mxu3 %v3256_v58 }
  0xbe   :  { %v1125_v37 = vld [vmem:[%s6317_s3 + $0x1f48] sm:$0xff]  ;;  %1490 = vmatpush.msrb.mxu2 %v997_v36 }
  0xbf   :  { %v733_v38 = vld [vmem:[%s6317_s3 + $0x1308] sm:$0xff]  ;;  %1513 = vmatpush.msrb.mxu3 %v1125_v37 }
  0xc0   :  { %v861_v39 = vld [vmem:[%s6317_s3 + $0x1708] sm:$0xff]  ;;  %1445 = vmatpush.msrb.mxu0 %v733_v38 }
  0xc1   :  { %v989_v40 = vld [vmem:[%s6317_s3 + $0x1b08] sm:$0xff]  ;;  %1468 = vmatpush.msrb.mxu1 %v861_v39 }
  0xc2   :  { %v1117_v41 = vld [vmem:[%s6317_s3 + $0x1f08] sm:$0xff]  ;;  %1491 = vmatpush.msrb.mxu2 %v989_v40 }
  0xc3   :  { %v725_v42 = vld [vmem:[%s6317_s3 + $0x12c8] sm:$0xff]  ;;  %1514 = vmatpush.msrb.mxu3 %v1117_v41 }
  0xc4   :  { %v853_v43 = vld [vmem:[%s6317_s3 + $0x16c8] sm:$0xff]  ;;  %1446 = vmatpush.msrb.mxu0 %v725_v42  ;;  %v246_v42 = vld [vmem:[%s6317_s3 + $0x3d0] sm:$0xff] }
  0xc5   :  { %v981_v44 = vld [vmem:[%s6317_s3 + $0x1ac8] sm:$0xff]  ;;  %1469 = vmatpush.msrb.mxu1 %v853_v43  ;;  %v374_v43 = vld [vmem:[%s6317_s3 + $0x7d0] sm:$0xff] }
  0xc6   :  { %v1109_v3 = vld [vmem:[%s6317_s3 + $0x1ec8] sm:$0xff]  ;;  %1492 = vmatpush.msrb.mxu2 %v981_v44  ;;  %v502_v44 = vld [vmem:[%s6317_s3 + $0xbd0] sm:$0xff] }
  0xc7   :  { %1515 = vmatpush.msrb.mxu3 %v1109_v3  ;;  %v717_v30 = vld [vmem:[%s6317_s3 + $0x1288] sm:$0xff]  ;;  %v630_v3 = vld [vmem:[%s6317_s3 + $0xfd0] sm:$0xff] }
  0xc8   :  { %v845_v45 = vld [vmem:[%s6317_s3 + $0x1688] sm:$0xff]  ;;  %1447 = vmatpush.msrb.mxu0 %v717_v30  ;;  %v238_v30 = vld [vmem:[%s6317_s3 + $0x390] sm:$0xff] }
  0xc9   :  { %v973_v46 = vld [vmem:[%s6317_s3 + $0x1a88] sm:$0xff]  ;;  %1470 = vmatpush.msrb.mxu1 %v845_v45  ;;  %v366_v45 = vld [vmem:[%s6317_s3 + $0x790] sm:$0xff] }
  0xca   :  { %v1101_v47 = vld [vmem:[%s6317_s3 + $0x1e88] sm:$0xff]  ;;  %1493 = vmatpush.msrb.mxu2 %v973_v46  ;;  %v494_v46 = vld [vmem:[%s6317_s3 + $0xb90] sm:$0xff] }
  0xcb   :  { %v709_v48 = vld [vmem:[%s6317_s3 + $0x1248] sm:$0xff]  ;;  %1516 = vmatpush.msrb.mxu3 %v1101_v47  ;;  %v622_v47 = vld [vmem:[%s6317_s3 + $0xf90] sm:$0xff] }
  0xcc   :  { %v837_v49 = vld [vmem:[%s6317_s3 + $0x1648] sm:$0xff]  ;;  %1448 = vmatpush.msrb.mxu0 %v709_v48  ;;  %v230_v48 = vld [vmem:[%s6317_s3 + $0x350] sm:$0xff] }
  0xcd   :  { %v965_v50 = vld [vmem:[%s6317_s3 + $0x1a48] sm:$0xff]  ;;  %1471 = vmatpush.msrb.mxu1 %v837_v49  ;;  %v358_v49 = vld [vmem:[%s6317_s3 + $0x750] sm:$0xff] }
  0xce   :  { %v1093_v53 = vld [vmem:[%s6317_s3 + $0x1e48] sm:$0xff]  ;;  %1494 = vmatpush.msrb.mxu2 %v965_v50  ;;  %v486_v50 = vld [vmem:[%s6317_s3 + $0xb50] sm:$0xff] }
  0xcf   :  { %v701_v54 = vld [vmem:[%s6317_s3 + $0x1208] sm:$0xff]  ;;  %1517 = vmatpush.msrb.mxu3 %v1093_v53  ;;  %v614_v53 = vld [vmem:[%s6317_s3 + $0xf50] sm:$0xff] }
  0xd0   :  { %v829_v55 = vld [vmem:[%s6317_s3 + $0x1608] sm:$0xff]  ;;  %1449 = vmatpush.msrb.mxu0 %v701_v54  ;;  %v222_v54 = vld [vmem:[%s6317_s3 + $0x310] sm:$0xff] }
  0xd1   :  { %v957_v56 = vld [vmem:[%s6317_s3 + $0x1a08] sm:$0xff]  ;;  %1472 = vmatpush.msrb.mxu1 %v829_v55  ;;  %v350_v55 = vld [vmem:[%s6317_s3 + $0x710] sm:$0xff] }
  0xd2   :  { %v1085_v4 = vld [vmem:[%s6317_s3 + $0x1e08] sm:$0xff]  ;;  %1495 = vmatpush.msrb.mxu2 %v957_v56  ;;  %v478_v56 = vld [vmem:[%s6317_s3 + $0xb10] sm:$0xff] }
  0xd3   :  { %v693_v63 = vld [vmem:[%s6317_s3 + $0x11c8] sm:$0xff]  ;;  %1518 = vmatpush.msrb.mxu3 %v1085_v4  ;;  %v606_v4 = vld [vmem:[%s6317_s3 + $0xf10] sm:$0xff] }
  0xd4   :  { %v821_v0 = vld [vmem:[%s6317_s3 + $0x15c8] sm:$0xff]  ;;  %1450 = vmatpush.msrb.mxu0 %v693_v63  ;;  %v214_v63 = vld [vmem:[%s6317_s3 + $0x2d0] sm:$0xff] }
  0xd5   :  { %v949_v1 = vld [vmem:[%s6317_s3 + $0x19c8] sm:$0xff]  ;;  %1473 = vmatpush.msrb.mxu1 %v821_v0  ;;  %v342_v0 = vld [vmem:[%s6317_s3 + $0x6d0] sm:$0xff] }
  0xd6   :  { %v1077_v2 = vld [vmem:[%s6317_s3 + $0x1dc8] sm:$0xff]  ;;  %1496 = vmatpush.msrb.mxu2 %v949_v1  ;;  %v470_v1 = vld [vmem:[%s6317_s3 + $0xad0] sm:$0xff] }
  0xd7   :  { %v685_v5 = vld [vmem:[%s6317_s3 + $0x1188] sm:$0xff]  ;;  %1519 = vmatpush.msrb.mxu3 %v1077_v2  ;;  %v598_v2 = vld [vmem:[%s6317_s3 + $0xed0] sm:$0xff] }
  0xd8   :  { %v813_v6 = vld [vmem:[%s6317_s3 + $0x1588] sm:$0xff]  ;;  %1451 = vmatpush.msrb.mxu0 %v685_v5  ;;  %v206_v5 = vld [vmem:[%s6317_s3 + $0x290] sm:$0xff] }
  0xd9   :  { %v941_v7 = vld [vmem:[%s6317_s3 + $0x1988] sm:$0xff]  ;;  %1474 = vmatpush.msrb.mxu1 %v813_v6  ;;  %v334_v6 = vld [vmem:[%s6317_s3 + $0x690] sm:$0xff] }
  0xda   :  { %v1069_v8 = vld [vmem:[%s6317_s3 + $0x1d88] sm:$0xff]  ;;  %1497 = vmatpush.msrb.mxu2 %v941_v7  ;;  %v462_v7 = vld [vmem:[%s6317_s3 + $0xa90] sm:$0xff] }
  0xdb   :  { %v677_v9 = vld [vmem:[%s6317_s3 + $0x1148] sm:$0xff]  ;;  %1520 = vmatpush.msrb.mxu3 %v1069_v8  ;;  %v590_v8 = vld [vmem:[%s6317_s3 + $0xe90] sm:$0xff] }
  0xdc   :  { %v805_v10 = vld [vmem:[%s6317_s3 + $0x1548] sm:$0xff]  ;;  %1452 = vmatpush.msrb.mxu0 %v677_v9  ;;  %v198_v9 = vld [vmem:[%s6317_s3 + $0x250] sm:$0xff] }
  0xdd   :  { %v933_v11 = vld [vmem:[%s6317_s3 + $0x1948] sm:$0xff]  ;;  %1475 = vmatpush.msrb.mxu1 %v805_v10  ;;  %v326_v10 = vld [vmem:[%s6317_s3 + $0x650] sm:$0xff] }
  0xde   :  { %v1061_v12 = vld [vmem:[%s6317_s3 + $0x1d48] sm:$0xff]  ;;  %1498 = vmatpush.msrb.mxu2 %v933_v11  ;;  %v454_v11 = vld [vmem:[%s6317_s3 + $0xa50] sm:$0xff] }
  0xdf   :  { %v669_v13 = vld [vmem:[%s6317_s3 + $0x1108] sm:$0xff]  ;;  %1521 = vmatpush.msrb.mxu3 %v1061_v12  ;;  %v582_v12 = vld [vmem:[%s6317_s3 + $0xe50] sm:$0xff] }
  0xe0   :  { %v797_v14 = vld [vmem:[%s6317_s3 + $0x1508] sm:$0xff]  ;;  %1453 = vmatpush.msrb.mxu0 %v669_v13  ;;  %v190_v13 = vld [vmem:[%s6317_s3 + $0x210] sm:$0xff] }
  0xe1   :  { %v925_v15 = vld [vmem:[%s6317_s3 + $0x1908] sm:$0xff]  ;;  %1476 = vmatpush.msrb.mxu1 %v797_v14  ;;  %v318_v14 = vld [vmem:[%s6317_s3 + $0x610] sm:$0xff] }
  0xe2   :  { %v1053_v16 = vld [vmem:[%s6317_s3 + $0x1d08] sm:$0xff]  ;;  %1499 = vmatpush.msrb.mxu2 %v925_v15  ;;  %v446_v15 = vld [vmem:[%s6317_s3 + $0xa10] sm:$0xff] }
  0xe3   :  { %v661_v17 = vld [vmem:[%s6317_s3 + $0x10c8] sm:$0xff]  ;;  %1522 = vmatpush.msrb.mxu3 %v1053_v16  ;;  %v574_v16 = vld [vmem:[%s6317_s3 + $0xe10] sm:$0xff] }
  0xe4   :  { %v789_v18 = vld [vmem:[%s6317_s3 + $0x14c8] sm:$0xff]  ;;  %1454 = vmatpush.msrb.mxu0 %v661_v17  ;;  %v182_v17 = vld [vmem:[%s6317_s3 + $0x1d0] sm:$0xff] }
  0xe5   :  { %v917_v19 = vld [vmem:[%s6317_s3 + $0x18c8] sm:$0xff]  ;;  %1477 = vmatpush.msrb.mxu1 %v789_v18  ;;  %v310_v18 = vld [vmem:[%s6317_s3 + $0x5d0] sm:$0xff] }
  0xe6   :  { %v1045_v20 = vld [vmem:[%s6317_s3 + $0x1cc8] sm:$0xff]  ;;  %1500 = vmatpush.msrb.mxu2 %v917_v19  ;;  %v438_v19 = vld [vmem:[%s6317_s3 + $0x9d0] sm:$0xff] }
  0xe7   :  { %v653_v21 = vld [vmem:[%s6317_s3 + $0x1088] sm:$0xff]  ;;  %1523 = vmatpush.msrb.mxu3 %v1045_v20  ;;  %v566_v20 = vld [vmem:[%s6317_s3 + $0xdd0] sm:$0xff] }
  0xe8   :  { %v781_v26 = vld [vmem:[%s6317_s3 + $0x1488] sm:$0xff]  ;;  %1455 = vmatpush.msrb.mxu0 %v653_v21  ;;  %v174_v21 = vld [vmem:[%s6317_s3 + $0x190] sm:$0xff] }
  0xe9   :  { %v909_v27 = vld [vmem:[%s6317_s3 + $0x1888] sm:$0xff]  ;;  %1478 = vmatpush.msrb.mxu1 %v781_v26  ;;  %v302_v26 = vld [vmem:[%s6317_s3 + $0x590] sm:$0xff] }
  0xea   :  { %v1037_v28 = vld [vmem:[%s6317_s3 + $0x1c88] sm:$0xff]  ;;  %1501 = vmatpush.msrb.mxu2 %v909_v27  ;;  %v430_v27 = vld [vmem:[%s6317_s3 + $0x990] sm:$0xff] }
  0xeb   :  { %v645_v34 = vld [vmem:[%s6317_s3 + $0x1048] sm:$0xff]  ;;  %1524 = vmatpush.msrb.mxu3 %v1037_v28  ;;  %v558_v28 = vld [vmem:[%s6317_s3 + $0xd90] sm:$0xff] }
  0xec   :  { %v773_v35 = vld [vmem:[%s6317_s3 + $0x1448] sm:$0xff]  ;;  %1456 = vmatpush.msrb.mxu0 %v645_v34  ;;  %v166_v34 = vld [vmem:[%s6317_s3 + $0x150] sm:$0xff] }
  0xed   :  { %v901_v36 = vld [vmem:[%s6317_s3 + $0x1848] sm:$0xff]  ;;  %1479 = vmatpush.msrb.mxu1 %v773_v35  ;;  %v294_v35 = vld [vmem:[%s6317_s3 + $0x550] sm:$0xff] }
  0xee   :  { %v1029_v37 = vld [vmem:[%s6317_s3 + $0x1c48] sm:$0xff]  ;;  %1502 = vmatpush.msrb.mxu2 %v901_v36  ;;  %v422_v36 = vld [vmem:[%s6317_s3 + $0x950] sm:$0xff] }
  0xef   :  { %v637_v38 = vld [vmem:[%s6317_s3 + $0x1008] sm:$0xff]  ;;  %1525 = vmatpush.msrb.mxu3 %v1029_v37  ;;  %v550_v37 = vld [vmem:[%s6317_s3 + $0xd50] sm:$0xff] }
  0xf0   :  { %v765_v39 = vld [vmem:[%s6317_s3 + $0x1408] sm:$0xff]  ;;  %1457 = vmatpush.msrb.mxu0 %v637_v38  ;;  %v158_v38 = vld [vmem:[%s6317_s3 + $0x110] sm:$0xff] }
  0xf1   :  { %v893_v40 = vld [vmem:[%s6317_s3 + $0x1808] sm:$0xff]  ;;  %1480 = vmatpush.msrb.mxu1 %v765_v39  ;;  %1458 = vmatmul.f32.vlgmr.msrb.gmra.mxu0 %v3334_v29  ;;  %v286_v39 = vld [vmem:[%s6317_s3 + $0x510] sm:$0xff] }
  0xf2   :  { %v1021_v41 = vld [vmem:[%s6317_s3 + $0x1c08] sm:$0xff]  ;;  %1503 = vmatpush.msrb.mxu2 %v893_v40  ;;  %1481 = vmatmul.f32.vlgmr.msrb.gmra.mxu1 %v3336_v31  ;;  %v414_v40 = vld [vmem:[%s6317_s3 + $0x910] sm:$0xff] }
  0xf3   :  { %1526 = vmatpush.msrb.mxu3 %v1021_v41  ;;  %1504 = vmatmul.f32.vlgmr.msrb.gmra.mxu2 %v3338_v32  ;;  %v542_v41 = vld [vmem:[%s6317_s3 + $0xd10] sm:$0xff] }
  0xf4   :  { %1527 = vmatmul.f32.vlgmr.msrb.gmra.mxu3 %v3340_v33  ;;  %1534 = vmatpush.msra.mxu0 %v246_v42  ;;  %v150_v42 = vld [vmem:[%s6317_s3 + $0xd0] sm:$0xff] }
  0xf5   :  { %1557 = vmatpush.msra.mxu1 %v374_v43  ;;  %1580 = vmatpush.msra.mxu2 %v502_v44  ;;  %v278_v43 = vld [vmem:[%s6317_s3 + $0x4d0] sm:$0xff] }
  0xf6   :  { %1603 = vmatpush.msra.mxu3 %v630_v3  ;;  %1535 = vmatpush.msra.mxu0 %v238_v30  ;;  %v406_v44 = vld [vmem:[%s6317_s3 + $0x8d0] sm:$0xff] }
  0xf7   :  { %1558 = vmatpush.msra.mxu1 %v366_v45  ;;  %1581 = vmatpush.msra.mxu2 %v494_v46  ;;  %v534_v3 = vld [vmem:[%s6317_s3 + $0xcd0] sm:$0xff] }
  0xf8   :  { %1604 = vmatpush.msra.mxu3 %v622_v47  ;;  %1536 = vmatpush.msra.mxu0 %v230_v48  ;;  %v142_v30 = vld [vmem:[%s6317_s3 + $0x90] sm:$0xff] }
  0xf9   :  { %1559 = vmatpush.msra.mxu1 %v358_v49  ;;  %1582 = vmatpush.msra.mxu2 %v486_v50  ;;  %v270_v45 = vld [vmem:[%s6317_s3 + $0x490] sm:$0xff] }
  0xfa   :  { %1605 = vmatpush.msra.mxu3 %v614_v53  ;;  %1537 = vmatpush.msra.mxu0 %v222_v54  ;;  %v398_v46 = vld [vmem:[%s6317_s3 + $0x890] sm:$0xff] }
  0xfb   :  { %1560 = vmatpush.msra.mxu1 %v350_v55  ;;  %1583 = vmatpush.msra.mxu2 %v478_v56  ;;  %v526_v47 = vld [vmem:[%s6317_s3 + $0xc90] sm:$0xff] }
  0xfc   :  { %1606 = vmatpush.msra.mxu3 %v606_v4  ;;  %1461 = vmatmul.f32.gmra.mxu0 %v3414_v59  ;;  %v134_v48 = vld [vmem:[%s6317_s3 + $0x50] sm:$0xff] }
  0xfd   :  { %1484 = vmatmul.f32.gmra.mxu1 %v3416_v60  ;;  %1507 = vmatmul.f32.gmra.mxu2 %v3418_v61  ;;  %v262_v49 = vld [vmem:[%s6317_s3 + $0x450] sm:$0xff] }
  0xfe   :  { %1530 = vmatmul.f32.gmra.mxu3 %v3420_v62  ;;  %1538 = vmatpush.msra.mxu0 %v214_v63  ;;  %v390_v50 = vld [vmem:[%s6317_s3 + $0x850] sm:$0xff] }
  0xff   :  { %1561 = vmatpush.msra.mxu1 %v342_v0  ;;  %1584 = vmatpush.msra.mxu2 %v470_v1  ;;  %v518_v53 = vld [vmem:[%s6317_s3 + $0xc50] sm:$0xff] }
 0x100   :  { %1607 = vmatpush.msra.mxu3 %v598_v2  ;;  %1539 = vmatpush.msra.mxu0 %v206_v5  ;;  %v126_v54 = vld [vmem:[%s6317_s3 + $0x10] sm:$0xff] }
 0x101   :  { %1562 = vmatpush.msra.mxu1 %v334_v6  ;;  %1585 = vmatpush.msra.mxu2 %v462_v7  ;;  %v254_v55 = vld [vmem:[%s6317_s3 + $0x410] sm:$0xff] }
 0x102   :  { %1608 = vmatpush.msra.mxu3 %v590_v8  ;;  %1540 = vmatpush.msra.mxu0 %v198_v9  ;;  %v382_v56 = vld [vmem:[%s6317_s3 + $0x810] sm:$0xff] }
 0x103   :  { %1563 = vmatpush.msra.mxu1 %v326_v10  ;;  %1586 = vmatpush.msra.mxu2 %v454_v11  ;;  %v510_v4 = vld [vmem:[%s6317_s3 + $0xc10] sm:$0xff] }
 0x104   :  { %1609 = vmatpush.msra.mxu3 %v582_v12  ;;  %1541 = vmatpush.msra.mxu0 %v190_v13  ;;  %v758_v63 = vld [vmem:[%s6317_s3 + $0x13d0] sm:$0xff] }
 0x105   :  { %1564 = vmatpush.msra.mxu1 %v318_v14  ;;  %1587 = vmatpush.msra.mxu2 %v446_v15  ;;  %v886_v0 = vld [vmem:[%s6317_s3 + $0x17d0] sm:$0xff] }
 0x106   :  { %1610 = vmatpush.msra.mxu3 %v574_v16  ;;  %1542 = vmatpush.msra.mxu0 %v182_v17  ;;  %v1014_v1 = vld [vmem:[%s6317_s3 + $0x1bd0] sm:$0xff] }
 0x107   :  { %1565 = vmatpush.msra.mxu1 %v310_v18  ;;  %1588 = vmatpush.msra.mxu2 %v438_v19  ;;  %v1142_v2 = vld [vmem:[%s6317_s3 + $0x1fd0] sm:$0xff] }
 0x108   :  { %1611 = vmatpush.msra.mxu3 %v566_v20  ;;  %1543 = vmatpush.msra.mxu0 %v174_v21  ;;  %v750_v5 = vld [vmem:[%s6317_s3 + $0x1390] sm:$0xff] }
 0x109   :  { %1566 = vmatpush.msra.mxu1 %v302_v26  ;;  %1589 = vmatpush.msra.mxu2 %v430_v27  ;;  %v878_v6 = vld [vmem:[%s6317_s3 + $0x1790] sm:$0xff] }
 0x10a   :  { %1612 = vmatpush.msra.mxu3 %v558_v28  ;;  %1544 = vmatpush.msra.mxu0 %v166_v34  ;;  %v1006_v7 = vld [vmem:[%s6317_s3 + $0x1b90] sm:$0xff] }
 0x10b   :  { %1567 = vmatpush.msra.mxu1 %v294_v35  ;;  %1590 = vmatpush.msra.mxu2 %v422_v36  ;;  %v1134_v8 = vld [vmem:[%s6317_s3 + $0x1f90] sm:$0xff] }
 0x10c   :  { %1613 = vmatpush.msra.mxu3 %v550_v37  ;;  %1545 = vmatpush.msra.mxu0 %v158_v38  ;;  %v742_v9 = vld [vmem:[%s6317_s3 + $0x1350] sm:$0xff] }
 0x10d   :  { %1568 = vmatpush.msra.mxu1 %v286_v39  ;;  %1591 = vmatpush.msra.mxu2 %v414_v40  ;;  %v870_v10 = vld [vmem:[%s6317_s3 + $0x1750] sm:$0xff] }
 0x10e   :  { %1614 = vmatpush.msra.mxu3 %v542_v41  ;;  %1546 = vmatpush.msra.mxu0 %v150_v42  ;;  %v998_v11 = vld [vmem:[%s6317_s3 + $0x1b50] sm:$0xff] }
 0x10f   :  { %1569 = vmatpush.msra.mxu1 %v278_v43  ;;  %1592 = vmatpush.msra.mxu2 %v406_v44  ;;  %v1126_v12 = vld [vmem:[%s6317_s3 + $0x1f50] sm:$0xff] }
 0x110   :  { %1615 = vmatpush.msra.mxu3 %v534_v3  ;;  %1547 = vmatpush.msra.mxu0 %v142_v30  ;;  %v734_v13 = vld [vmem:[%s6317_s3 + $0x1310] sm:$0xff] }
 0x111   :  { %1570 = vmatpush.msra.mxu1 %v270_v45  ;;  %1593 = vmatpush.msra.mxu2 %v398_v46  ;;  %v862_v14 = vld [vmem:[%s6317_s3 + $0x1710] sm:$0xff] }
 0x112   :  { %1616 = vmatpush.msra.mxu3 %v526_v47  ;;  %1548 = vmatpush.msra.mxu0 %v134_v48  ;;  %v990_v15 = vld [vmem:[%s6317_s3 + $0x1b10] sm:$0xff] }
 0x113   :  { %1571 = vmatpush.msra.mxu1 %v262_v49  ;;  %1594 = vmatpush.msra.mxu2 %v390_v50  ;;  %v1118_v16 = vld [vmem:[%s6317_s3 + $0x1f10] sm:$0xff] }
 0x114   :  { %1617 = vmatpush.msra.mxu3 %v518_v53  ;;  %1549 = vmatpush.msra.mxu0 %v126_v54  ;;  %v726_v17 = vld [vmem:[%s6317_s3 + $0x12d0] sm:$0xff] }
 0x115   :  { %1572 = vmatpush.msra.mxu1 %v254_v55  ;;  %1595 = vmatpush.msra.mxu2 %v382_v56  ;;  %v854_v18 = vld [vmem:[%s6317_s3 + $0x16d0] sm:$0xff] }
 0x116   :  { %1618 = vmatpush.msra.mxu3 %v510_v4  ;;  %1550 = vmatmul.f32.vlgmr.msra.gmra.mxu0 %v3180_v22  ;;  %v982_v19 = vld [vmem:[%s6317_s3 + $0x1ad0] sm:$0xff] }
 0x117   :  { %1573 = vmatmul.f32.vlgmr.msra.gmra.mxu1 %v3182_v23  ;;  %1596 = vmatmul.f32.vlgmr.msra.gmra.mxu2 %v3184_v24  ;;  %v1110_v20 = vld [vmem:[%s6317_s3 + $0x1ed0] sm:$0xff] }
 0x118   :  { %1619 = vmatmul.f32.vlgmr.msra.gmra.mxu3 %v3186_v25  ;;  %1626 = vmatpush.msrb.mxu0 %v758_v63  ;;  %v718_v21 = vld [vmem:[%s6317_s3 + $0x1290] sm:$0xff] }
 0x119   :  { %1649 = vmatpush.msrb.mxu1 %v886_v0  ;;  %1672 = vmatpush.msrb.mxu2 %v1014_v1  ;;  %v846_v26 = vld [vmem:[%s6317_s3 + $0x1690] sm:$0xff] }
 0x11a   :  { %1695 = vmatpush.msrb.mxu3 %v1142_v2  ;;  %1627 = vmatpush.msrb.mxu0 %v750_v5  ;;  %v974_v27 = vld [vmem:[%s6317_s3 + $0x1a90] sm:$0xff] }
 0x11b   :  { %1650 = vmatpush.msrb.mxu1 %v878_v6  ;;  %1673 = vmatpush.msrb.mxu2 %v1006_v7  ;;  %v1102_v28 = vld [vmem:[%s6317_s3 + $0x1e90] sm:$0xff] }
 0x11c   :  { %1696 = vmatpush.msrb.mxu3 %v1134_v8  ;;  %1628 = vmatpush.msrb.mxu0 %v742_v9  ;;  %v710_v34 = vld [vmem:[%s6317_s3 + $0x1250] sm:$0xff] }
 0x11d   :  { %1651 = vmatpush.msrb.mxu1 %v870_v10  ;;  %1674 = vmatpush.msrb.mxu2 %v998_v11  ;;  %v838_v35 = vld [vmem:[%s6317_s3 + $0x1650] sm:$0xff] }
 0x11e   :  { %1697 = vmatpush.msrb.mxu3 %v1126_v12  ;;  %1629 = vmatpush.msrb.mxu0 %v734_v13  ;;  %v966_v36 = vld [vmem:[%s6317_s3 + $0x1a50] sm:$0xff] }
 0x11f   :  { %1652 = vmatpush.msrb.mxu1 %v862_v14  ;;  %1675 = vmatpush.msrb.mxu2 %v990_v15  ;;  %v1094_v37 = vld [vmem:[%s6317_s3 + $0x1e50] sm:$0xff] }
 0x120   :  { %1698 = vmatpush.msrb.mxu3 %v1118_v16  ;;  %1553 = vmatmul.f32.gmra.mxu0 %v3242_v51  ;;  %v702_v38 = vld [vmem:[%s6317_s3 + $0x1210] sm:$0xff] }
 0x121   :  { %1576 = vmatmul.f32.gmra.mxu1 %v3244_v52  ;;  %1599 = vmatmul.f32.gmra.mxu2 %v3254_v57  ;;  %v830_v39 = vld [vmem:[%s6317_s3 + $0x1610] sm:$0xff] }
 0x122   :  { %1622 = vmatmul.f32.gmra.mxu3 %v3256_v58  ;;  %1630 = vmatpush.msrb.mxu0 %v726_v17  ;;  %v958_v40 = vld [vmem:[%s6317_s3 + $0x1a10] sm:$0xff]  ;;  %v247_v17 = vld [vmem:[%s6317_s3 + $0x3d8] sm:$0xff] }
 0x123   :  { %1653 = vmatpush.msrb.mxu1 %v854_v18  ;;  %1676 = vmatpush.msrb.mxu2 %v982_v19  ;;  %v1086_v41 = vld [vmem:[%s6317_s3 + $0x1e10] sm:$0xff]  ;;  %v375_v18 = vld [vmem:[%s6317_s3 + $0x7d8] sm:$0xff] }
 0x124   :  { %1699 = vmatpush.msrb.mxu3 %v1110_v20  ;;  %1631 = vmatpush.msrb.mxu0 %v718_v21  ;;  %v694_v42 = vld [vmem:[%s6317_s3 + $0x11d0] sm:$0xff]  ;;  %v503_v19 = vld [vmem:[%s6317_s3 + $0xbd8] sm:$0xff] }
 0x125   :  { %1654 = vmatpush.msrb.mxu1 %v846_v26  ;;  %1677 = vmatpush.msrb.mxu2 %v974_v27  ;;  %v822_v43 = vld [vmem:[%s6317_s3 + $0x15d0] sm:$0xff]  ;;  %v631_v20 = vld [vmem:[%s6317_s3 + $0xfd8] sm:$0xff] }
 0x126   :  { %1700 = vmatpush.msrb.mxu3 %v1102_v28  ;;  %1632 = vmatpush.msrb.mxu0 %v710_v34  ;;  %v950_v44 = vld [vmem:[%s6317_s3 + $0x19d0] sm:$0xff]  ;;  %v239_v21 = vld [vmem:[%s6317_s3 + $0x398] sm:$0xff] }
 0x127   :  { %1655 = vmatpush.msrb.mxu1 %v838_v35  ;;  %1678 = vmatpush.msrb.mxu2 %v966_v36  ;;  %v1078_v3 = vld [vmem:[%s6317_s3 + $0x1dd0] sm:$0xff]  ;;  %v367_v26 = vld [vmem:[%s6317_s3 + $0x798] sm:$0xff] }
 0x128   :  { %1701 = vmatpush.msrb.mxu3 %v1094_v37  ;;  %1633 = vmatpush.msrb.mxu0 %v702_v38  ;;  %v686_v30 = vld [vmem:[%s6317_s3 + $0x1190] sm:$0xff]  ;;  %v495_v27 = vld [vmem:[%s6317_s3 + $0xb98] sm:$0xff] }
 0x129   :  { %1656 = vmatpush.msrb.mxu1 %v830_v39  ;;  %1679 = vmatpush.msrb.mxu2 %v958_v40  ;;  %v814_v45 = vld [vmem:[%s6317_s3 + $0x1590] sm:$0xff]  ;;  %v623_v28 = vld [vmem:[%s6317_s3 + $0xf98] sm:$0xff] }
 0x12a   :  { %1702 = vmatpush.msrb.mxu3 %v1086_v41  ;;  %1634 = vmatpush.msrb.mxu0 %v694_v42  ;;  %v942_v46 = vld [vmem:[%s6317_s3 + $0x1990] sm:$0xff]  ;;  %v231_v34 = vld [vmem:[%s6317_s3 + $0x358] sm:$0xff] }
 0x12b   :  { %1657 = vmatpush.msrb.mxu1 %v822_v43  ;;  %v1070_v47 = vld [vmem:[%s6317_s3 + $0x1d90] sm:$0xff]  ;;  %1680 = vmatpush.msrb.mxu2 %v950_v44  ;;  %v359_v35 = vld [vmem:[%s6317_s3 + $0x758] sm:$0xff] }
 0x12c   :  { %1703 = vmatpush.msrb.mxu3 %v1078_v3  ;;  %v678_v48 = vld [vmem:[%s6317_s3 + $0x1150] sm:$0xff]  ;;  %1635 = vmatpush.msrb.mxu0 %v686_v30  ;;  %v487_v36 = vld [vmem:[%s6317_s3 + $0xb58] sm:$0xff] }
 0x12d   :  { %v806_v49 = vld [vmem:[%s6317_s3 + $0x1550] sm:$0xff]  ;;  %1658 = vmatpush.msrb.mxu1 %v814_v45  ;;  %1681 = vmatpush.msrb.mxu2 %v942_v46  ;;  %v615_v37 = vld [vmem:[%s6317_s3 + $0xf58] sm:$0xff] }
 0x12e   :  { %v934_v50 = vld [vmem:[%s6317_s3 + $0x1950] sm:$0xff]  ;;  %1704 = vmatpush.msrb.mxu3 %v1070_v47  ;;  %1636 = vmatpush.msrb.mxu0 %v678_v48  ;;  %v223_v38 = vld [vmem:[%s6317_s3 + $0x318] sm:$0xff]  ;;  %v4154_v48 = vpop.f32.mrf.mxu0 }
 0x12f   :  { %v1062_v53 = vld [vmem:[%s6317_s3 + $0x1d50] sm:$0xff]  ;;  %1659 = vmatpush.msrb.mxu1 %v806_v49  ;;  %1682 = vmatpush.msrb.mxu2 %v934_v50  ;;  %v351_v39 = vld [vmem:[%s6317_s3 + $0x718] sm:$0xff] }
 0x130   :  { %v670_v54 = vld [vmem:[%s6317_s3 + $0x1110] sm:$0xff]  ;;  %1705 = vmatpush.msrb.mxu3 %v1062_v53  ;;  %v479_v40 = vld [vmem:[%s6317_s3 + $0xb18] sm:$0xff] }
 0x131   :  { %v798_v55 = vld [vmem:[%s6317_s3 + $0x1510] sm:$0xff]  ;;  %1637 = vmatpush.msrb.mxu0 %v670_v54  ;;  %v607_v41 = vld [vmem:[%s6317_s3 + $0xf18] sm:$0xff] }
 0x132   :  { %v926_v56 = vld [vmem:[%s6317_s3 + $0x1910] sm:$0xff]  ;;  %1660 = vmatpush.msrb.mxu1 %v798_v55  ;;  %v215_v42 = vld [vmem:[%s6317_s3 + $0x2d8] sm:$0xff]  ;;  %v4168_v55 = vpop.f32.mrf.mxu1 }
 0x133   :  { %v1054_v4 = vld [vmem:[%s6317_s3 + $0x1d10] sm:$0xff]  ;;  %1683 = vmatpush.msrb.mxu2 %v926_v56  ;;  %v343_v43 = vld [vmem:[%s6317_s3 + $0x6d8] sm:$0xff] }
 0x134   :  { %v662_v63 = vld [vmem:[%s6317_s3 + $0x10d0] sm:$0xff]  ;;  %1706 = vmatpush.msrb.mxu3 %v1054_v4  ;;  %v471_v44 = vld [vmem:[%s6317_s3 + $0xad8] sm:$0xff] }
 0x135   :  { %v790_v0 = vld [vmem:[%s6317_s3 + $0x14d0] sm:$0xff]  ;;  %1638 = vmatpush.msrb.mxu0 %v662_v63  ;;  %v599_v3 = vld [vmem:[%s6317_s3 + $0xed8] sm:$0xff] }
 0x136   :  { %v918_v1 = vld [vmem:[%s6317_s3 + $0x18d0] sm:$0xff]  ;;  %1661 = vmatpush.msrb.mxu1 %v790_v0  ;;  %v207_v30 = vld [vmem:[%s6317_s3 + $0x298] sm:$0xff] }
 0x137   :  { %v1046_v2 = vld [vmem:[%s6317_s3 + $0x1cd0] sm:$0xff]  ;;  %1684 = vmatpush.msrb.mxu2 %v918_v1  ;;  %v335_v45 = vld [vmem:[%s6317_s3 + $0x698] sm:$0xff] }
 0x138   :  { %v654_v5 = vld [vmem:[%s6317_s3 + $0x1090] sm:$0xff]  ;;  %1707 = vmatpush.msrb.mxu3 %v1046_v2  ;;  %v463_v46 = vld [vmem:[%s6317_s3 + $0xa98] sm:$0xff] }
 0x139   :  { %v782_v6 = vld [vmem:[%s6317_s3 + $0x1490] sm:$0xff]  ;;  %1639 = vmatpush.msrb.mxu0 %v654_v5  ;;  %v591_v47 = vld [vmem:[%s6317_s3 + $0xe98] sm:$0xff] }
 0x13a   :  { %v910_v7 = vld [vmem:[%s6317_s3 + $0x1890] sm:$0xff]  ;;  %1662 = vmatpush.msrb.mxu1 %v782_v6  ;;  %v199_v49 = vld [vmem:[%s6317_s3 + $0x258] sm:$0xff] }
 0x13b   :  { %v1038_v8 = vld [vmem:[%s6317_s3 + $0x1c90] sm:$0xff]  ;;  %1685 = vmatpush.msrb.mxu2 %v910_v7  ;;  %v327_v50 = vld [vmem:[%s6317_s3 + $0x658] sm:$0xff] }
 0x13c   :  { %v646_v9 = vld [vmem:[%s6317_s3 + $0x1050] sm:$0xff]  ;;  %1708 = vmatpush.msrb.mxu3 %v1038_v8  ;;  %v455_v53 = vld [vmem:[%s6317_s3 + $0xa58] sm:$0xff] }
 0x13d   :  { %v774_v10 = vld [vmem:[%s6317_s3 + $0x1450] sm:$0xff]  ;;  %1640 = vmatpush.msrb.mxu0 %v646_v9  ;;  %v583_v54 = vld [vmem:[%s6317_s3 + $0xe58] sm:$0xff]  ;;  %v4200_v9 = vpop.f32.mrf.mxu2 }
 0x13e   :  { %v902_v11 = vld [vmem:[%s6317_s3 + $0x1850] sm:$0xff]  ;;  %1663 = vmatpush.msrb.mxu1 %v774_v10  ;;  %v191_v56 = vld [vmem:[%s6317_s3 + $0x218] sm:$0xff] }
 0x13f   :  { %v1030_v12 = vld [vmem:[%s6317_s3 + $0x1c50] sm:$0xff]  ;;  %1686 = vmatpush.msrb.mxu2 %v902_v11  ;;  %v319_v4 = vld [vmem:[%s6317_s3 + $0x618] sm:$0xff] }
 0x140   :  { %v638_v13 = vld [vmem:[%s6317_s3 + $0x1010] sm:$0xff]  ;;  %1709 = vmatpush.msrb.mxu3 %v1030_v12  ;;  %v447_v63 = vld [vmem:[%s6317_s3 + $0xa18] sm:$0xff] }
 0x141   :  { %v766_v14 = vld [vmem:[%s6317_s3 + $0x1410] sm:$0xff]  ;;  %1641 = vmatpush.msrb.mxu0 %v638_v13  ;;  %v575_v0 = vld [vmem:[%s6317_s3 + $0xe18] sm:$0xff] }
 0x142   :  { %v894_v15 = vld [vmem:[%s6317_s3 + $0x1810] sm:$0xff]  ;;  %1664 = vmatpush.msrb.mxu1 %v766_v14  ;;  %1642 = vmatmul.f32.vlgmr.msrb.gmra.mxu0 %v3334_v29  ;;  %v183_v1 = vld [vmem:[%s6317_s3 + $0x1d8] sm:$0xff]  ;;  %v4214_v14 = vpop.f32.mrf.mxu3 }
 0x143   :  { %v1022_v16 = vld [vmem:[%s6317_s3 + $0x1c10] sm:$0xff]  ;;  %1687 = vmatpush.msrb.mxu2 %v894_v15  ;;  %1665 = vmatmul.f32.vlgmr.msrb.gmra.mxu1 %v3336_v31  ;;  %v311_v2 = vld [vmem:[%s6317_s3 + $0x5d8] sm:$0xff] }
 0x144   :  { %1710 = vmatpush.msrb.mxu3 %v1022_v16  ;;  %1688 = vmatmul.f32.vlgmr.msrb.gmra.mxu2 %v3338_v32  ;;  %v439_v5 = vld [vmem:[%s6317_s3 + $0x9d8] sm:$0xff] }
 0x145   :  { %1711 = vmatmul.f32.vlgmr.msrb.gmra.mxu3 %v3340_v33  ;;  %1718 = vmatpush.msra.mxu0 %v247_v17  ;;  %v567_v6 = vld [vmem:[%s6317_s3 + $0xdd8] sm:$0xff]  ;;  %v4222_v17 = vpop.f32.mrf.mxu0 }
 0x146   :  { %1741 = vmatpush.msra.mxu1 %v375_v18  ;;  %1764 = vmatpush.msra.mxu2 %v503_v19  ;;  %v175_v7 = vld [vmem:[%s6317_s3 + $0x198] sm:$0xff] }
 0x147   :  { %1787 = vmatpush.msra.mxu3 %v631_v20  ;;  %1719 = vmatpush.msra.mxu0 %v239_v21  ;;  %v303_v8 = vld [vmem:[%s6317_s3 + $0x598] sm:$0xff] }
 0x148   :  { %1742 = vmatpush.msra.mxu1 %v367_v26  ;;  %1765 = vmatpush.msra.mxu2 %v495_v27  ;;  %v431_v10 = vld [vmem:[%s6317_s3 + $0x998] sm:$0xff]  ;;  %v4236_v26 = vpop.f32.mrf.mxu1 }
 0x149   :  { %1788 = vmatpush.msra.mxu3 %v623_v28  ;;  %1720 = vmatpush.msra.mxu0 %v231_v34  ;;  %v559_v11 = vld [vmem:[%s6317_s3 + $0xd98] sm:$0xff] }
 0x14a   :  { %1743 = vmatpush.msra.mxu1 %v359_v35  ;;  %1766 = vmatpush.msra.mxu2 %v487_v36  ;;  %v167_v12 = vld [vmem:[%s6317_s3 + $0x158] sm:$0xff] }
 0x14b   :  { %1789 = vmatpush.msra.mxu3 %v615_v37  ;;  %1721 = vmatpush.msra.mxu0 %v223_v38  ;;  %v295_v13 = vld [vmem:[%s6317_s3 + $0x558] sm:$0xff] }
 0x14c   :  { %1744 = vmatpush.msra.mxu1 %v351_v39  ;;  %1767 = vmatpush.msra.mxu2 %v479_v40  ;;  %v423_v15 = vld [vmem:[%s6317_s3 + $0x958] sm:$0xff] }
 0x14d   :  { %1790 = vmatpush.msra.mxu3 %v607_v41  ;;  %1645 = vmatmul.f32.gmra.mxu0 %v3414_v59  ;;  %v551_v16 = vld [vmem:[%s6317_s3 + $0xd58] sm:$0xff] }
 0x14e   :  { %1668 = vmatmul.f32.gmra.mxu1 %v3416_v60  ;;  %1691 = vmatmul.f32.gmra.mxu2 %v3418_v61  ;;  %v159_v18 = vld [vmem:[%s6317_s3 + $0x118] sm:$0xff] }
 0x14f   :  { %1714 = vmatmul.f32.gmra.mxu3 %v3420_v62  ;;  %1722 = vmatpush.msra.mxu0 %v215_v42  ;;  %v287_v19 = vld [vmem:[%s6317_s3 + $0x518] sm:$0xff]  ;;  %v4268_v42 = vpop.f32.mrf.mxu2 }
 0x150   :  { %1745 = vmatpush.msra.mxu1 %v343_v43  ;;  %1768 = vmatpush.msra.mxu2 %v471_v44  ;;  %v415_v20 = vld [vmem:[%s6317_s3 + $0x918] sm:$0xff] }
 0x151   :  { %1791 = vmatpush.msra.mxu3 %v599_v3  ;;  %1723 = vmatpush.msra.mxu0 %v207_v30  ;;  %v543_v21 = vld [vmem:[%s6317_s3 + $0xd18] sm:$0xff] }
 0x152   :  { %1746 = vmatpush.msra.mxu1 %v335_v45  ;;  %1769 = vmatpush.msra.mxu2 %v463_v46  ;;  %v151_v27 = vld [vmem:[%s6317_s3 + $0xd8] sm:$0xff]  ;;  %v4282_v45 = vpop.f32.mrf.mxu3 }
 0x153   :  { %1792 = vmatpush.msra.mxu3 %v591_v47  ;;  %1724 = vmatpush.msra.mxu0 %v199_v49  ;;  %v279_v28 = vld [vmem:[%s6317_s3 + $0x4d8] sm:$0xff]  ;;  %v4290_v49 = vpop.f32.mrf.mxu0 }
 0x154   :  { %1747 = vmatpush.msra.mxu1 %v327_v50  ;;  %1770 = vmatpush.msra.mxu2 %v455_v53  ;;  %v407_v34 = vld [vmem:[%s6317_s3 + $0x8d8] sm:$0xff]  ;;  %v4292_v50 = vpop.f32.mrf.mxu1 }
 0x155   :  { %1793 = vmatpush.msra.mxu3 %v583_v54  ;;  %1725 = vmatpush.msra.mxu0 %v191_v56  ;;  %v535_v35 = vld [vmem:[%s6317_s3 + $0xcd8] sm:$0xff] }
 0x156   :  { %1748 = vmatpush.msra.mxu1 %v319_v4  ;;  %1771 = vmatpush.msra.mxu2 %v447_v63  ;;  %v143_v36 = vld [vmem:[%s6317_s3 + $0x98] sm:$0xff] }
 0x157   :  { %1794 = vmatpush.msra.mxu3 %v575_v0  ;;  %1726 = vmatpush.msra.mxu0 %v183_v1  ;;  %v271_v37 = vld [vmem:[%s6317_s3 + $0x498] sm:$0xff] }
 0x158   :  { %1749 = vmatpush.msra.mxu1 %v311_v2  ;;  %1772 = vmatpush.msra.mxu2 %v439_v5  ;;  %v399_v38 = vld [vmem:[%s6317_s3 + $0x898] sm:$0xff] }
 0x159   :  { %1795 = vmatpush.msra.mxu3 %v567_v6  ;;  %1727 = vmatpush.msra.mxu0 %v175_v7  ;;  %v527_v39 = vld [vmem:[%s6317_s3 + $0xc98] sm:$0xff]  ;;  %v4328_v7 = vpop.f32.mrf.mxu2 }
 0x15a   :  { %1750 = vmatpush.msra.mxu1 %v303_v8  ;;  %1773 = vmatpush.msra.mxu2 %v431_v10  ;;  %v135_v40 = vld [vmem:[%s6317_s3 + $0x58] sm:$0xff] }
 0x15b   :  { %1796 = vmatpush.msra.mxu3 %v559_v11  ;;  %1728 = vmatpush.msra.mxu0 %v167_v12  ;;  %v263_v41 = vld [vmem:[%s6317_s3 + $0x458] sm:$0xff] }
 0x15c   :  { %1751 = vmatpush.msra.mxu1 %v295_v13  ;;  %1774 = vmatpush.msra.mxu2 %v423_v15  ;;  %v391_v43 = vld [vmem:[%s6317_s3 + $0x858] sm:$0xff]  ;;  %v4342_v13 = vpop.f32.mrf.mxu3 }
 0x15d   :  { %1797 = vmatpush.msra.mxu3 %v551_v16  ;;  %1729 = vmatpush.msra.mxu0 %v159_v18  ;;  %v519_v44 = vld [vmem:[%s6317_s3 + $0xc58] sm:$0xff]  ;;  %v4350_v18 = vpop.f32.mrf.mxu0 }
 0x15e   :  { %1752 = vmatpush.msra.mxu1 %v287_v19  ;;  %1775 = vmatpush.msra.mxu2 %v415_v20  ;;  %v127_v3 = vld [vmem:[%s6317_s3 + $0x18] sm:$0xff]  ;;  %v4352_v19 = vpop.f32.mrf.mxu1 }
 0x15f   :  { %1798 = vmatpush.msra.mxu3 %v543_v21  ;;  %1730 = vmatpush.msra.mxu0 %v151_v27  ;;  %v255_v30 = vld [vmem:[%s6317_s3 + $0x418] sm:$0xff] }
 0x160   :  { %1753 = vmatpush.msra.mxu1 %v279_v28  ;;  %1776 = vmatpush.msra.mxu2 %v407_v34  ;;  %v383_v46 = vld [vmem:[%s6317_s3 + $0x818] sm:$0xff] }
 0x161   :  { %1799 = vmatpush.msra.mxu3 %v535_v35  ;;  %1731 = vmatpush.msra.mxu0 %v143_v36  ;;  %v511_v47 = vld [vmem:[%s6317_s3 + $0xc18] sm:$0xff] }
 0x162   :  { %1754 = vmatpush.msra.mxu1 %v271_v37  ;;  %1777 = vmatpush.msra.mxu2 %v399_v38  ;;  %v759_v53 = vld [vmem:[%s6317_s3 + $0x13d8] sm:$0xff] }
 0x163   :  { %1800 = vmatpush.msra.mxu3 %v527_v39  ;;  %1732 = vmatpush.msra.mxu0 %v135_v40  ;;  %v887_v54 = vld [vmem:[%s6317_s3 + $0x17d8] sm:$0xff]  ;;  %v4388_v40 = vpop.f32.mrf.mxu2 }
 0x164   :  { %1755 = vmatpush.msra.mxu1 %v263_v41  ;;  %1778 = vmatpush.msra.mxu2 %v391_v43  ;;  %v1015_v56 = vld [vmem:[%s6317_s3 + $0x1bd8] sm:$0xff] }
 0x165   :  { %1801 = vmatpush.msra.mxu3 %v519_v44  ;;  %1733 = vmatpush.msra.mxu0 %v127_v3  ;;  %v1143_v4 = vld [vmem:[%s6317_s3 + $0x1fd8] sm:$0xff] }
 0x166   :  { %1756 = vmatpush.msra.mxu1 %v255_v30  ;;  %1779 = vmatpush.msra.mxu2 %v383_v46  ;;  %v751_v63 = vld [vmem:[%s6317_s3 + $0x1398] sm:$0xff]  ;;  %v4402_v30 = vpop.f32.mrf.mxu3 }
 0x167   :  { %1802 = vmatpush.msra.mxu3 %v511_v47  ;;  %1734 = vmatmul.f32.vlgmr.msra.gmra.mxu0 %v3180_v22  ;;  %v879_v0 = vld [vmem:[%s6317_s3 + $0x1798] sm:$0xff] }
 0x168   :  { %1757 = vmatmul.f32.vlgmr.msra.gmra.mxu1 %v3182_v23  ;;  %1780 = vmatmul.f32.vlgmr.msra.gmra.mxu2 %v3184_v24  ;;  %v1007_v1 = vld [vmem:[%s6317_s3 + $0x1b98] sm:$0xff] }
 0x169   :  { %1803 = vmatmul.f32.vlgmr.msra.gmra.mxu3 %v3186_v25  ;;  %1810 = vmatpush.msrb.mxu0 %v759_v53  ;;  %v1135_v2 = vld [vmem:[%s6317_s3 + $0x1f98] sm:$0xff]  ;;  %v4410_v53 = vpop.f32.mrf.mxu0 }
 0x16a   :  { %1833 = vmatpush.msrb.mxu1 %v887_v54  ;;  %1856 = vmatpush.msrb.mxu2 %v1015_v56  ;;  %v743_v5 = vld [vmem:[%s6317_s3 + $0x1358] sm:$0xff] }
 0x16b   :  { %1879 = vmatpush.msrb.mxu3 %v1143_v4  ;;  %v871_v6 = vld [vmem:[%s6317_s3 + $0x1758] sm:$0xff]  ;;  %1811 = vmatpush.msrb.mxu0 %v751_v63 }
 0x16c   :  { %1834 = vmatpush.msrb.mxu1 %v879_v0  ;;  %v999_v8 = vld [vmem:[%s6317_s3 + $0x1b58] sm:$0xff]  ;;  %1857 = vmatpush.msrb.mxu2 %v1007_v1  ;;  %v4424_v0 = vpop.f32.mrf.mxu1 }
 0x16d   :  { %v1127_v10 = vld [vmem:[%s6317_s3 + $0x1f58] sm:$0xff]  ;;  %1880 = vmatpush.msrb.mxu3 %v1135_v2  ;;  %1812 = vmatpush.msrb.mxu0 %v743_v5 }
 0x16e   :  { %v735_v11 = vld [vmem:[%s6317_s3 + $0x1318] sm:$0xff]  ;;  %1835 = vmatpush.msrb.mxu1 %v871_v6  ;;  %1858 = vmatpush.msrb.mxu2 %v999_v8 }
 0x16f   :  { %v863_v12 = vld [vmem:[%s6317_s3 + $0x1718] sm:$0xff]  ;;  %1881 = vmatpush.msrb.mxu3 %v1127_v10  ;;  %1813 = vmatpush.msrb.mxu0 %v735_v11 }
 0x170   :  { %v991_v15 = vld [vmem:[%s6317_s3 + $0x1b18] sm:$0xff]  ;;  %1836 = vmatpush.msrb.mxu1 %v863_v12  ;;  %1737 = vmatmul.f32.gmra.mxu0 %v3242_v51 }
 0x171   :  { %v1119_v16 = vld [vmem:[%s6317_s3 + $0x1f18] sm:$0xff]  ;;  %1859 = vmatpush.msrb.mxu2 %v991_v15  ;;  %1760 = vmatmul.f32.gmra.mxu1 %v3244_v52 }
 0x172   :  { %1882 = vmatpush.msrb.mxu3 %v1119_v16  ;;  %v727_v20 = vld [vmem:[%s6317_s3 + $0x12d8] sm:$0xff]  ;;  %1783 = vmatmul.f32.gmra.mxu2 %v3254_v57 }
 0x173   :  { %v855_v21 = vld [vmem:[%s6317_s3 + $0x16d8] sm:$0xff]  ;;  %1806 = vmatmul.f32.gmra.mxu3 %v3256_v58  ;;  %1814 = vmatpush.msrb.mxu0 %v727_v20  ;;  %v4456_v20 = vpop.f32.mrf.mxu2 }
 0x174   :  { %v983_v27 = vld [vmem:[%s6317_s3 + $0x1ad8] sm:$0xff]  ;;  %1837 = vmatpush.msrb.mxu1 %v855_v21 }
 0x175   :  { %v1111_v28 = vld [vmem:[%s6317_s3 + $0x1ed8] sm:$0xff]  ;;  %1860 = vmatpush.msrb.mxu2 %v983_v27 }
 0x176   :  { %v719_v34 = vld [vmem:[%s6317_s3 + $0x1298] sm:$0xff]  ;;  %1883 = vmatpush.msrb.mxu3 %v1111_v28 }
 0x177   :  { %v847_v35 = vld [vmem:[%s6317_s3 + $0x1698] sm:$0xff]  ;;  %1815 = vmatpush.msrb.mxu0 %v719_v34 }
 0x178   :  { %v975_v36 = vld [vmem:[%s6317_s3 + $0x1a98] sm:$0xff]  ;;  %1838 = vmatpush.msrb.mxu1 %v847_v35  ;;  %v4470_v35 = vpop.f32.mrf.mxu3 }
 0x179   :  { %v1103_v37 = vld [vmem:[%s6317_s3 + $0x1e98] sm:$0xff]  ;;  %1861 = vmatpush.msrb.mxu2 %v975_v36 }
 0x17a   :  { %v711_v38 = vld [vmem:[%s6317_s3 + $0x1258] sm:$0xff]  ;;  %1884 = vmatpush.msrb.mxu3 %v1103_v37 }
 0x17b   :  { %v839_v39 = vld [vmem:[%s6317_s3 + $0x1658] sm:$0xff]  ;;  %1816 = vmatpush.msrb.mxu0 %v711_v38  ;;  %v4478_v38 = vpop.f32.mrf.mxu0 }
 0x17c   :  { %v967_v41 = vld [vmem:[%s6317_s3 + $0x1a58] sm:$0xff]  ;;  %1839 = vmatpush.msrb.mxu1 %v839_v39 }
 0x17d   :  { %v1095_v43 = vld [vmem:[%s6317_s3 + $0x1e58] sm:$0xff]  ;;  %1862 = vmatpush.msrb.mxu2 %v967_v41 }
 0x17e   :  { %v703_v44 = vld [vmem:[%s6317_s3 + $0x1218] sm:$0xff]  ;;  %1885 = vmatpush.msrb.mxu3 %v1095_v43 }
 0x17f   :  { %v831_v3 = vld [vmem:[%s6317_s3 + $0x1618] sm:$0xff]  ;;  %1817 = vmatpush.msrb.mxu0 %v703_v44 }
 0x180   :  { %v959_v46 = vld [vmem:[%s6317_s3 + $0x1a18] sm:$0xff]  ;;  %1840 = vmatpush.msrb.mxu1 %v831_v3  ;;  %v4492_v3 = vpop.f32.mrf.mxu1 }
 0x181   :  { %v1087_v47 = vld [vmem:[%s6317_s3 + $0x1e18] sm:$0xff]  ;;  %1863 = vmatpush.msrb.mxu2 %v959_v46 }
 0x182   :  { %v695_v54 = vld [vmem:[%s6317_s3 + $0x11d8] sm:$0xff]  ;;  %1886 = vmatpush.msrb.mxu3 %v1087_v47 }
 0x183   :  { %v823_v56 = vld [vmem:[%s6317_s3 + $0x15d8] sm:$0xff]  ;;  %1818 = vmatpush.msrb.mxu0 %v695_v54 }
 0x184   :  { %v951_v4 = vld [vmem:[%s6317_s3 + $0x19d8] sm:$0xff]  ;;  %1841 = vmatpush.msrb.mxu1 %v823_v56 }
 0x185   :  { %v1079_v63 = vld [vmem:[%s6317_s3 + $0x1dd8] sm:$0xff]  ;;  %1864 = vmatpush.msrb.mxu2 %v951_v4 }
 0x186   :  { %v687_v1 = vld [vmem:[%s6317_s3 + $0x1198] sm:$0xff]  ;;  %1887 = vmatpush.msrb.mxu3 %v1079_v63 }
 0x187   :  { %v815_v2 = vld [vmem:[%s6317_s3 + $0x1598] sm:$0xff]  ;;  %1819 = vmatpush.msrb.mxu0 %v687_v1 }
 0x188   :  { %v943_v5 = vld [vmem:[%s6317_s3 + $0x1998] sm:$0xff]  ;;  %1842 = vmatpush.msrb.mxu1 %v815_v2 }
 0x189   :  { %v1071_v6 = vld [vmem:[%s6317_s3 + $0x1d98] sm:$0xff]  ;;  %1865 = vmatpush.msrb.mxu2 %v943_v5  ;;  %v4518_v5 = vpop.f32.mrf.mxu2 }
 0x18a   :  { %v679_v8 = vld [vmem:[%s6317_s3 + $0x1158] sm:$0xff]  ;;  %1888 = vmatpush.msrb.mxu3 %v1071_v6  ;;  %v248_v6 = vld [vmem:[%s6317_s3 + $0x3e0] sm:$0xff] }
 0x18b   :  { %v807_v10 = vld [vmem:[%s6317_s3 + $0x1558] sm:$0xff]  ;;  %1820 = vmatpush.msrb.mxu0 %v679_v8  ;;  %v376_v8 = vld [vmem:[%s6317_s3 + $0x7e0] sm:$0xff] }
 0x18c   :  { %v935_v11 = vld [vmem:[%s6317_s3 + $0x1958] sm:$0xff]  ;;  %1843 = vmatpush.msrb.mxu1 %v807_v10  ;;  %v4526_v10 = vpop.f32.mrf.mxu0 }
 0x18d   :  { %v1063_v12 = vld [vmem:[%s6317_s3 + $0x1d58] sm:$0xff]  ;;  %1866 = vmatpush.msrb.mxu2 %v935_v11  ;;  %v4528_v11 = vpop.f32.mrf.mxu3 }
 0x18e   :  { %v671_v15 = vld [vmem:[%s6317_s3 + $0x1118] sm:$0xff]  ;;  %1889 = vmatpush.msrb.mxu3 %v1063_v12  ;;  %v504_v12 = vld [vmem:[%s6317_s3 + $0xbe0] sm:$0xff] }
 0x18f   :  { %v799_v16 = vld [vmem:[%s6317_s3 + $0x1518] sm:$0xff]  ;;  %1821 = vmatpush.msrb.mxu0 %v671_v15  ;;  %v632_v15 = vld [vmem:[%s6317_s3 + $0xfe0] sm:$0xff] }
 0x190   :  { %v927_v21 = vld [vmem:[%s6317_s3 + $0x1918] sm:$0xff]  ;;  %1844 = vmatpush.msrb.mxu1 %v799_v16  ;;  %v4540_v16 = vpop.f32.mrf.mxu1 }
 0x191   :  { %v1055_v27 = vld [vmem:[%s6317_s3 + $0x1d18] sm:$0xff]  ;;  %1867 = vmatpush.msrb.mxu2 %v927_v21  ;;  %v240_v21 = vld [vmem:[%s6317_s3 + $0x3a0] sm:$0xff] }
 0x192   :  { %v663_v28 = vld [vmem:[%s6317_s3 + $0x10d8] sm:$0xff]  ;;  %1890 = vmatpush.msrb.mxu3 %v1055_v27  ;;  %v368_v27 = vld [vmem:[%s6317_s3 + $0x7a0] sm:$0xff] }
 0x193   :  { %v791_v34 = vld [vmem:[%s6317_s3 + $0x14d8] sm:$0xff]  ;;  %1822 = vmatpush.msrb.mxu0 %v663_v28  ;;  %v496_v28 = vld [vmem:[%s6317_s3 + $0xba0] sm:$0xff] }
 0x194   :  { %v919_v36 = vld [vmem:[%s6317_s3 + $0x18d8] sm:$0xff]  ;;  %1845 = vmatpush.msrb.mxu1 %v791_v34  ;;  %v624_v34 = vld [vmem:[%s6317_s3 + $0xfa0] sm:$0xff] }
 0x195   :  { %v1047_v37 = vld [vmem:[%s6317_s3 + $0x1cd8] sm:$0xff]  ;;  %1868 = vmatpush.msrb.mxu2 %v919_v36  ;;  %v232_v36 = vld [vmem:[%s6317_s3 + $0x360] sm:$0xff] }
 0x196   :  { %v655_v39 = vld [vmem:[%s6317_s3 + $0x1098] sm:$0xff]  ;;  %1891 = vmatpush.msrb.mxu3 %v1047_v37  ;;  %v360_v37 = vld [vmem:[%s6317_s3 + $0x760] sm:$0xff] }
 0x197   :  { %v783_v41 = vld [vmem:[%s6317_s3 + $0x1498] sm:$0xff]  ;;  %1823 = vmatpush.msrb.mxu0 %v655_v39  ;;  %v488_v39 = vld [vmem:[%s6317_s3 + $0xb60] sm:$0xff] }
 0x198   :  { %v911_v43 = vld [vmem:[%s6317_s3 + $0x1898] sm:$0xff]  ;;  %1846 = vmatpush.msrb.mxu1 %v783_v41  ;;  %v616_v41 = vld [vmem:[%s6317_s3 + $0xf60] sm:$0xff] }
 0x199   :  { %v1039_v44 = vld [vmem:[%s6317_s3 + $0x1c98] sm:$0xff]  ;;  %1869 = vmatpush.msrb.mxu2 %v911_v43  ;;  %v224_v43 = vld [vmem:[%s6317_s3 + $0x320] sm:$0xff] }
 0x19a   :  { %v647_v46 = vld [vmem:[%s6317_s3 + $0x1058] sm:$0xff]  ;;  %1892 = vmatpush.msrb.mxu3 %v1039_v44  ;;  %v352_v44 = vld [vmem:[%s6317_s3 + $0x720] sm:$0xff] }
 0x19b   :  { %v775_v47 = vld [vmem:[%s6317_s3 + $0x1458] sm:$0xff]  ;;  %1824 = vmatpush.msrb.mxu0 %v647_v46  ;;  %v480_v46 = vld [vmem:[%s6317_s3 + $0xb20] sm:$0xff] }
 0x19c   :  { %v903_v54 = vld [vmem:[%s6317_s3 + $0x1858] sm:$0xff]  ;;  %1847 = vmatpush.msrb.mxu1 %v775_v47  ;;  %v608_v47 = vld [vmem:[%s6317_s3 + $0xf20] sm:$0xff] }
 0x19d   :  { %v1031_v56 = vld [vmem:[%s6317_s3 + $0x1c58] sm:$0xff]  ;;  %1870 = vmatpush.msrb.mxu2 %v903_v54  ;;  %v4578_v54 = vpop.f32.mrf.mxu2 }
 0x19e   :  { %v639_v4 = vld [vmem:[%s6317_s3 + $0x1018] sm:$0xff]  ;;  %1893 = vmatpush.msrb.mxu3 %v1031_v56  ;;  %v4580_v56 = vpop.f32.mrf.mxu3 }
 0x19f   :  { %v767_v63 = vld [vmem:[%s6317_s3 + $0x1418] sm:$0xff]  ;;  %1825 = vmatpush.msrb.mxu0 %v639_v4  ;;  %v216_v4 = vld [vmem:[%s6317_s3 + $0x2e0] sm:$0xff] }
 0x1a0   :  { %v895_v1 = vld [vmem:[%s6317_s3 + $0x1818] sm:$0xff]  ;;  %1848 = vmatpush.msrb.mxu1 %v767_v63  ;;  %1826 = vmatmul.f32.vlgmr.msrb.gmra.mxu0 %v3334_v29  ;;  %v344_v63 = vld [vmem:[%s6317_s3 + $0x6e0] sm:$0xff] }
 0x1a1   :  { %v1023_v2 = vld [vmem:[%s6317_s3 + $0x1c18] sm:$0xff]  ;;  %1871 = vmatpush.msrb.mxu2 %v895_v1  ;;  %1849 = vmatmul.f32.vlgmr.msrb.gmra.mxu1 %v3336_v31  ;;  %v4588_v1 = vpop.f32.mrf.mxu0 }
 0x1a2   :  { %1894 = vmatpush.msrb.mxu3 %v1023_v2  ;;  %1872 = vmatmul.f32.vlgmr.msrb.gmra.mxu2 %v3338_v32  ;;  %v472_v2 = vld [vmem:[%s6317_s3 + $0xae0] sm:$0xff] }
 0x1a3   :  { %1895 = vmatmul.f32.vlgmr.msrb.gmra.mxu3 %v3340_v33  ;;  %1902 = vmatpush.msra.mxu0 %v248_v6  ;;  %v600_v6 = vld [vmem:[%s6317_s3 + $0xee0] sm:$0xff] }
 0x1a4   :  { %1925 = vmatpush.msra.mxu1 %v376_v8  ;;  %1948 = vmatpush.msra.mxu2 %v504_v12  ;;  %v4600_v8 = vpop.f32.mrf.mxu1  ;;  %v208_v12 = vld [vmem:[%s6317_s3 + $0x2a0] sm:$0xff] }
 0x1a5   :  { %1971 = vmatpush.msra.mxu3 %v632_v15  ;;  %1903 = vmatpush.msra.mxu0 %v240_v21  ;;  %v336_v15 = vld [vmem:[%s6317_s3 + $0x6a0] sm:$0xff] }
 0x1a6   :  { %1926 = vmatpush.msra.mxu1 %v368_v27  ;;  %1949 = vmatpush.msra.mxu2 %v496_v28  ;;  %v464_v21 = vld [vmem:[%s6317_s3 + $0xaa0] sm:$0xff] }
 0x1a7   :  { %1972 = vmatpush.msra.mxu3 %v624_v34  ;;  %1904 = vmatpush.msra.mxu0 %v232_v36  ;;  %v592_v27 = vld [vmem:[%s6317_s3 + $0xea0] sm:$0xff] }
 0x1a8   :  { %1927 = vmatpush.msra.mxu1 %v360_v37  ;;  %1950 = vmatpush.msra.mxu2 %v488_v39  ;;  %v4617_v28 = vld [vmem:[%s6320_s4] sm:$0xff] }
 0x1a9   :  { %1973 = vmatpush.msra.mxu3 %v616_v41  ;;  %1905 = vmatpush.msra.mxu0 %v224_v43  ;;  %v200_v34 = vld [vmem:[%s6317_s3 + $0x260] sm:$0xff]  ;;  %v1152_v41 = vperm.slane %v4617_v28, 2 }
 0x1aa   :  { %1928 = vmatpush.msra.mxu1 %v352_v44  ;;  %1951 = vmatpush.msra.mxu2 %v480_v46  ;;  %v328_v36 = vld [vmem:[%s6317_s3 + $0x660] sm:$0xff] }
 0x1ab   :  { %1974 = vmatpush.msra.mxu3 %v608_v47  ;;  %1829 = vmatmul.f32.gmra.mxu0 %v3414_v59  ;;  %v456_v37 = vld [vmem:[%s6317_s3 + $0xa60] sm:$0xff] }
 0x1ac   :  { %1852 = vmatmul.f32.gmra.mxu1 %v3416_v60  ;;  %1875 = vmatmul.f32.gmra.mxu2 %v3418_v61  ;;  %v584_v39 = vld [vmem:[%s6317_s3 + $0xe60] sm:$0xff] }
 0x1ad   :  { %1898 = vmatmul.f32.gmra.mxu3 %v3420_v62  ;;  %1906 = vmatpush.msra.mxu0 %v216_v4  ;;  %v192_v43 = vld [vmem:[%s6317_s3 + $0x220] sm:$0xff]  ;;  %v4644_v4 = vpop.f32.mrf.mxu2 }
 0x1ae   :  { %1929 = vmatpush.msra.mxu1 %v344_v63  ;;  %1952 = vmatpush.msra.mxu2 %v472_v2  ;;  %v320_v44 = vld [vmem:[%s6317_s3 + $0x620] sm:$0xff] }
 0x1af   :  { %1975 = vmatpush.msra.mxu3 %v600_v6  ;;  %1907 = vmatpush.msra.mxu0 %v208_v12  ;;  %v448_v46 = vld [vmem:[%s6317_s3 + $0xa20] sm:$0xff]  ;;  %v1551_v6 = vpop.f32.mrf.mxu0  ;;  %v4652_v12 = vpop.f32.mrf.mxu3 }
 0x1b0   :  { %1930 = vmatpush.msra.mxu1 %v336_v15  ;;  %1953 = vmatpush.msra.mxu2 %v464_v21  ;;  %v576_v47 = vld [vmem:[%s6317_s3 + $0xe20] sm:$0xff] }
 0x1b1   :  { %1976 = vmatpush.msra.mxu3 %v592_v27  ;;  %1908 = vmatpush.msra.mxu0 %v200_v34  ;;  %v184_v63 = vld [vmem:[%s6317_s3 + $0x1e0] sm:$0xff]  ;;  %v1552_v27 = vadd.f32 %v1551_v6, %v1152_v41 }
 0x1b2   :  { %1931 = vmatpush.msra.mxu1 %v328_v36  ;;  %1954 = vmatpush.msra.mxu2 %v456_v37  ;;  %v312_v2 = vld [vmem:[%s6317_s3 + $0x5e0] sm:$0xff]  ;;  %v1574_v37 = vpop.f32.mrf.mxu1 }
 0x1b3   :  { %1977 = vmatpush.msra.mxu3 %v584_v39  ;;  %1909 = vmatpush.msra.mxu0 %v192_v43  ;;  %v440_v15 = vld [vmem:[%s6317_s3 + $0x9e0] sm:$0xff] }
 0x1b4   :  { %1932 = vmatpush.msra.mxu1 %v320_v44  ;;  %v568_v21 = vld [vmem:[%s6317_s3 + $0xde0] sm:$0xff]  ;;  %1955 = vmatpush.msra.mxu2 %v448_v46  ;;  %v1575_v44 = vadd.f32 %v1574_v37, %v1552_v27 }
 0x1b5   :  { %1978 = vmatpush.msra.mxu3 %v576_v47  ;;  %v176_v34 = vld [vmem:[%s6317_s3 + $0x1a0] sm:$0xff]  ;;  %1910 = vmatpush.msra.mxu0 %v184_v63 }
 0x1b6   :  { %v304_v36 = vld [vmem:[%s6317_s3 + $0x5a0] sm:$0xff]  ;;  %1933 = vmatpush.msra.mxu1 %v312_v2  ;;  %1956 = vmatpush.msra.mxu2 %v440_v15 }
 0x1b7   :  { %v432_v39 = vld [vmem:[%s6317_s3 + $0x9a0] sm:$0xff]  ;;  %1979 = vmatpush.msra.mxu3 %v568_v21  ;;  %1911 = vmatpush.msra.mxu0 %v176_v34  ;;  %v1597_v34 = vpop.f32.mrf.mxu2 }
 0x1b8   :  { %v560_v43 = vld [vmem:[%s6317_s3 + $0xda0] sm:$0xff]  ;;  %1934 = vmatpush.msra.mxu1 %v304_v36  ;;  %1957 = vmatpush.msra.mxu2 %v432_v39  ;;  %v1598_v39 = vadd.f32 %v1597_v34, %v1575_v44 }
 0x1b9   :  { %v168_v46 = vld [vmem:[%s6317_s3 + $0x160] sm:$0xff]  ;;  %1980 = vmatpush.msra.mxu3 %v560_v43 }
 0x1ba   :  { %v296_v47 = vld [vmem:[%s6317_s3 + $0x560] sm:$0xff]  ;;  %1912 = vmatpush.msra.mxu0 %v168_v46 }
 0x1bb   :  { %v424_v63 = vld [vmem:[%s6317_s3 + $0x960] sm:$0xff]  ;;  %1935 = vmatpush.msra.mxu1 %v296_v47  ;;  %v1620_v47 = vpop.f32.mrf.mxu3 }
 0x1bc   :  { %v552_v2 = vld [vmem:[%s6317_s3 + $0xd60] sm:$0xff]  ;;  %1958 = vmatpush.msra.mxu2 %v424_v63 }
 0x1bd   :  { %v160_v6 = vld [vmem:[%s6317_s3 + $0x120] sm:$0xff]  ;;  %1981 = vmatpush.msra.mxu3 %v552_v2  ;;  %v4716_v2 = vadd.f32 %v1620_v47, %v1598_v39 }
 0x1be   :  { %v288_v15 = vld [vmem:[%s6317_s3 + $0x520] sm:$0xff]  ;;  %1913 = vmatpush.msra.mxu0 %v160_v6  ;;  %v1554_v6 = vpop.f32.mrf.mxu0 }
 0x1bf   :  { %v416_v21 = vld [vmem:[%s6317_s3 + $0x920] sm:$0xff]  ;;  %1936 = vmatpush.msra.mxu1 %v288_v15 }
 0x1c0   :  { %v544_v27 = vld [vmem:[%s6317_s3 + $0xd20] sm:$0xff]  ;;  %1959 = vmatpush.msra.mxu2 %v416_v21 }
 0x1c1   :  { %v152_v36 = vld [vmem:[%s6317_s3 + $0xe0] sm:$0xff]  ;;  %1982 = vmatpush.msra.mxu3 %v544_v27  ;;  %v1555_v27 = vadd.f32 %v1554_v6, %v1152_v41  ;;  %v1600_v6 = vpop.f32.mrf.mxu2 }
 0x1c2   :  { %v280_v37 = vld [vmem:[%s6317_s3 + $0x4e0] sm:$0xff]  ;;  %1914 = vmatpush.msra.mxu0 %v152_v36 }
 0x1c3   :  { %v408_v43 = vld [vmem:[%s6317_s3 + $0x8e0] sm:$0xff]  ;;  %1937 = vmatpush.msra.mxu1 %v280_v37  ;;  %v1577_v37 = vpop.f32.mrf.mxu1 }
 0x1c4   :  { %v536_v46 = vld [vmem:[%s6317_s3 + $0xce0] sm:$0xff]  ;;  %1960 = vmatpush.msra.mxu2 %v408_v43  ;;  %v1578_v43 = vadd.f32 %v1577_v37, %v1555_v27  ;;  %v1623_v37 = vpop.f32.mrf.mxu3 }
 0x1c5   :  { %v144_v63 = vld [vmem:[%s6317_s3 + $0xa0] sm:$0xff]  ;;  %1983 = vmatpush.msra.mxu3 %v536_v46 }
 0x1c6   :  { %v272_v44 = vld [vmem:[%s6317_s3 + $0x4a0] sm:$0xff]  ;;  %1915 = vmatpush.msra.mxu0 %v144_v63  ;;  %v1601_v27 = vadd.f32 %v1600_v6, %v1578_v43 }
 0x1c7   :  { %v400_v15 = vld [vmem:[%s6317_s3 + $0x8a0] sm:$0xff]  ;;  %1938 = vmatpush.msra.mxu1 %v272_v44 }
 0x1c8   :  { %v528_v21 = vld [vmem:[%s6317_s3 + $0xca0] sm:$0xff]  ;;  %1961 = vmatpush.msra.mxu2 %v400_v15  ;;  %v4772_v43 = vadd.f32 %v1623_v37, %v1601_v27 }
 0x1c9   :  { %v136_v34 = vld [vmem:[%s6317_s3 + $0x60] sm:$0xff]  ;;  %1984 = vmatpush.msra.mxu3 %v528_v21 }
 0x1ca   :  { %v264_v36 = vld [vmem:[%s6317_s3 + $0x460] sm:$0xff]  ;;  %1916 = vmatpush.msra.mxu0 %v136_v34 }
 0x1cb   :  { %v392_v39 = vld [vmem:[%s6317_s3 + $0x860] sm:$0xff]  ;;  %1939 = vmatpush.msra.mxu1 %v264_v36 }
 0x1cc   :  { %v520_v41 = vld [vmem:[%s6317_s3 + $0xc60] sm:$0xff]  ;;  %1962 = vmatpush.msra.mxu2 %v392_v39 }
 0x1cd   :  { %v128_v46 = vld [vmem:[%s6317_s3 + $0x20] sm:$0xff]  ;;  %1985 = vmatpush.msra.mxu3 %v520_v41 }
 0x1ce   :  { %v256_v47 = vld [vmem:[%s6317_s3 + $0x420] sm:$0xff]  ;;  %1917 = vmatpush.msra.mxu0 %v128_v46 }
 0x1cf   :  { %v384_v63 = vld [vmem:[%s6317_s3 + $0x820] sm:$0xff]  ;;  %1940 = vmatpush.msra.mxu1 %v256_v47  ;;  %1918 = vmatmul.f32.vlgmr.msra.gmra.mxu0 %v3180_v22 }
 0x1d0   :  { %v512_v44 = vld [vmem:[%s6317_s3 + $0xc20] sm:$0xff]  ;;  %1963 = vmatpush.msra.mxu2 %v384_v63  ;;  %1941 = vmatmul.f32.vlgmr.msra.gmra.mxu1 %v3182_v23 }
 0x1d1   :  { %1986 = vmatpush.msra.mxu3 %v512_v44  ;;  %v760_v15 = vld [vmem:[%s6317_s3 + $0x13e0] sm:$0xff]  ;;  %1964 = vmatmul.f32.vlgmr.msra.gmra.mxu2 %v3184_v24 }
 0x1d2   :  { %v888_v21 = vld [vmem:[%s6317_s3 + $0x17e0] sm:$0xff]  ;;  %1987 = vmatmul.f32.vlgmr.msra.gmra.mxu3 %v3186_v25  ;;  %1994 = vmatpush.msrb.mxu0 %v760_v15 }
 0x1d3   :  { %v1016_v34 = vld [vmem:[%s6317_s3 + $0x1be0] sm:$0xff]  ;;  %2017 = vmatpush.msrb.mxu1 %v888_v21 }
 0x1d4   :  { %v1144_v36 = vld [vmem:[%s6317_s3 + $0x1fe0] sm:$0xff]  ;;  %2040 = vmatpush.msrb.mxu2 %v1016_v34 }
 0x1d5   :  { %v752_v39 = vld [vmem:[%s6317_s3 + $0x13a0] sm:$0xff]  ;;  %2063 = vmatpush.msrb.mxu3 %v1144_v36 }
 0x1d6   :  { %v880_v41 = vld [vmem:[%s6317_s3 + $0x17a0] sm:$0xff]  ;;  %1995 = vmatpush.msrb.mxu0 %v752_v39 }
 0x1d7   :  { %v1008_v46 = vld [vmem:[%s6317_s3 + $0x1ba0] sm:$0xff]  ;;  %2018 = vmatpush.msrb.mxu1 %v880_v41  ;;  %1921 = vmatmul.f32.gmra.mxu0 %v3242_v51 }
 0x1d8   :  { %v1136_v47 = vld [vmem:[%s6317_s3 + $0x1fa0] sm:$0xff]  ;;  %2041 = vmatpush.msrb.mxu2 %v1008_v46  ;;  %1944 = vmatmul.f32.gmra.mxu1 %v3244_v52 }
 0x1d9   :  { %v744_v63 = vld [vmem:[%s6317_s3 + $0x1360] sm:$0xff]  ;;  %2064 = vmatpush.msrb.mxu3 %v1136_v47  ;;  %1967 = vmatmul.f32.gmra.mxu2 %v3254_v57 }
 0x1da   :  { %v872_v44 = vld [vmem:[%s6317_s3 + $0x1760] sm:$0xff]  ;;  %1996 = vmatpush.msrb.mxu0 %v744_v63  ;;  %1990 = vmatmul.f32.gmra.mxu3 %v3256_v58 }
 0x1db   :  { %v1000_v6 = vld [vmem:[%s6317_s3 + $0x1b60] sm:$0xff]  ;;  %2019 = vmatpush.msrb.mxu1 %v872_v44 }
 0x1dc   :  { %v1128_v15 = vld [vmem:[%s6317_s3 + $0x1f60] sm:$0xff]  ;;  %2042 = vmatpush.msrb.mxu2 %v1000_v6 }
 0x1dd   :  { %v736_v21 = vld [vmem:[%s6317_s3 + $0x1320] sm:$0xff]  ;;  %2065 = vmatpush.msrb.mxu3 %v1128_v15 }
 0x1de   :  { %v864_v27 = vld [vmem:[%s6317_s3 + $0x1720] sm:$0xff]  ;;  %1997 = vmatpush.msrb.mxu0 %v736_v21 }
 0x1df   :  { %v992_v34 = vld [vmem:[%s6317_s3 + $0x1b20] sm:$0xff]  ;;  %2020 = vmatpush.msrb.mxu1 %v864_v27 }
 0x1e0   :  { %v1120_v36 = vld [vmem:[%s6317_s3 + $0x1f20] sm:$0xff]  ;;  %2043 = vmatpush.msrb.mxu2 %v992_v34 }
 0x1e1   :  { %2066 = vmatpush.msrb.mxu3 %v1120_v36  ;;  %v728_v37 = vld [vmem:[%s6317_s3 + $0x12e0] sm:$0xff] }
 0x1e2   :  { %v856_v39 = vld [vmem:[%s6317_s3 + $0x16e0] sm:$0xff]  ;;  %1998 = vmatpush.msrb.mxu0 %v728_v37 }
 0x1e3   :  { %v984_v41 = vld [vmem:[%s6317_s3 + $0x1ae0] sm:$0xff]  ;;  %2021 = vmatpush.msrb.mxu1 %v856_v39 }
 0x1e4   :  { %v1112_v46 = vld [vmem:[%s6317_s3 + $0x1ee0] sm:$0xff]  ;;  %2044 = vmatpush.msrb.mxu2 %v984_v41 }
 0x1e5   :  { %v720_v47 = vld [vmem:[%s6317_s3 + $0x12a0] sm:$0xff]  ;;  %2067 = vmatpush.msrb.mxu3 %v1112_v46 }
 0x1e6   :  { %v848_v63 = vld [vmem:[%s6317_s3 + $0x16a0] sm:$0xff]  ;;  %1999 = vmatpush.msrb.mxu0 %v720_v47 }
 0x1e7   :  { %v976_v44 = vld [vmem:[%s6317_s3 + $0x1aa0] sm:$0xff]  ;;  %2022 = vmatpush.msrb.mxu1 %v848_v63  ;;  %v1643_v63 = vpop.f32.mrf.mxu0 }
 0x1e8   :  { %v1104_v6 = vld [vmem:[%s6317_s3 + $0x1ea0] sm:$0xff]  ;;  %2045 = vmatpush.msrb.mxu2 %v976_v44 }
 0x1e9   :  { %v712_v15 = vld [vmem:[%s6317_s3 + $0x1260] sm:$0xff]  ;;  %2068 = vmatpush.msrb.mxu3 %v1104_v6 }
 0x1ea   :  { %v840_v21 = vld [vmem:[%s6317_s3 + $0x1660] sm:$0xff]  ;;  %2000 = vmatpush.msrb.mxu0 %v712_v15  ;;  %v1644_v15 = vadd.f32 %v1643_v63, %v4716_v2 }
 0x1eb   :  { %v968_v27 = vld [vmem:[%s6317_s3 + $0x1a60] sm:$0xff]  ;;  %2023 = vmatpush.msrb.mxu1 %v840_v21 }
 0x1ec   :  { %v1096_v34 = vld [vmem:[%s6317_s3 + $0x1e60] sm:$0xff]  ;;  %2046 = vmatpush.msrb.mxu2 %v968_v27 }
 0x1ed   :  { %v704_v36 = vld [vmem:[%s6317_s3 + $0x1220] sm:$0xff]  ;;  %2069 = vmatpush.msrb.mxu3 %v1096_v34  ;;  %v1666_v34 = vpop.f32.mrf.mxu1 }
 0x1ee   :  { %v832_v37 = vld [vmem:[%s6317_s3 + $0x1620] sm:$0xff]  ;;  %2001 = vmatpush.msrb.mxu0 %v704_v36 }
 0x1ef   :  { %v960_v39 = vld [vmem:[%s6317_s3 + $0x1a20] sm:$0xff]  ;;  %2024 = vmatpush.msrb.mxu1 %v832_v37  ;;  %v1667_v37 = vadd.f32 %v1666_v34, %v1644_v15 }
 0x1f0   :  { %v1088_v41 = vld [vmem:[%s6317_s3 + $0x1e20] sm:$0xff]  ;;  %2047 = vmatpush.msrb.mxu2 %v960_v39 }
 0x1f1   :  { %v696_v46 = vld [vmem:[%s6317_s3 + $0x11e0] sm:$0xff]  ;;  %2070 = vmatpush.msrb.mxu3 %v1088_v41 }
 0x1f2   :  { %v824_v47 = vld [vmem:[%s6317_s3 + $0x15e0] sm:$0xff]  ;;  %2002 = vmatpush.msrb.mxu0 %v696_v46 }
 0x1f3   :  { %v952_v44 = vld [vmem:[%s6317_s3 + $0x19e0] sm:$0xff]  ;;  %2025 = vmatpush.msrb.mxu1 %v824_v47 }
 0x1f4   :  { %v1080_v6 = vld [vmem:[%s6317_s3 + $0x1de0] sm:$0xff]  ;;  %2048 = vmatpush.msrb.mxu2 %v952_v44 }
 0x1f5   :  { %v688_v21 = vld [vmem:[%s6317_s3 + $0x11a0] sm:$0xff]  ;;  %2071 = vmatpush.msrb.mxu3 %v1080_v6 }
 0x1f6   :  { %v816_v27 = vld [vmem:[%s6317_s3 + $0x15a0] sm:$0xff]  ;;  %2003 = vmatpush.msrb.mxu0 %v688_v21  ;;  %v1689_v21 = vpop.f32.mrf.mxu2 }
 0x1f7   :  { %v944_v36 = vld [vmem:[%s6317_s3 + $0x19a0] sm:$0xff]  ;;  %2026 = vmatpush.msrb.mxu1 %v816_v27 }
 0x1f8   :  { %v1072_v2 = vld [vmem:[%s6317_s3 + $0x1da0] sm:$0xff]  ;;  %2049 = vmatpush.msrb.mxu2 %v944_v36  ;;  %v1690_v36 = vadd.f32 %v1689_v21, %v1667_v37 }
 0x1f9   :  { %v680_v39 = vld [vmem:[%s6317_s3 + $0x1160] sm:$0xff]  ;;  %2072 = vmatpush.msrb.mxu3 %v1072_v2 }
 0x1fa   :  { %v808_v41 = vld [vmem:[%s6317_s3 + $0x1560] sm:$0xff]  ;;  %2004 = vmatpush.msrb.mxu0 %v680_v39 }
 0x1fb   :  { %v936_v46 = vld [vmem:[%s6317_s3 + $0x1960] sm:$0xff]  ;;  %2027 = vmatpush.msrb.mxu1 %v808_v41  ;;  %v1712_v41 = vpop.f32.mrf.mxu3 }
 0x1fc   :  { %v1064_v47 = vld [vmem:[%s6317_s3 + $0x1d60] sm:$0xff]  ;;  %2050 = vmatpush.msrb.mxu2 %v936_v46 }
 0x1fd   :  { %v672_v63 = vld [vmem:[%s6317_s3 + $0x1120] sm:$0xff]  ;;  %2073 = vmatpush.msrb.mxu3 %v1064_v47  ;;  %v4923_v47 = vadd.f32 %v1712_v41, %v1690_v36 }
 0x1fe   :  { %v800_v44 = vld [vmem:[%s6317_s3 + $0x1520] sm:$0xff]  ;;  %2005 = vmatpush.msrb.mxu0 %v672_v63  ;;  %v1646_v63 = vpop.f32.mrf.mxu0 }
 0x1ff   :  { %v928_v6 = vld [vmem:[%s6317_s3 + $0x1920] sm:$0xff]  ;;  %2028 = vmatpush.msrb.mxu1 %v800_v44 }
 0x200   :  { %v1056_v15 = vld [vmem:[%s6317_s3 + $0x1d20] sm:$0xff]  ;;  %2051 = vmatpush.msrb.mxu2 %v928_v6 }
 0x201   :  { %v664_v27 = vld [vmem:[%s6317_s3 + $0x10e0] sm:$0xff]  ;;  %2074 = vmatpush.msrb.mxu3 %v1056_v15  ;;  %v1647_v15 = vadd.f32 %v1646_v63, %v4772_v43  ;;  %v1692_v63 = vpop.f32.mrf.mxu2 }
 0x202   :  { %v792_v34 = vld [vmem:[%s6317_s3 + $0x14e0] sm:$0xff]  ;;  %2006 = vmatpush.msrb.mxu0 %v664_v27 }
 0x203   :  { %v920_v2 = vld [vmem:[%s6317_s3 + $0x18e0] sm:$0xff]  ;;  %2029 = vmatpush.msrb.mxu1 %v792_v34  ;;  %v1669_v34 = vpop.f32.mrf.mxu1 }
 0x204   :  { %v1048_v39 = vld [vmem:[%s6317_s3 + $0x1ce0] sm:$0xff]  ;;  %2052 = vmatpush.msrb.mxu2 %v920_v2  ;;  %v1670_v2 = vadd.f32 %v1669_v34, %v1647_v15  ;;  %v1715_v34 = vpop.f32.mrf.mxu3 }
 0x205   :  { %v656_v46 = vld [vmem:[%s6317_s3 + $0x10a0] sm:$0xff]  ;;  %2075 = vmatpush.msrb.mxu3 %v1048_v39 }
 0x206   :  { %v784_v37 = vld [vmem:[%s6317_s3 + $0x14a0] sm:$0xff]  ;;  %2007 = vmatpush.msrb.mxu0 %v656_v46  ;;  %v1693_v15 = vadd.f32 %v1692_v63, %v1670_v2  ;;  %v489_v63 = vld [vmem:[%s6317_s3 + $0xb68] sm:$0xff] }
 0x207   :  { %v912_v44 = vld [vmem:[%s6317_s3 + $0x18a0] sm:$0xff]  ;;  %2030 = vmatpush.msrb.mxu1 %v784_v37 }
 0x208   :  { %v1040_v6 = vld [vmem:[%s6317_s3 + $0x1ca0] sm:$0xff]  ;;  %2053 = vmatpush.msrb.mxu2 %v912_v44  ;;  %v249_v44 = vld [vmem:[%s6317_s3 + $0x3e8] sm:$0xff]  ;;  %v4978_v2 = vadd.f32 %v1715_v34, %v1693_v15 }
 0x209   :  { %v648_v21 = vld [vmem:[%s6317_s3 + $0x1060] sm:$0xff]  ;;  %2076 = vmatpush.msrb.mxu3 %v1040_v6  ;;  %v377_v6 = vld [vmem:[%s6317_s3 + $0x7e8] sm:$0xff] }
 0x20a   :  { %v776_v27 = vld [vmem:[%s6317_s3 + $0x1460] sm:$0xff]  ;;  %2008 = vmatpush.msrb.mxu0 %v648_v21  ;;  %v505_v21 = vld [vmem:[%s6317_s3 + $0xbe8] sm:$0xff] }
 0x20b   :  { %v904_v36 = vld [vmem:[%s6317_s3 + $0x1860] sm:$0xff]  ;;  %2031 = vmatpush.msrb.mxu1 %v776_v27  ;;  %v633_v27 = vld [vmem:[%s6317_s3 + $0xfe8] sm:$0xff] }
 0x20c   :  { %v1032_v43 = vld [vmem:[%s6317_s3 + $0x1c60] sm:$0xff]  ;;  %2054 = vmatpush.msrb.mxu2 %v904_v36  ;;  %v241_v36 = vld [vmem:[%s6317_s3 + $0x3a8] sm:$0xff] }
 0x20d   :  { %v640_v39 = vld [vmem:[%s6317_s3 + $0x1020] sm:$0xff]  ;;  %2077 = vmatpush.msrb.mxu3 %v1032_v43  ;;  %v369_v43 = vld [vmem:[%s6317_s3 + $0x7a8] sm:$0xff] }
 0x20e   :  { %v768_v41 = vld [vmem:[%s6317_s3 + $0x1420] sm:$0xff]  ;;  %2009 = vmatpush.msrb.mxu0 %v640_v39  ;;  %v497_v39 = vld [vmem:[%s6317_s3 + $0xba8] sm:$0xff] }
 0x20f   :  { %v896_v46 = vld [vmem:[%s6317_s3 + $0x1820] sm:$0xff]  ;;  %2032 = vmatpush.msrb.mxu1 %v768_v41  ;;  %2010 = vmatmul.f32.vlgmr.msrb.gmra.mxu0 %v3334_v29  ;;  %v625_v41 = vld [vmem:[%s6317_s3 + $0xfa8] sm:$0xff] }
 0x210   :  { %v1024_v37 = vld [vmem:[%s6317_s3 + $0x1c20] sm:$0xff]  ;;  %2055 = vmatpush.msrb.mxu2 %v896_v46  ;;  %2033 = vmatmul.f32.vlgmr.msrb.gmra.mxu1 %v3336_v31  ;;  %v233_v46 = vld [vmem:[%s6317_s3 + $0x368] sm:$0xff] }
 0x211   :  { %2078 = vmatpush.msrb.mxu3 %v1024_v37  ;;  %2056 = vmatmul.f32.vlgmr.msrb.gmra.mxu2 %v3338_v32  ;;  %v361_v37 = vld [vmem:[%s6317_s3 + $0x768] sm:$0xff] }
 0x212   :  { %2079 = vmatmul.f32.vlgmr.msrb.gmra.mxu3 %v3340_v33  ;;  %2086 = vmatpush.msra.mxu0 %v249_v44  ;;  %v617_v44 = vld [vmem:[%s6317_s3 + $0xf68] sm:$0xff] }
 0x213   :  { %2109 = vmatpush.msra.mxu1 %v377_v6  ;;  %2132 = vmatpush.msra.mxu2 %v505_v21  ;;  %v225_v6 = vld [vmem:[%s6317_s3 + $0x328] sm:$0xff] }
 0x214   :  { %2155 = vmatpush.msra.mxu3 %v633_v27  ;;  %2087 = vmatpush.msra.mxu0 %v241_v36  ;;  %v353_v15 = vld [vmem:[%s6317_s3 + $0x728] sm:$0xff] }
 0x215   :  { %2110 = vmatpush.msra.mxu1 %v369_v43  ;;  %2133 = vmatpush.msra.mxu2 %v497_v39  ;;  %v481_v21 = vld [vmem:[%s6317_s3 + $0xb28] sm:$0xff] }
 0x216   :  { %2156 = vmatpush.msra.mxu3 %v625_v41  ;;  %2088 = vmatpush.msra.mxu0 %v233_v46  ;;  %v609_v27 = vld [vmem:[%s6317_s3 + $0xf28] sm:$0xff] }
 0x217   :  { %2111 = vmatpush.msra.mxu1 %v361_v37  ;;  %2134 = vmatpush.msra.mxu2 %v489_v63  ;;  %v217_v34 = vld [vmem:[%s6317_s3 + $0x2e8] sm:$0xff] }
 0x218   :  { %2157 = vmatpush.msra.mxu3 %v617_v44  ;;  %2089 = vmatpush.msra.mxu0 %v225_v6  ;;  %v345_v36 = vld [vmem:[%s6317_s3 + $0x6e8] sm:$0xff] }
 0x219   :  { %2112 = vmatpush.msra.mxu1 %v353_v15  ;;  %2135 = vmatpush.msra.mxu2 %v481_v21  ;;  %v473_v43 = vld [vmem:[%s6317_s3 + $0xae8] sm:$0xff] }
 0x21a   :  { %2158 = vmatpush.msra.mxu3 %v609_v27  ;;  %2013 = vmatmul.f32.gmra.mxu0 %v3414_v59  ;;  %v601_v39 = vld [vmem:[%s6317_s3 + $0xee8] sm:$0xff]  ;;  %v6324_v27 = vperm.slane %v4617_v28, 3 }
 0x21b   :  { %2036 = vmatmul.f32.gmra.mxu1 %v3416_v60  ;;  %2059 = vmatmul.f32.gmra.mxu2 %v3418_v61  ;;  %v209_v41 = vld [vmem:[%s6317_s3 + $0x2a8] sm:$0xff] }
 0x21c   :  { %2082 = vmatmul.f32.gmra.mxu3 %v3420_v62  ;;  %v337_v46 = vld [vmem:[%s6317_s3 + $0x6a8] sm:$0xff]  ;;  %2090 = vmatpush.msra.mxu0 %v217_v34 }
 0x21d   :  { %2113 = vmatpush.msra.mxu1 %v345_v36  ;;  %v465_v37 = vld [vmem:[%s6317_s3 + $0xaa8] sm:$0xff]  ;;  %2136 = vmatpush.msra.mxu2 %v473_v43 }
 0x21e   :  { %v593_v63 = vld [vmem:[%s6317_s3 + $0xea8] sm:$0xff]  ;;  %2159 = vmatpush.msra.mxu3 %v601_v39  ;;  %2091 = vmatpush.msra.mxu0 %v209_v41 }
 0x21f   :  { %v201_v44 = vld [vmem:[%s6317_s3 + $0x268] sm:$0xff]  ;;  %2114 = vmatpush.msra.mxu1 %v337_v46  ;;  %2137 = vmatpush.msra.mxu2 %v465_v37  ;;  %v1735_v37 = vpop.f32.mrf.mxu0 }
 0x220   :  { %v329_v6 = vld [vmem:[%s6317_s3 + $0x668] sm:$0xff]  ;;  %2160 = vmatpush.msra.mxu3 %v593_v63  ;;  %2092 = vmatpush.msra.mxu0 %v201_v44 }
 0x221   :  { %v457_v15 = vld [vmem:[%s6317_s3 + $0xa68] sm:$0xff]  ;;  %2115 = vmatpush.msra.mxu1 %v329_v6  ;;  %v1736_v6 = vadd.f32 %v1735_v37, %v6324_v27  ;;  %v6334_v27 = vperm.slane %v4617_v28, 3 }
 0x222   :  { %v585_v21 = vld [vmem:[%s6317_s3 + $0xe68] sm:$0xff]  ;;  %2138 = vmatpush.msra.mxu2 %v457_v15 }
 0x223   :  { %v193_v34 = vld [vmem:[%s6317_s3 + $0x228] sm:$0xff]  ;;  %2161 = vmatpush.msra.mxu3 %v585_v21 }
 0x224   :  { %v321_v36 = vld [vmem:[%s6317_s3 + $0x628] sm:$0xff]  ;;  %2093 = vmatpush.msra.mxu0 %v193_v34  ;;  %v1758_v34 = vpop.f32.mrf.mxu1 }
 0x225   :  { %v449_v43 = vld [vmem:[%s6317_s3 + $0xa28] sm:$0xff]  ;;  %2116 = vmatpush.msra.mxu1 %v321_v36 }
 0x226   :  { %v577_v39 = vld [vmem:[%s6317_s3 + $0xe28] sm:$0xff]  ;;  %2139 = vmatpush.msra.mxu2 %v449_v43 }
 0x227   :  { %v185_v41 = vld [vmem:[%s6317_s3 + $0x1e8] sm:$0xff]  ;;  %2162 = vmatpush.msra.mxu3 %v577_v39  ;;  %v1759_v39 = vadd.f32 %v1758_v34, %v1736_v6  ;;  %v1781_v34 = vpop.f32.mrf.mxu2 }
 0x228   :  { %v313_v46 = vld [vmem:[%s6317_s3 + $0x5e8] sm:$0xff]  ;;  %2094 = vmatpush.msra.mxu0 %v185_v41 }
 0x229   :  { %v441_v63 = vld [vmem:[%s6317_s3 + $0x9e8] sm:$0xff]  ;;  %2117 = vmatpush.msra.mxu1 %v313_v46 }
 0x22a   :  { %v569_v44 = vld [vmem:[%s6317_s3 + $0xde8] sm:$0xff]  ;;  %2140 = vmatpush.msra.mxu2 %v441_v63 }
 0x22b   :  { %v177_v15 = vld [vmem:[%s6317_s3 + $0x1a8] sm:$0xff]  ;;  %2163 = vmatpush.msra.mxu3 %v569_v44 }
 0x22c   :  { %v305_v21 = vld [vmem:[%s6317_s3 + $0x5a8] sm:$0xff]  ;;  %2095 = vmatpush.msra.mxu0 %v177_v15 }
 0x22d   :  { %v433_v36 = vld [vmem:[%s6317_s3 + $0x9a8] sm:$0xff]  ;;  %2118 = vmatpush.msra.mxu1 %v305_v21 }
 0x22e   :  { %v561_v43 = vld [vmem:[%s6317_s3 + $0xda8] sm:$0xff]  ;;  %2141 = vmatpush.msra.mxu2 %v433_v36 }
 0x22f   :  { %v169_v37 = vld [vmem:[%s6317_s3 + $0x168] sm:$0xff]  ;;  %2164 = vmatpush.msra.mxu3 %v561_v43 }
 0x230   :  { %v297_v41 = vld [vmem:[%s6317_s3 + $0x568] sm:$0xff]  ;;  %2096 = vmatpush.msra.mxu0 %v169_v37  ;;  %v1782_v37 = vadd.f32 %v1781_v34, %v1759_v39  ;;  %v1150_v34 = vperm.slane %v4617_v28, 0 }
 0x231   :  { %v425_v46 = vld [vmem:[%s6317_s3 + $0x968] sm:$0xff]  ;;  %2119 = vmatpush.msra.mxu1 %v297_v41 }
 0x232   :  { %v553_v6 = vld [vmem:[%s6317_s3 + $0xd68] sm:$0xff]  ;;  %2142 = vmatpush.msra.mxu2 %v425_v46  ;;  %v1184_v60 = vadd.f32 %v4154_v48, %v1150_v34 }
 0x233   :  { %v161_v63 = vld [vmem:[%s6317_s3 + $0x128] sm:$0xff]  ;;  %2165 = vmatpush.msra.mxu3 %v553_v6  ;;  %v1804_v6 = vpop.f32.mrf.mxu3 }
 0x234   :  { %v289_v44 = vld [vmem:[%s6317_s3 + $0x528] sm:$0xff]  ;;  %2097 = vmatpush.msra.mxu0 %v161_v63  ;;  %v5132_v63 = vadd.f32 %v1804_v6, %v1782_v37 }
 0x235   :  { %v417_v15 = vld [vmem:[%s6317_s3 + $0x928] sm:$0xff]  ;;  %2120 = vmatpush.msra.mxu1 %v289_v44  ;;  %v1738_v44 = vpop.f32.mrf.mxu0 }
 0x236   :  { %v545_v21 = vld [vmem:[%s6317_s3 + $0xd28] sm:$0xff]  ;;  %2143 = vmatpush.msra.mxu2 %v417_v15  ;;  %v1739_v61 = vadd.f32 %v1738_v44, %v6334_v27 }
 0x237   :  { %v153_v36 = vld [vmem:[%s6317_s3 + $0xe8] sm:$0xff]  ;;  %2166 = vmatpush.msra.mxu3 %v545_v21 }
 0x238   :  { %v281_v43 = vld [vmem:[%s6317_s3 + $0x4e8] sm:$0xff]  ;;  %2098 = vmatpush.msra.mxu0 %v153_v36 }
 0x239   :  { %v409_v41 = vld [vmem:[%s6317_s3 + $0x8e8] sm:$0xff]  ;;  %2121 = vmatpush.msra.mxu1 %v281_v43  ;;  %v1761_v43 = vpop.f32.mrf.mxu1 }
 0x23a   :  { %v537_v46 = vld [vmem:[%s6317_s3 + $0xce8] sm:$0xff]  ;;  %2144 = vmatpush.msra.mxu2 %v409_v41  ;;  %v1762_v41 = vadd.f32 %v1761_v43, %v1739_v61  ;;  %v1207_v43 = vadd.f32 %v4168_v55, %v1184_v60 }
 0x23b   :  { %v145_v62 = vld [vmem:[%s6317_s3 + $0xa8] sm:$0xff]  ;;  %2167 = vmatpush.msra.mxu3 %v537_v46  ;;  %v6335_v46 = vperm.slane %v4617_v28, 1 }
 0x23c   :  { %v273_v39 = vld [vmem:[%s6317_s3 + $0x4a8] sm:$0xff]  ;;  %2099 = vmatpush.msra.mxu0 %v145_v62 }
 0x23d   :  { %v401_v15 = vld [vmem:[%s6317_s3 + $0x8a8] sm:$0xff]  ;;  %2122 = vmatpush.msra.mxu1 %v273_v39  ;;  %v1368_v44 = vadd.f32 %v4410_v53, %v6335_v46 }
 0x23e   :  { %v529_v21 = vld [vmem:[%s6317_s3 + $0xca8] sm:$0xff]  ;;  %2145 = vmatpush.msra.mxu2 %v401_v15  ;;  %v1784_v15 = vpop.f32.mrf.mxu2 }
 0x23f   :  { %v137_v37 = vld [vmem:[%s6317_s3 + $0x68] sm:$0xff]  ;;  %2168 = vmatpush.msra.mxu3 %v529_v21  ;;  %v1391_v21 = vadd.f32 %v4424_v0, %v1368_v44  ;;  %v1230_v44 = vadd.f32 %v4200_v9, %v1207_v43 }
 0x240   :  { %v265_v36 = vld [vmem:[%s6317_s3 + $0x468] sm:$0xff]  ;;  %2100 = vmatpush.msra.mxu0 %v137_v37 }
 0x241   :  { %v393_v6 = vld [vmem:[%s6317_s3 + $0x868] sm:$0xff]  ;;  %2123 = vmatpush.msra.mxu1 %v265_v36  ;;  %v1785_v36 = vadd.f32 %v1784_v15, %v1762_v41  ;;  %v1414_v46 = vadd.f32 %v4456_v20, %v1391_v21  ;;  %v6336_v21 = vperm.slane %v4617_v28, 1  ;;  %v1253_v43 = vadd.f32 %v4214_v14, %v1230_v44 }
 0x242   :  { %v521_v27 = vld [vmem:[%s6317_s3 + $0xc68] sm:$0xff]  ;;  %2146 = vmatpush.msra.mxu2 %v393_v6 }
 0x243   :  { %v129_v62 = vld [vmem:[%s6317_s3 + $0x28] sm:$0xff]  ;;  %2169 = vmatpush.msra.mxu3 %v521_v27  ;;  %v1807_v27 = vpop.f32.mrf.mxu3  ;;  %v1437_v15 = vadd.f32 %v4470_v35, %v1414_v46  ;;  %v1276_v14 = vadd.f32 %v4290_v49, %v1253_v43  ;;  %v1827_v43 = vpop.f32.mrf.mxu0 }
 0x244   :  { %v257_v39 = vld [vmem:[%s6317_s3 + $0x428] sm:$0xff]  ;;  %2101 = vmatpush.msra.mxu0 %v129_v62  ;;  %v5198_v41 = vadd.f32 %v1807_v27, %v1785_v36 }
 0x245   :  { %v385_v61 = vld [vmem:[%s6317_s3 + $0x828] sm:$0xff]  ;;  %2124 = vmatpush.msra.mxu1 %v257_v39  ;;  %2102 = vmatmul.f32.vlgmr.msra.gmra.mxu0 %v3180_v22  ;;  %v1299_v44 = vadd.f32 %v4292_v50, %v1276_v14  ;;  %v1850_v14 = vpop.f32.mrf.mxu1 }
 0x246   :  { %v513_v53 = vld [vmem:[%s6317_s3 + $0xc28] sm:$0xff]  ;;  %2147 = vmatpush.msra.mxu2 %v385_v61  ;;  %2125 = vmatmul.f32.vlgmr.msra.gmra.mxu1 %v3182_v23 }
 0x247   :  { %2170 = vmatpush.msra.mxu3 %v513_v53  ;;  %v761_v48 = vld [vmem:[%s6317_s3 + $0x13e8] sm:$0xff]  ;;  %2148 = vmatmul.f32.vlgmr.msra.gmra.mxu2 %v3184_v24 }
 0x248   :  { %v889_v37 = vld [vmem:[%s6317_s3 + $0x17e8] sm:$0xff]  ;;  %2171 = vmatmul.f32.vlgmr.msra.gmra.mxu3 %v3186_v25  ;;  %2178 = vmatpush.msrb.mxu0 %v761_v48  ;;  %v1371_v48 = vadd.f32 %v4478_v38, %v6336_v21 }
 0x249   :  { %v1017_v0 = vld [vmem:[%s6317_s3 + $0x1be8] sm:$0xff]  ;;  %2201 = vmatpush.msrb.mxu1 %v889_v37 }
 0x24a   :  { %v1145_v6 = vld [vmem:[%s6317_s3 + $0x1fe8] sm:$0xff]  ;;  %2224 = vmatpush.msrb.mxu2 %v1017_v0  ;;  %v1187_v0 = vadd.f32 %v4222_v17, %v1150_v34  ;;  %v1394_v27 = vadd.f32 %v4492_v3, %v1371_v48 }
 0x24b   :  { %v753_v60 = vld [vmem:[%s6317_s3 + $0x13a8] sm:$0xff]  ;;  %2247 = vmatpush.msrb.mxu3 %v1145_v6  ;;  %v1460_v6 = vadd.f32 %v4526_v10, %v1437_v15 }
 0x24c   :  { %v881_v55 = vld [vmem:[%s6317_s3 + $0x17a8] sm:$0xff]  ;;  %2179 = vmatpush.msrb.mxu0 %v753_v60  ;;  %v1210_v10 = vadd.f32 %v4236_v26, %v1187_v0  ;;  %v1417_v28 = vadd.f32 %v4518_v5, %v1394_v27 }
 0x24d   :  { %v1009_v20 = vld [vmem:[%s6317_s3 + $0x1ba8] sm:$0xff]  ;;  %2202 = vmatpush.msrb.mxu1 %v881_v55  ;;  %2105 = vmatmul.f32.gmra.mxu0 %v3242_v51  ;;  %v1483_v34 = vadd.f32 %v4540_v16, %v1460_v6 }
 0x24e   :  { %v1137_v62 = vld [vmem:[%s6317_s3 + $0x1fa8] sm:$0xff]  ;;  %2225 = vmatpush.msrb.mxu2 %v1009_v20  ;;  %2128 = vmatmul.f32.gmra.mxu1 %v3244_v52  ;;  %v1233_v16 = vadd.f32 %v4268_v42, %v1210_v10 }
 0x24f   :  { %v745_v39 = vld [vmem:[%s6317_s3 + $0x1368] sm:$0xff]  ;;  %2248 = vmatpush.msrb.mxu3 %v1137_v62  ;;  %2151 = vmatmul.f32.gmra.mxu2 %v3254_v57  ;;  %v1506_v20 = vadd.f32 %v4578_v54, %v1483_v34 }
 0x250   :  { %v873_v9 = vld [vmem:[%s6317_s3 + $0x1768] sm:$0xff]  ;;  %2180 = vmatpush.msrb.mxu0 %v745_v39  ;;  %2174 = vmatmul.f32.gmra.mxu3 %v3256_v58  ;;  %v1322_v39 = vadd.f32 %v4328_v7, %v1299_v44  ;;  %v1256_v15 = vadd.f32 %v4282_v45, %v1233_v16 }
 0x251   :  { %v1001_v61 = vld [vmem:[%s6317_s3 + $0x1b68] sm:$0xff]  ;;  %2203 = vmatpush.msrb.mxu1 %v873_v9  ;;  %v1440_v9 = vadd.f32 %v4528_v11, %v1417_v28  ;;  %v1529_v21 = vadd.f32 %v4580_v56, %v1506_v20 }
 0x252   :  { %v1129_v53 = vld [vmem:[%s6317_s3 + $0x1f68] sm:$0xff]  ;;  %2226 = vmatpush.msrb.mxu2 %v1001_v61  ;;  %v1279_v0 = vadd.f32 %v4350_v18, %v1256_v15 }
 0x253   :  { %v737_v37 = vld [vmem:[%s6317_s3 + $0x1328] sm:$0xff]  ;;  %2249 = vmatpush.msrb.mxu3 %v1129_v53  ;;  %v1463_v48 = vadd.f32 %v4588_v1, %v1440_v9  ;;  %v1828_v1 = vadd.f32 %v1827_v43, %v5132_v63 }
 0x254   :  { %v865_v36 = vld [vmem:[%s6317_s3 + $0x1728] sm:$0xff]  ;;  %2181 = vmatpush.msrb.mxu0 %v737_v37 }
 0x255   :  { %v993_v35 = vld [vmem:[%s6317_s3 + $0x1b28] sm:$0xff]  ;;  %2204 = vmatpush.msrb.mxu1 %v865_v36  ;;  %v1851_v27 = vadd.f32 %v1850_v14, %v1828_v1 }
 0x256   :  { %v1121_v38 = vld [vmem:[%s6317_s3 + $0x1f28] sm:$0xff]  ;;  %2227 = vmatpush.msrb.mxu2 %v993_v35  ;;  %v1345_v35 = vadd.f32 %v4342_v13, %v1322_v39 }
 0x257   :  { %2250 = vmatpush.msrb.mxu3 %v1121_v38  ;;  %v729_v46 = vld [vmem:[%s6317_s3 + $0x12e8] sm:$0xff]  ;;  %v5322_v38 = vld [vmem:[%s6321_s5] sm:$0xff] }
 0x258   :  { %v857_v17 = vld [vmem:[%s6317_s3 + $0x16e8] sm:$0xff]  ;;  %2182 = vmatpush.msrb.mxu0 %v729_v46  ;;  %v2639_v46 = vmax.f32 %v1529_v21, 0.0  ;;  %v2638_v28 = vmax.f32 %v1345_v35, 0.0  ;;  %v2656_v34 = vperm.slane %v5322_v38, 0 }
 0x259   :  { %v985_v49 = vld [vmem:[%s6317_s3 + $0x1ae8] sm:$0xff]  ;;  %2205 = vmatpush.msrb.mxu1 %v857_v17  ;;  %v2657_v17 = vperm.slane %v5322_v38, 1 }
 0x25a   :  { %v1113_v3 = vld [vmem:[%s6317_s3 + $0x1ee8] sm:$0xff]  ;;  %2228 = vmatpush.msrb.mxu2 %v985_v49  ;;  %v1486_v49 = vadd.f32 %v4600_v8, %v1463_v48  ;;  %v2672_v9 = vmul.f32 %v2656_v34, %v2638_v28 }
 0x25b   :  { %v721_v60 = vld [vmem:[%s6317_s3 + $0x12a8] sm:$0xff]  ;;  %2251 = vmatpush.msrb.mxu3 %v1113_v3 }
 0x25c   :  { %v849_v55 = vld [vmem:[%s6317_s3 + $0x16a8] sm:$0xff]  ;;  %2183 = vmatpush.msrb.mxu0 %v721_v60  ;;  %v1509_v44 = vadd.f32 %v4644_v4, %v1486_v49 }
 0x25d   :  { %v977_v26 = vld [vmem:[%s6317_s3 + $0x1aa8] sm:$0xff]  ;;  %2206 = vmatpush.msrb.mxu1 %v849_v55  ;;  %v1302_v55 = vadd.f32 %v4352_v19, %v1279_v0 }
 0x25e   :  { %v1105_v5 = vld [vmem:[%s6317_s3 + $0x1ea8] sm:$0xff]  ;;  %2229 = vmatpush.msrb.mxu2 %v977_v26  ;;  %v2640_v26 = vmax.f32 %v4923_v47, 0.0  ;;  %v1873_v47 = vpop.f32.mrf.mxu2 }
 0x25f   :  { %v713_v50 = vld [vmem:[%s6317_s3 + $0x1268] sm:$0xff]  ;;  %2252 = vmatpush.msrb.mxu3 %v1105_v5  ;;  %v2658_v5 = vperm.slane %v5322_v38, 2 }
 0x260   :  { %v841_v62 = vld [vmem:[%s6317_s3 + $0x1668] sm:$0xff]  ;;  %2184 = vmatpush.msrb.mxu0 %v713_v50  ;;  %v1325_v50 = vadd.f32 %v4388_v40, %v1302_v55 }
 0x261   :  { %v969_v42 = vld [vmem:[%s6317_s3 + $0x1a68] sm:$0xff]  ;;  %2207 = vmatpush.msrb.mxu1 %v841_v62  ;;  %v2673_v62 = vmul.f32 %v2657_v17, %v2639_v46 }
 0x262   :  { %v1097_v54 = vld [vmem:[%s6317_s3 + $0x1e68] sm:$0xff]  ;;  %2230 = vmatpush.msrb.mxu2 %v969_v42 }
 0x263   :  { %v705_v61 = vld [vmem:[%s6317_s3 + $0x1228] sm:$0xff]  ;;  %2253 = vmatpush.msrb.mxu3 %v1097_v54  ;;  %v1874_v54 = vadd.f32 %v1873_v47, %v1851_v27 }
 0x264   :  { %v833_v7 = vld [vmem:[%s6317_s3 + $0x1628] sm:$0xff]  ;;  %2185 = vmatpush.msrb.mxu0 %v705_v61 }
 0x265   :  { %v961_v53 = vld [vmem:[%s6317_s3 + $0x1a28] sm:$0xff]  ;;  %2208 = vmatpush.msrb.mxu1 %v833_v7  ;;  %v1896_v7 = vpop.f32.mrf.mxu3 }
 0x266   :  { %v1089_v11 = vld [vmem:[%s6317_s3 + $0x1e28] sm:$0xff]  ;;  %2231 = vmatpush.msrb.mxu2 %v961_v53  ;;  %v1532_v53 = vadd.f32 %v4652_v12, %v1509_v44  ;;  %v1897_v48 = vadd.f32 %v1896_v7, %v1874_v54  ;;  %v1876_v55 = vpop.f32.mrf.mxu2  ;;  %v234_v54 = vld [vmem:[%s6317_s3 + $0x370] sm:$0xff] }
 0x267   :  { %v697_v37 = vld [vmem:[%s6317_s3 + $0x11e8] sm:$0xff]  ;;  %2254 = vmatpush.msrb.mxu3 %v1089_v11  ;;  %v2674_v11 = vmul.f32 %v2658_v5, %v2640_v26  ;;  %v250_v26 = vld [vmem:[%s6317_s3 + $0x3f0] sm:$0xff] }
 0x268   :  { %v825_v36 = vld [vmem:[%s6317_s3 + $0x15e8] sm:$0xff]  ;;  %2186 = vmatpush.msrb.mxu0 %v697_v37  ;;  %v2659_v37 = vperm.slane %v5322_v38, 3  ;;  %v618_v7 = vld [vmem:[%s6317_s3 + $0xf70] sm:$0xff] }
 0x269   :  { %v953_v45 = vld [vmem:[%s6317_s3 + $0x19e8] sm:$0xff]  ;;  %2209 = vmatpush.msrb.mxu1 %v825_v36  ;;  %v1830_v36 = vpop.f32.mrf.mxu0 }
 0x26a   :  { %v1081_v56 = vld [vmem:[%s6317_s3 + $0x1de8] sm:$0xff]  ;;  %2232 = vmatpush.msrb.mxu2 %v953_v45  ;;  %v1831_v35 = vadd.f32 %v1830_v36, %v5198_v41  ;;  %v1348_v45 = vadd.f32 %v4402_v30, %v1325_v50  ;;  %v242_v50 = vld [vmem:[%s6317_s3 + $0x3b0] sm:$0xff] }
 0x26b   :  { %v689_v13 = vld [vmem:[%s6317_s3 + $0x11a8] sm:$0xff]  ;;  %2255 = vmatpush.msrb.mxu3 %v1081_v56  ;;  %v2688_v56 = vadd.f32 %v2673_v62, %v2672_v9  ;;  %v370_v62 = vld [vmem:[%s6317_s3 + $0x7b0] sm:$0xff] }
 0x26c   :  { %v817_v6 = vld [vmem:[%s6317_s3 + $0x15a8] sm:$0xff]  ;;  %2187 = vmatpush.msrb.mxu0 %v689_v13  ;;  %v2641_v13 = vmax.f32 %v1897_v48, 0.0  ;;  %v2646_v28 = vmax.f32 %v1348_v45, 0.0  ;;  %v362_v9 = vld [vmem:[%s6317_s3 + $0x770] sm:$0xff] }
 0x26d   :  { %v945_v63 = vld [vmem:[%s6317_s3 + $0x19a8] sm:$0xff]  ;;  %2210 = vmatpush.msrb.mxu1 %v817_v6  ;;  %v1853_v6 = vpop.f32.mrf.mxu1  ;;  %v482_v48 = vld [vmem:[%s6317_s3 + $0xb30] sm:$0xff] }
 0x26e   :  { %v1073_v18 = vld [vmem:[%s6317_s3 + $0x1da8] sm:$0xff]  ;;  %2233 = vmatpush.msrb.mxu2 %v945_v63  ;;  %v1854_v14 = vadd.f32 %v1853_v6, %v1831_v35  ;;  %v2647_v63 = vmax.f32 %v1532_v53, 0.0  ;;  %v2675_v49 = vmul.f32 %v2659_v37, %v2641_v13  ;;  %v610_v36 = vld [vmem:[%s6317_s3 + $0xf30] sm:$0xff] }
 0x26f   :  { %v681_v3 = vld [vmem:[%s6317_s3 + $0x1168] sm:$0xff]  ;;  %2256 = vmatpush.msrb.mxu3 %v1073_v18  ;;  %v2689_v18 = vadd.f32 %v2688_v56, %v2674_v11  ;;  %v226_v11 = vld [vmem:[%s6317_s3 + $0x330] sm:$0xff] }
 0x270   :  { %v809_v10 = vld [vmem:[%s6317_s3 + $0x1568] sm:$0xff]  ;;  %2188 = vmatpush.msrb.mxu0 %v681_v3  ;;  %v2681_v44 = vmul.f32 %v2657_v17, %v2647_v63  ;;  %v634_v17 = vld [vmem:[%s6317_s3 + $0xff0] sm:$0xff] }
 0x271   :  { %v937_v60 = vld [vmem:[%s6317_s3 + $0x1968] sm:$0xff]  ;;  %2211 = vmatpush.msrb.mxu1 %v809_v10  ;;  %v474_v45 = vld [vmem:[%s6317_s3 + $0xaf0] sm:$0xff] }
 0x272   :  { %v1065_v8 = vld [vmem:[%s6317_s3 + $0x1d68] sm:$0xff]  ;;  %2234 = vmatpush.msrb.mxu2 %v937_v60  ;;  %v2648_v60 = vmax.f32 %v4978_v2, 0.0  ;;  %v378_v2 = vld [vmem:[%s6317_s3 + $0x7f0] sm:$0xff] }
 0x273   :  { %v673_v16 = vld [vmem:[%s6317_s3 + $0x1128] sm:$0xff]  ;;  %2257 = vmatpush.msrb.mxu3 %v1065_v8  ;;  %v5430_v8 = vadd.f32 %v2689_v18, %v2675_v49  ;;  %v602_v56 = vld [vmem:[%s6317_s3 + $0xef0] sm:$0xff] }
 0x274   :  { %v801_v20 = vld [vmem:[%s6317_s3 + $0x1528] sm:$0xff]  ;;  %2189 = vmatpush.msrb.mxu0 %v673_v16  ;;  %v1877_v16 = vadd.f32 %v1876_v55, %v1854_v14  ;;  %v2682_v47 = vmul.f32 %v2658_v5, %v2648_v60  ;;  %v626_v5 = vld [vmem:[%s6317_s3 + $0xfb0] sm:$0xff] }
 0x275   :  { %v929_v19 = vld [vmem:[%s6317_s3 + $0x1928] sm:$0xff]  ;;  %2212 = vmatpush.msrb.mxu1 %v801_v20  ;;  %v506_v20 = vld [vmem:[%s6317_s3 + $0xbf0] sm:$0xff] }
 0x276   :  { %v1057_v4 = vld [vmem:[%s6317_s3 + $0x1d28] sm:$0xff]  ;;  %2235 = vmatpush.msrb.mxu2 %v929_v19  ;;  %v1899_v19 = vpop.f32.mrf.mxu3  ;;  %v210_v13 = vld [vmem:[%s6317_s3 + $0x2b0] sm:$0xff] }
 0x277   :  { %v665_v39 = vld [vmem:[%s6317_s3 + $0x10e8] sm:$0xff]  ;;  %2258 = vmatpush.msrb.mxu3 %v1057_v4  ;;  %v2680_v4 = vmul.f32 %v2656_v34, %v2646_v28  ;;  %v498_v34 = vld [vmem:[%s6317_s3 + $0xbb0] sm:$0xff] }
 0x278   :  { %v793_v42 = vld [vmem:[%s6317_s3 + $0x14e8] sm:$0xff]  ;;  %2190 = vmatpush.msrb.mxu0 %v665_v39  ;;  %v1900_v39 = vadd.f32 %v1899_v19, %v1877_v16  ;;  %v338_v6 = vld [vmem:[%s6317_s3 + $0x6b0] sm:$0xff] }
 0x279   :  { %v921_v40 = vld [vmem:[%s6317_s3 + $0x18e8] sm:$0xff]  ;;  %2213 = vmatpush.msrb.mxu1 %v793_v42  ;;  %v2697_v42 = vadd.f32 %v2681_v44, %v2680_v4  ;;  %v202_v14 = vld [vmem:[%s6317_s3 + $0x270] sm:$0xff]  ;;  %v1942_v4 = vpop.f32.mrf.mxu1 }
 0x27a   :  { %v1049_v61 = vld [vmem:[%s6317_s3 + $0x1ce8] sm:$0xff]  ;;  %2236 = vmatpush.msrb.mxu2 %v921_v40  ;;  %v2649_v40 = vmax.f32 %v1900_v39, 0.0  ;;  %v330_v63 = vld [vmem:[%s6317_s3 + $0x670] sm:$0xff] }
 0x27b   :  { %v657_v15 = vld [vmem:[%s6317_s3 + $0x10a8] sm:$0xff]  ;;  %2259 = vmatpush.msrb.mxu3 %v1049_v61  ;;  %v490_v61 = vld [vmem:[%s6317_s3 + $0xb70] sm:$0xff]  ;;  %v2698_v53 = vadd.f32 %v2697_v42, %v2682_v47 }
 0x27c   :  { %v785_v21 = vld [vmem:[%s6317_s3 + $0x14a8] sm:$0xff]  ;;  %2191 = vmatpush.msrb.mxu0 %v657_v15  ;;  %v354_v15 = vld [vmem:[%s6317_s3 + $0x730] sm:$0xff] }
 0x27d   :  { %v913_v12 = vld [vmem:[%s6317_s3 + $0x18a8] sm:$0xff]  ;;  %2214 = vmatpush.msrb.mxu1 %v785_v21  ;;  %v2683_v21 = vmul.f32 %v2659_v37, %v2649_v40  ;;  %v218_v37 = vld [vmem:[%s6317_s3 + $0x2f0] sm:$0xff] }
 0x27e   :  { %v1041_v43 = vld [vmem:[%s6317_s3 + $0x1ca8] sm:$0xff]  ;;  %2237 = vmatpush.msrb.mxu2 %v913_v12  ;;  %v458_v18 = vld [vmem:[%s6317_s3 + $0xa70] sm:$0xff] }
 0x27f   :  { %v649_v1 = vld [vmem:[%s6317_s3 + $0x1068] sm:$0xff]  ;;  %2260 = vmatpush.msrb.mxu3 %v1041_v43  ;;  %v5492_v12 = vadd.f32 %v2698_v53, %v2683_v21  ;;  %v346_v43 = vld [vmem:[%s6317_s3 + $0x6f0] sm:$0xff] }
 0x280   :  { %v777_v0 = vld [vmem:[%s6317_s3 + $0x1468] sm:$0xff]  ;;  %2192 = vmatpush.msrb.mxu0 %v649_v1  ;;  %v450_v28 = vld [vmem:[%s6317_s3 + $0xa30] sm:$0xff] }
 0x281   :  { %v905_v41 = vld [vmem:[%s6317_s3 + $0x1868] sm:$0xff]  ;;  %2215 = vmatpush.msrb.mxu1 %v777_v0  ;;  %v6339_v0 = vld [vmem:[#allocation5_spill] sm:$0xff] }
 0x282   :  { %v1033_v30 = vld [vmem:[%s6317_s3 + $0x1c68] sm:$0xff]  ;;  %2238 = vmatpush.msrb.mxu2 %v905_v41  ;;  %v466_v41 = vld [vmem:[%s6317_s3 + $0xab0] sm:$0xff] }
 0x283   :  { %v641_v27 = vld [vmem:[%s6317_s3 + $0x1028] sm:$0xff]  ;;  %2261 = vmatpush.msrb.mxu3 %v1033_v30  ;;  %v594_v30 = vld [vmem:[%s6317_s3 + $0xeb0] sm:$0xff] }
 0x284   :  { %v769_v46 = vld [vmem:[%s6317_s3 + $0x1428] sm:$0xff]  ;;  %2193 = vmatpush.msrb.mxu0 %v641_v27  ;;  %v586_v27 = vld [vmem:[%s6317_s3 + $0xe70] sm:$0xff] }
 0x285   :  { %v897_v3 = vld [vmem:[%s6317_s3 + $0x1828] sm:$0xff]  ;;  %2216 = vmatpush.msrb.mxu1 %v769_v46  ;;  %2194 = vmatmul.f32.vlgmr.msrb.gmra.mxu0 %v3334_v29  ;;  %v5537_v46 = vld [vmem:[%s6320_s4] sm:$0xff]  ;;  %v578_v60 = vld [vmem:[%s6317_s3 + $0xe30] sm:$0xff] }
 0x286   :  { %v1025_v10 = vld [vmem:[%s6317_s3 + $0x1c28] sm:$0xff]  ;;  %2239 = vmatpush.msrb.mxu2 %v897_v3  ;;  %2217 = vmatmul.f32.vlgmr.msrb.gmra.mxu1 %v3336_v31  ;;  %v1154_v49 = vperm.slane %v5537_v46, 4  ;;  %v194_v3 = vld [vmem:[%s6317_s3 + $0x230] sm:$0xff] }
 0x287   :  { %2262 = vmatpush.msrb.mxu3 %v1025_v10  ;;  %2240 = vmatmul.f32.vlgmr.msrb.gmra.mxu2 %v3338_v32  ;;  %v6337_v35 = vld [vmem:[#allocation3_spill] sm:$0xff]  ;;  %v6338_v1 = vld [vmem:[#allocation4_spill] sm:$0xff] }
 0x288   :  { %2263 = vmatmul.f32.vlgmr.msrb.gmra.mxu3 %v3340_v33  ;;  %2270 = vmatpush.msra.mxu0 %v250_v26  ;;  %v322_v10 = vld [vmem:[%s6317_s3 + $0x630] sm:$0xff]  ;;  %v1919_v26 = vpop.f32.mrf.mxu0 }
 0x289   :  { %2293 = vmatpush.msra.mxu1 %v378_v2  ;;  %2316 = vmatpush.msra.mxu2 %v506_v20  ;;  %v186_v55 = vld [vmem:[%s6317_s3 + $0x1f0] sm:$0xff]  ;;  %v1920_v20 = vadd.f32 %v1919_v26, %v1154_v49 }
 0x28a   :  { %2339 = vmatpush.msra.mxu3 %v634_v17  ;;  %2271 = vmatpush.msra.mxu0 %v242_v50  ;;  %v314_v44 = vld [vmem:[%s6317_s3 + $0x5f0] sm:$0xff] }
 0x28b   :  { %2294 = vmatpush.msra.mxu1 %v370_v62  ;;  %2317 = vmatpush.msra.mxu2 %v498_v34  ;;  %v442_v2 = vld [vmem:[%s6317_s3 + $0x9f0] sm:$0xff]  ;;  %v1943_v62 = vadd.f32 %v1942_v4, %v1920_v20 }
 0x28c   :  { %2340 = vmatpush.msra.mxu3 %v626_v5  ;;  %2272 = vmatpush.msra.mxu0 %v234_v54  ;;  %v570_v16 = vld [vmem:[%s6317_s3 + $0xdf0] sm:$0xff] }
 0x28d   :  { %2295 = vmatpush.msra.mxu1 %v362_v9  ;;  %2318 = vmatpush.msra.mxu2 %v490_v61  ;;  %v178_v17 = vld [vmem:[%s6317_s3 + $0x1b0] sm:$0xff] }
 0x28e   :  { %2341 = vmatpush.msra.mxu3 %v618_v7  ;;  %2273 = vmatpush.msra.mxu0 %v226_v11  ;;  %v306_v19 = vld [vmem:[%s6317_s3 + $0x5b0] sm:$0xff]  ;;  %v1965_v7 = vpop.f32.mrf.mxu2 }
 0x28f   :  { %2296 = vmatpush.msra.mxu1 %v354_v15  ;;  %2319 = vmatpush.msra.mxu2 %v482_v48  ;;  %v434_v47 = vld [vmem:[%s6317_s3 + $0x9b0] sm:$0xff]  ;;  %v1966_v15 = vadd.f32 %v1965_v7, %v1943_v62 }
 0x290   :  { %2342 = vmatpush.msra.mxu3 %v610_v36  ;;  %2197 = vmatmul.f32.gmra.mxu0 %v3414_v59  ;;  %v562_v50 = vld [vmem:[%s6317_s3 + $0xdb0] sm:$0xff]  ;;  %v1988_v36 = vpop.f32.mrf.mxu3 }
 0x291   :  { %2220 = vmatmul.f32.gmra.mxu1 %v6337_v35  ;;  %2243 = vmatmul.f32.gmra.mxu2 %v6338_v1  ;;  %v170_v39 = vld [vmem:[%s6317_s3 + $0x170] sm:$0xff] }
 0x292   :  { %2266 = vmatmul.f32.gmra.mxu3 %v6339_v0  ;;  %2274 = vmatpush.msra.mxu0 %v218_v37  ;;  %v298_v34 = vld [vmem:[%s6317_s3 + $0x570] sm:$0xff] }
 0x293   :  { %2297 = vmatpush.msra.mxu1 %v346_v43  ;;  %2320 = vmatpush.msra.mxu2 %v474_v45  ;;  %v426_v5 = vld [vmem:[%s6317_s3 + $0x970] sm:$0xff]  ;;  %v5620_v45 = vadd.f32 %v1988_v36, %v1966_v15 }
 0x294   :  { %2343 = vmatpush.msra.mxu3 %v602_v56  ;;  %2275 = vmatpush.msra.mxu0 %v210_v13  ;;  %v554_v42 = vld [vmem:[%s6317_s3 + $0xd70] sm:$0xff]  ;;  %v1922_v56 = vpop.f32.mrf.mxu0 }
 0x295   :  { %2298 = vmatpush.msra.mxu1 %v338_v6  ;;  %2321 = vmatpush.msra.mxu2 %v466_v41  ;;  %v162_v54 = vld [vmem:[%s6317_s3 + $0x130] sm:$0xff]  ;;  %v1923_v41 = vadd.f32 %v1922_v56, %v1154_v49 }
 0x296   :  { %2344 = vmatpush.msra.mxu3 %v594_v30  ;;  %2276 = vmatpush.msra.mxu0 %v202_v14  ;;  %v290_v9 = vld [vmem:[%s6317_s3 + $0x530] sm:$0xff] }
 0x297   :  { %2299 = vmatpush.msra.mxu1 %v330_v63  ;;  %2322 = vmatpush.msra.mxu2 %v458_v18  ;;  %v418_v40 = vld [vmem:[%s6317_s3 + $0x930] sm:$0xff]  ;;  %v1945_v63 = vpop.f32.mrf.mxu1 }
 0x298   :  { %2345 = vmatpush.msra.mxu3 %v586_v27  ;;  %2277 = vmatpush.msra.mxu0 %v194_v3  ;;  %v546_v61 = vld [vmem:[%s6317_s3 + $0xd30] sm:$0xff]  ;;  %v1946_v49 = vadd.f32 %v1945_v63, %v1923_v41 }
 0x299   :  { %2300 = vmatpush.msra.mxu1 %v322_v10  ;;  %2323 = vmatpush.msra.mxu2 %v450_v28  ;;  %v154_v53 = vld [vmem:[%s6317_s3 + $0xf0] sm:$0xff] }
 0x29a   :  { %2346 = vmatpush.msra.mxu3 %v578_v60  ;;  %2278 = vmatpush.msra.mxu0 %v186_v55  ;;  %v282_v11 = vld [vmem:[%s6317_s3 + $0x4f0] sm:$0xff]  ;;  %v1968_v55 = vpop.f32.mrf.mxu2 }
 0x29b   :  { %2301 = vmatpush.msra.mxu1 %v314_v44  ;;  %2324 = vmatpush.msra.mxu2 %v442_v2  ;;  %v410_v21 = vld [vmem:[%s6317_s3 + $0x8f0] sm:$0xff]  ;;  %v1969_v2 = vadd.f32 %v1968_v55, %v1946_v49 }
 0x29c   :  { %2347 = vmatpush.msra.mxu3 %v570_v16  ;;  %2279 = vmatpush.msra.mxu0 %v178_v17  ;;  %v538_v48 = vld [vmem:[%s6317_s3 + $0xcf0] sm:$0xff]  ;;  %v1991_v17 = vpop.f32.mrf.mxu3  ;;  %v2011_v49 = vpop.f32.mrf.mxu0 }
 0x29d   :  { %2302 = vmatpush.msra.mxu1 %v306_v19  ;;  %2325 = vmatpush.msra.mxu2 %v434_v47  ;;  %v146_v37 = vld [vmem:[%s6317_s3 + $0xb0] sm:$0xff]  ;;  %v5676_v47 = vadd.f32 %v1991_v17, %v1969_v2 }
 0x29e   :  { %2348 = vmatpush.msra.mxu3 %v562_v50  ;;  %2280 = vmatpush.msra.mxu0 %v170_v39  ;;  %v274_v43 = vld [vmem:[%s6317_s3 + $0x4b0] sm:$0xff] }
 0x29f   :  { %2303 = vmatpush.msra.mxu1 %v298_v34  ;;  %2326 = vmatpush.msra.mxu2 %v426_v5  ;;  %v402_v13 = vld [vmem:[%s6317_s3 + $0x8b0] sm:$0xff] }
 0x2a0   :  { %2349 = vmatpush.msra.mxu3 %v554_v42  ;;  %2281 = vmatpush.msra.mxu0 %v162_v54  ;;  %v530_v6 = vld [vmem:[%s6317_s3 + $0xcb0] sm:$0xff] }
 0x2a1   :  { %2304 = vmatpush.msra.mxu1 %v290_v9  ;;  %2327 = vmatpush.msra.mxu2 %v418_v40  ;;  %v138_v30 = vld [vmem:[%s6317_s3 + $0x70] sm:$0xff] }
 0x2a2   :  { %2350 = vmatpush.msra.mxu3 %v546_v61  ;;  %2282 = vmatpush.msra.mxu0 %v154_v53  ;;  %v266_v14 = vld [vmem:[%s6317_s3 + $0x470] sm:$0xff] }
 0x2a3   :  { %2305 = vmatpush.msra.mxu1 %v282_v11  ;;  %2328 = vmatpush.msra.mxu2 %v410_v21  ;;  %v394_v18 = vld [vmem:[%s6317_s3 + $0x870] sm:$0xff] }
 0x2a4   :  { %2351 = vmatpush.msra.mxu3 %v538_v48  ;;  %2283 = vmatpush.msra.mxu0 %v146_v37  ;;  %v522_v27 = vld [vmem:[%s6317_s3 + $0xc70] sm:$0xff] }
 0x2a5   :  { %2306 = vmatpush.msra.mxu1 %v274_v43  ;;  %2329 = vmatpush.msra.mxu2 %v402_v13  ;;  %v130_v3 = vld [vmem:[%s6317_s3 + $0x30] sm:$0xff] }
 0x2a6   :  { %2352 = vmatpush.msra.mxu3 %v530_v6  ;;  %v258_v10 = vld [vmem:[%s6317_s3 + $0x430] sm:$0xff]  ;;  %2284 = vmatpush.msra.mxu0 %v138_v30 }
 0x2a7   :  { %2307 = vmatpush.msra.mxu1 %v266_v14  ;;  %v386_v28 = vld [vmem:[%s6317_s3 + $0x830] sm:$0xff]  ;;  %2330 = vmatpush.msra.mxu2 %v394_v18 }
 0x2a8   :  { %v514_v60 = vld [vmem:[%s6317_s3 + $0xc30] sm:$0xff]  ;;  %2353 = vmatpush.msra.mxu3 %v522_v27  ;;  %2285 = vmatpush.msra.mxu0 %v130_v3 }
 0x2a9   :  { %2308 = vmatpush.msra.mxu1 %v258_v10  ;;  %2331 = vmatpush.msra.mxu2 %v386_v28  ;;  %v762_v44 = vld [vmem:[%s6317_s3 + $0x13f0] sm:$0xff]  ;;  %v2012_v28 = vadd.f32 %v2011_v49, %v5620_v45 }
 0x2aa   :  { %2354 = vmatpush.msra.mxu3 %v514_v60  ;;  %v890_v26 = vld [vmem:[%s6317_s3 + $0x17f0] sm:$0xff]  ;;  %2286 = vmatmul.f32.vlgmr.msra.gmra.mxu0 %v3180_v22 }
 0x2ab   :  { %2309 = vmatmul.f32.vlgmr.msra.gmra.mxu1 %v3182_v23  ;;  %v1018_v16 = vld [vmem:[%s6317_s3 + $0x1bf0] sm:$0xff]  ;;  %2332 = vmatmul.f32.vlgmr.msra.gmra.mxu2 %v3184_v24 }
 0x2ac   :  { %v1146_v20 = vld [vmem:[%s6317_s3 + $0x1ff0] sm:$0xff]  ;;  %2355 = vmatmul.f32.vlgmr.msra.gmra.mxu3 %v3186_v25  ;;  %2362 = vmatpush.msrb.mxu0 %v762_v44  ;;  %v2034_v44 = vpop.f32.mrf.mxu1 }
 0x2ad   :  { %v754_v19 = vld [vmem:[%s6317_s3 + $0x13b0] sm:$0xff]  ;;  %2385 = vmatpush.msrb.mxu1 %v890_v26  ;;  %2408 = vmatpush.msrb.mxu2 %v1018_v16  ;;  %v2035_v2 = vadd.f32 %v2034_v44, %v2012_v28  ;;  %v251_v28 = vld [vmem:[%s6317_s3 + $0x3f8] sm:$0xff] }
 0x2ae   :  { %v882_v4 = vld [vmem:[%s6317_s3 + $0x17b0] sm:$0xff]  ;;  %2431 = vmatpush.msrb.mxu3 %v1146_v20  ;;  %2363 = vmatpush.msrb.mxu0 %v754_v19  ;;  %v635_v44 = vld [vmem:[%s6317_s3 + $0xff8] sm:$0xff] }
 0x2af   :  { %v1010_v50 = vld [vmem:[%s6317_s3 + $0x1bb0] sm:$0xff]  ;;  %2386 = vmatpush.msrb.mxu1 %v882_v4 }
 0x2b0   :  { %v1138_v62 = vld [vmem:[%s6317_s3 + $0x1fb0] sm:$0xff]  ;;  %2409 = vmatpush.msrb.mxu2 %v1010_v50 }
 0x2b1   :  { %v746_v39 = vld [vmem:[%s6317_s3 + $0x1370] sm:$0xff]  ;;  %2432 = vmatpush.msrb.mxu3 %v1138_v62 }
 0x2b2   :  { %v874_v34 = vld [vmem:[%s6317_s3 + $0x1770] sm:$0xff]  ;;  %2364 = vmatpush.msrb.mxu0 %v746_v39 }
 0x2b3   :  { %v1002_v5 = vld [vmem:[%s6317_s3 + $0x1b70] sm:$0xff]  ;;  %2387 = vmatpush.msrb.mxu1 %v874_v34  ;;  %2289 = vmatmul.f32.gmra.mxu0 %v3242_v51  ;;  %v2057_v34 = vpop.f32.mrf.mxu2 }
 0x2b4   :  { %v1130_v42 = vld [vmem:[%s6317_s3 + $0x1f70] sm:$0xff]  ;;  %2410 = vmatpush.msrb.mxu2 %v1002_v5  ;;  %2312 = vmatmul.f32.gmra.mxu1 %v3244_v52 }
 0x2b5   :  { %v738_v54 = vld [vmem:[%s6317_s3 + $0x1330] sm:$0xff]  ;;  %2433 = vmatpush.msrb.mxu3 %v1130_v42  ;;  %2335 = vmatmul.f32.gmra.mxu2 %v3254_v57 }
 0x2b6   :  { %v866_v9 = vld [vmem:[%s6317_s3 + $0x1730] sm:$0xff]  ;;  %2365 = vmatpush.msrb.mxu0 %v738_v54  ;;  %2358 = vmatmul.f32.gmra.mxu3 %v3256_v58  ;;  %v2058_v54 = vadd.f32 %v2057_v34, %v2035_v2  ;;  %v371_v2 = vld [vmem:[%s6317_s3 + $0x7b8] sm:$0xff] }
 0x2b7   :  { %v994_v40 = vld [vmem:[%s6317_s3 + $0x1b30] sm:$0xff]  ;;  %2388 = vmatpush.msrb.mxu1 %v866_v9  ;;  %v227_v34 = vld [vmem:[%s6317_s3 + $0x338] sm:$0xff] }
 0x2b8   :  { %v1122_v61 = vld [vmem:[%s6317_s3 + $0x1f30] sm:$0xff]  ;;  %2411 = vmatpush.msrb.mxu2 %v994_v40 }
 0x2b9   :  { %2434 = vmatpush.msrb.mxu3 %v1122_v61  ;;  %v730_v7 = vld [vmem:[%s6317_s3 + $0x12f0] sm:$0xff]  ;;  %v2080_v61 = vpop.f32.mrf.mxu3 }
 0x2ba   :  { %v858_v53 = vld [vmem:[%s6317_s3 + $0x16f0] sm:$0xff]  ;;  %2366 = vmatpush.msrb.mxu0 %v730_v7 }
 0x2bb   :  { %v986_v11 = vld [vmem:[%s6317_s3 + $0x1af0] sm:$0xff]  ;;  %2389 = vmatpush.msrb.mxu1 %v858_v53 }
 0x2bc   :  { %v1114_v15 = vld [vmem:[%s6317_s3 + $0x1ef0] sm:$0xff]  ;;  %2412 = vmatpush.msrb.mxu2 %v986_v11  ;;  %v2081_v11 = vadd.f32 %v2080_v61, %v2058_v54  ;;  %v483_v54 = vld [vmem:[%s6317_s3 + $0xb38] sm:$0xff] }
 0x2bd   :  { %v722_v21 = vld [vmem:[%s6317_s3 + $0x12b0] sm:$0xff]  ;;  %2435 = vmatpush.msrb.mxu3 %v1114_v15  ;;  %v2660_v15 = vperm.slane %v5322_v38, 4  ;;  %v219_v38 = vld [vmem:[%s6317_s3 + $0x2f8] sm:$0xff] }
 0x2be   :  { %v850_v48 = vld [vmem:[%s6317_s3 + $0x16b0] sm:$0xff]  ;;  %2367 = vmatpush.msrb.mxu0 %v722_v21  ;;  %v2014_v21 = vpop.f32.mrf.mxu0  ;;  %v347_v61 = vld [vmem:[%s6317_s3 + $0x6f8] sm:$0xff] }
 0x2bf   :  { %v978_v36 = vld [vmem:[%s6317_s3 + $0x1ab0] sm:$0xff]  ;;  %2390 = vmatpush.msrb.mxu1 %v850_v48 }
 0x2c0   :  { %v1106_v37 = vld [vmem:[%s6317_s3 + $0x1eb0] sm:$0xff]  ;;  %2413 = vmatpush.msrb.mxu2 %v978_v36 }
 0x2c1   :  { %v714_v43 = vld [vmem:[%s6317_s3 + $0x1270] sm:$0xff]  ;;  %2436 = vmatpush.msrb.mxu3 %v1106_v37  ;;  %v2015_v37 = vadd.f32 %v2014_v21, %v5676_v47  ;;  %v595_v21 = vld [vmem:[%s6317_s3 + $0xeb8] sm:$0xff] }
 0x2c2   :  { %v842_v56 = vld [vmem:[%s6317_s3 + $0x1670] sm:$0xff]  ;;  %2368 = vmatpush.msrb.mxu0 %v714_v43 }
 0x2c3   :  { %v970_v13 = vld [vmem:[%s6317_s3 + $0x1a70] sm:$0xff]  ;;  %2391 = vmatpush.msrb.mxu1 %v842_v56 }
 0x2c4   :  { %v1098_v6 = vld [vmem:[%s6317_s3 + $0x1e70] sm:$0xff]  ;;  %2414 = vmatpush.msrb.mxu2 %v970_v13  ;;  %v2642_v13 = vmax.f32 %v2081_v11, 0.0  ;;  %v339_v11 = vld [vmem:[%s6317_s3 + $0x6b8] sm:$0xff] }
 0x2c5   :  { %v706_v41 = vld [vmem:[%s6317_s3 + $0x1230] sm:$0xff]  ;;  %2437 = vmatpush.msrb.mxu3 %v1098_v6  ;;  %v2037_v6 = vpop.f32.mrf.mxu1 }
 0x2c6   :  { %v834_v30 = vld [vmem:[%s6317_s3 + $0x1630] sm:$0xff]  ;;  %2369 = vmatpush.msrb.mxu0 %v706_v41 }
 0x2c7   :  { %v962_v14 = vld [vmem:[%s6317_s3 + $0x1a30] sm:$0xff]  ;;  %2392 = vmatpush.msrb.mxu1 %v834_v30  ;;  %v2038_v30 = vadd.f32 %v2037_v6, %v2015_v37  ;;  %v459_v37 = vld [vmem:[%s6317_s3 + $0xa78] sm:$0xff] }
 0x2c8   :  { %v1090_v63 = vld [vmem:[%s6317_s3 + $0x1e30] sm:$0xff]  ;;  %2415 = vmatpush.msrb.mxu2 %v962_v14  ;;  %v323_v6 = vld [vmem:[%s6317_s3 + $0x638] sm:$0xff] }
 0x2c9   :  { %v698_v18 = vld [vmem:[%s6317_s3 + $0x11f0] sm:$0xff]  ;;  %2438 = vmatpush.msrb.mxu3 %v1090_v63 }
 0x2ca   :  { %v826_v27 = vld [vmem:[%s6317_s3 + $0x15f0] sm:$0xff]  ;;  %2370 = vmatpush.msrb.mxu0 %v698_v18  ;;  %v2676_v18 = vmul.f32 %v2660_v15, %v2642_v13  ;;  %v195_v13 = vld [vmem:[%s6317_s3 + $0x238] sm:$0xff] }
 0x2cb   :  { %v954_v3 = vld [vmem:[%s6317_s3 + $0x19f0] sm:$0xff]  ;;  %2393 = vmatpush.msrb.mxu1 %v826_v27 }
 0x2cc   :  { %v1082_v10 = vld [vmem:[%s6317_s3 + $0x1df0] sm:$0xff]  ;;  %2416 = vmatpush.msrb.mxu2 %v954_v3  ;;  %v5862_v3 = vadd.f32 %v5430_v8, %v2676_v18  ;;  %v507_v8 = vld [vmem:[%s6317_s3 + $0xbf8] sm:$0xff] }
 0x2cd   :  { %v690_v60 = vld [vmem:[%s6317_s3 + $0x11b0] sm:$0xff]  ;;  %2439 = vmatpush.msrb.mxu3 %v1082_v10  ;;  %v2060_v10 = vpop.f32.mrf.mxu2  ;;  %v443_v18 = vld [vmem:[%s6317_s3 + $0x9f8] sm:$0xff] }
 0x2ce   :  { %v818_v55 = vld [vmem:[%s6317_s3 + $0x15b0] sm:$0xff]  ;;  %2371 = vmatpush.msrb.mxu0 %v690_v60  ;;  %v379_v60 = vld [vmem:[%s6317_s3 + $0x7f8] sm:$0xff] }
 0x2cf   :  { %v946_v26 = vld [vmem:[%s6317_s3 + $0x19b0] sm:$0xff]  ;;  %2394 = vmatpush.msrb.mxu1 %v818_v55  ;;  %v2061_v55 = vadd.f32 %v2060_v10, %v2038_v30  ;;  %v187_v30 = vld [vmem:[%s6317_s3 + $0x1f8] sm:$0xff] }
 0x2d0   :  { %v1074_v45 = vld [vmem:[%s6317_s3 + $0x1db0] sm:$0xff]  ;;  %2417 = vmatpush.msrb.mxu2 %v946_v26  ;;  %v2083_v26 = vpop.f32.mrf.mxu3  ;;  %v179_v10 = vld [vmem:[%s6317_s3 + $0x1b8] sm:$0xff] }
 0x2d1   :  { %v682_v16 = vld [vmem:[%s6317_s3 + $0x1170] sm:$0xff]  ;;  %2440 = vmatpush.msrb.mxu3 %v1074_v45  ;;  %v243_v45 = vld [vmem:[%s6317_s3 + $0x3b8] sm:$0xff] }
 0x2d2   :  { %v810_v20 = vld [vmem:[%s6317_s3 + $0x1570] sm:$0xff]  ;;  %2372 = vmatpush.msrb.mxu0 %v682_v16  ;;  %v2084_v16 = vadd.f32 %v2083_v26, %v2061_v55  ;;  %v435_v55 = vld [vmem:[%s6317_s3 + $0x9b8] sm:$0xff] }
 0x2d3   :  { %v938_v17 = vld [vmem:[%s6317_s3 + $0x1970] sm:$0xff]  ;;  %2395 = vmatpush.msrb.mxu1 %v810_v20  ;;  %v499_v20 = vld [vmem:[%s6317_s3 + $0xbb8] sm:$0xff] }
 0x2d4   :  { %v1066_v19 = vld [vmem:[%s6317_s3 + $0x1d70] sm:$0xff]  ;;  %2418 = vmatpush.msrb.mxu2 %v938_v17  ;;  %v627_v17 = vld [vmem:[%s6317_s3 + $0xfb8] sm:$0xff] }
 0x2d5   :  { %v674_v4 = vld [vmem:[%s6317_s3 + $0x1130] sm:$0xff]  ;;  %2441 = vmatpush.msrb.mxu3 %v1066_v19  ;;  %v235_v19 = vld [vmem:[%s6317_s3 + $0x378] sm:$0xff] }
 0x2d6   :  { %v802_v50 = vld [vmem:[%s6317_s3 + $0x1530] sm:$0xff]  ;;  %2373 = vmatpush.msrb.mxu0 %v674_v4  ;;  %v363_v4 = vld [vmem:[%s6317_s3 + $0x778] sm:$0xff] }
 0x2d7   :  { %v930_v62 = vld [vmem:[%s6317_s3 + $0x1930] sm:$0xff]  ;;  %2396 = vmatpush.msrb.mxu1 %v802_v50  ;;  %v2650_v50 = vmax.f32 %v2084_v16, 0.0  ;;  %v171_v26 = vld [vmem:[%s6317_s3 + $0x178] sm:$0xff] }
 0x2d8   :  { %v1058_v39 = vld [vmem:[%s6317_s3 + $0x1d30] sm:$0xff]  ;;  %2419 = vmatpush.msrb.mxu2 %v930_v62  ;;  %v491_v62 = vld [vmem:[%s6317_s3 + $0xb78] sm:$0xff] }
 0x2d9   :  { %v666_v5 = vld [vmem:[%s6317_s3 + $0x10f0] sm:$0xff]  ;;  %2442 = vmatpush.msrb.mxu3 %v1058_v39  ;;  %v619_v39 = vld [vmem:[%s6317_s3 + $0xf78] sm:$0xff] }
 0x2da   :  { %v794_v42 = vld [vmem:[%s6317_s3 + $0x14f0] sm:$0xff]  ;;  %2374 = vmatpush.msrb.mxu0 %v666_v5  ;;  %v355_v5 = vld [vmem:[%s6317_s3 + $0x738] sm:$0xff] }
 0x2db   :  { %v922_v9 = vld [vmem:[%s6317_s3 + $0x18f0] sm:$0xff]  ;;  %2397 = vmatpush.msrb.mxu1 %v794_v42  ;;  %v2684_v42 = vmul.f32 %v2660_v15, %v2650_v50  ;;  %v467_v15 = vld [vmem:[%s6317_s3 + $0xab8] sm:$0xff]  ;;  %v2149_v50 = vpop.f32.mrf.mxu2 }
 0x2dc   :  { %v1050_v40 = vld [vmem:[%s6317_s3 + $0x1cf0] sm:$0xff]  ;;  %2420 = vmatpush.msrb.mxu2 %v922_v9  ;;  %v611_v9 = vld [vmem:[%s6317_s3 + $0xf38] sm:$0xff] }
 0x2dd   :  { %v658_v7 = vld [vmem:[%s6317_s3 + $0x10b0] sm:$0xff]  ;;  %2443 = vmatpush.msrb.mxu3 %v1050_v40  ;;  %v5919_v40 = vadd.f32 %v5492_v12, %v2684_v42  ;;  %v475_v12 = vld [vmem:[%s6317_s3 + $0xaf8] sm:$0xff] }
 0x2de   :  { %v786_v53 = vld [vmem:[%s6317_s3 + $0x14b0] sm:$0xff]  ;;  %2375 = vmatpush.msrb.mxu0 %v658_v7  ;;  %v603_v7 = vld [vmem:[%s6317_s3 + $0xef8] sm:$0xff] }
 0x2df   :  { %v914_v48 = vld [vmem:[%s6317_s3 + $0x18b0] sm:$0xff]  ;;  %2398 = vmatpush.msrb.mxu1 %v786_v53  ;;  %v211_v53 = vld [vmem:[%s6317_s3 + $0x2b8] sm:$0xff] }
 0x2e0   :  { %v1042_v36 = vld [vmem:[%s6317_s3 + $0x1cb0] sm:$0xff]  ;;  %2421 = vmatpush.msrb.mxu2 %v914_v48  ;;  %v203_v48 = vld [vmem:[%s6317_s3 + $0x278] sm:$0xff] }
 0x2e1   :  { %v650_v43 = vld [vmem:[%s6317_s3 + $0x1070] sm:$0xff]  ;;  %2444 = vmatpush.msrb.mxu3 %v1042_v36  ;;  %v331_v36 = vld [vmem:[%s6317_s3 + $0x678] sm:$0xff] }
 0x2e2   :  { %v778_v56 = vld [vmem:[%s6317_s3 + $0x1470] sm:$0xff]  ;;  %2376 = vmatpush.msrb.mxu0 %v650_v43  ;;  %v587_v43 = vld [vmem:[%s6317_s3 + $0xe78] sm:$0xff] }
 0x2e3   :  { %v906_v41 = vld [vmem:[%s6317_s3 + $0x1870] sm:$0xff]  ;;  %2399 = vmatpush.msrb.mxu1 %v778_v56  ;;  %v1155_v56 = vperm.slane %v5537_v46, 5  ;;  %v555_v16 = vld [vmem:[%s6317_s3 + $0xd78] sm:$0xff] }
 0x2e4   :  { %v1034_v47 = vld [vmem:[%s6317_s3 + $0x1c70] sm:$0xff]  ;;  %2422 = vmatpush.msrb.mxu2 %v906_v41  ;;  %v451_v41 = vld [vmem:[%s6317_s3 + $0xa38] sm:$0xff] }
 0x2e5   :  { %v642_v14 = vld [vmem:[%s6317_s3 + $0x1030] sm:$0xff]  ;;  %2445 = vmatpush.msrb.mxu3 %v1034_v47  ;;  %v579_v47 = vld [vmem:[%s6317_s3 + $0xe38] sm:$0xff] }
 0x2e6   :  { %v770_v63 = vld [vmem:[%s6317_s3 + $0x1430] sm:$0xff]  ;;  %2377 = vmatpush.msrb.mxu0 %v642_v14  ;;  %v315_v14 = vld [vmem:[%s6317_s3 + $0x5f8] sm:$0xff] }
 0x2e7   :  { %v898_v27 = vld [vmem:[%s6317_s3 + $0x1830] sm:$0xff]  ;;  %2400 = vmatpush.msrb.mxu1 %v770_v63  ;;  %2378 = vmatmul.f32.vlgmr.msrb.gmra.mxu0 %v3334_v29  ;;  %v2103_v63 = vpop.f32.mrf.mxu0  ;;  %v539_v42 = vld [vmem:[%s6317_s3 + $0xcf8] sm:$0xff] }
 0x2e8   :  { %v1026_v49 = vld [vmem:[%s6317_s3 + $0x1c30] sm:$0xff]  ;;  %2423 = vmatpush.msrb.mxu2 %v898_v27  ;;  %2401 = vmatmul.f32.vlgmr.msrb.gmra.mxu1 %v3336_v31  ;;  %v571_v27 = vld [vmem:[%s6317_s3 + $0xdf8] sm:$0xff] }
 0x2e9   :  { %2446 = vmatpush.msrb.mxu3 %v1026_v49  ;;  %2424 = vmatmul.f32.vlgmr.msrb.gmra.mxu2 %v3338_v32  ;;  %v2104_v49 = vadd.f32 %v2103_v63, %v1155_v56  ;;  %v523_v46 = vld [vmem:[%s6317_s3 + $0xc78] sm:$0xff] }
 0x2ea   :  { %2447 = vmatmul.f32.vlgmr.msrb.gmra.mxu3 %v3340_v33  ;;  %2454 = vmatpush.msra.mxu0 %v251_v28  ;;  %v307_v28 = vld [vmem:[%s6317_s3 + $0x5b8] sm:$0xff] }
 0x2eb   :  { %2477 = vmatpush.msra.mxu1 %v379_v60  ;;  %2500 = vmatpush.msra.mxu2 %v507_v8  ;;  %v2126_v60 = vpop.f32.mrf.mxu1  ;;  %v563_v8 = vld [vmem:[%s6317_s3 + $0xdb8] sm:$0xff] }
 0x2ec   :  { %2523 = vmatpush.msra.mxu3 %v635_v44  ;;  %2455 = vmatpush.msra.mxu0 %v243_v45  ;;  %v2127_v44 = vadd.f32 %v2126_v60, %v2104_v49  ;;  %v299_v45 = vld [vmem:[%s6317_s3 + $0x578] sm:$0xff] }
 0x2ed   :  { %2478 = vmatpush.msra.mxu1 %v371_v2  ;;  %2501 = vmatpush.msra.mxu2 %v499_v20  ;;  %v427_v2 = vld [vmem:[%s6317_s3 + $0x978] sm:$0xff] }
 0x2ee   :  { %2524 = vmatpush.msra.mxu3 %v627_v17  ;;  %2456 = vmatpush.msra.mxu0 %v235_v19  ;;  %v163_v20 = vld [vmem:[%s6317_s3 + $0x138] sm:$0xff] }
 0x2ef   :  { %2479 = vmatpush.msra.mxu1 %v363_v4  ;;  %2502 = vmatpush.msra.mxu2 %v491_v62  ;;  %v291_v17 = vld [vmem:[%s6317_s3 + $0x538] sm:$0xff] }
 0x2f0   :  { %2525 = vmatpush.msra.mxu3 %v619_v39  ;;  %2457 = vmatpush.msra.mxu0 %v227_v34  ;;  %v419_v19 = vld [vmem:[%s6317_s3 + $0x938] sm:$0xff]  ;;  %v2150_v34 = vadd.f32 %v2149_v50, %v2127_v44 }
 0x2f1   :  { %2480 = vmatpush.msra.mxu1 %v355_v5  ;;  %2503 = vmatpush.msra.mxu2 %v483_v54  ;;  %v547_v4 = vld [vmem:[%s6317_s3 + $0xd38] sm:$0xff]  ;;  %v2172_v54 = vpop.f32.mrf.mxu3 }
 0x2f2   :  { %2526 = vmatpush.msra.mxu3 %v611_v9  ;;  %2381 = vmatmul.f32.gmra.mxu0 %v3414_v59  ;;  %v155_v62 = vld [vmem:[%s6317_s3 + $0xf8] sm:$0xff] }
 0x2f3   :  { %2404 = vmatmul.f32.gmra.mxu1 %v6337_v35  ;;  %2427 = vmatmul.f32.gmra.mxu2 %v6338_v1  ;;  %v283_v39 = vld [vmem:[%s6317_s3 + $0x4f8] sm:$0xff] }
 0x2f4   :  { %2450 = vmatmul.f32.gmra.mxu3 %v6339_v0  ;;  %2458 = vmatpush.msra.mxu0 %v219_v38  ;;  %v411_v5 = vld [vmem:[%s6317_s3 + $0x8f8] sm:$0xff] }
 0x2f5   :  { %2481 = vmatpush.msra.mxu1 %v347_v61  ;;  %2504 = vmatpush.msra.mxu2 %v475_v12  ;;  %v147_v9 = vld [vmem:[%s6317_s3 + $0xb8] sm:$0xff]  ;;  %v6042_v61 = vadd.f32 %v2172_v54, %v2150_v34  ;;  %v2106_v12 = vpop.f32.mrf.mxu0 }
 0x2f6   :  { %2527 = vmatpush.msra.mxu3 %v603_v7  ;;  %2459 = vmatpush.msra.mxu0 %v211_v53  ;;  %v275_v38 = vld [vmem:[%s6317_s3 + $0x4b8] sm:$0xff] }
 0x2f7   :  { %2482 = vmatpush.msra.mxu1 %v339_v11  ;;  %2505 = vmatpush.msra.mxu2 %v467_v15  ;;  %v403_v7 = vld [vmem:[%s6317_s3 + $0x8b8] sm:$0xff]  ;;  %v2107_v11 = vadd.f32 %v2106_v12, %v1155_v56 }
 0x2f8   :  { %2528 = vmatpush.msra.mxu3 %v595_v21  ;;  %2460 = vmatpush.msra.mxu0 %v203_v48  ;;  %v531_v53 = vld [vmem:[%s6317_s3 + $0xcb8] sm:$0xff]  ;;  %v2129_v48 = vpop.f32.mrf.mxu1 }
 0x2f9   :  { %2483 = vmatpush.msra.mxu1 %v331_v36  ;;  %2506 = vmatpush.msra.mxu2 %v459_v37  ;;  %v139_v15 = vld [vmem:[%s6317_s3 + $0x78] sm:$0xff]  ;;  %v2130_v37 = vadd.f32 %v2129_v48, %v2107_v11 }
 0x2fa   :  { %2529 = vmatpush.msra.mxu3 %v587_v43  ;;  %2461 = vmatpush.msra.mxu0 %v195_v13  ;;  %v267_v21 = vld [vmem:[%s6317_s3 + $0x478] sm:$0xff] }
 0x2fb   :  { %2484 = vmatpush.msra.mxu1 %v323_v6  ;;  %2507 = vmatpush.msra.mxu2 %v451_v41  ;;  %v395_v36 = vld [vmem:[%s6317_s3 + $0x878] sm:$0xff]  ;;  %v2152_v41 = vpop.f32.mrf.mxu2 }
 0x2fc   :  { %2530 = vmatpush.msra.mxu3 %v579_v47  ;;  %2462 = vmatpush.msra.mxu0 %v187_v30  ;;  %v131_v43 = vld [vmem:[%s6317_s3 + $0x38] sm:$0xff] }
 0x2fd   :  { %2485 = vmatpush.msra.mxu1 %v315_v14  ;;  %2508 = vmatpush.msra.mxu2 %v443_v18  ;;  %v259_v56 = vld [vmem:[%s6317_s3 + $0x438] sm:$0xff]  ;;  %v2153_v14 = vadd.f32 %v2152_v41, %v2130_v37 }
 0x2fe   :  { %2531 = vmatpush.msra.mxu3 %v571_v27  ;;  %2463 = vmatpush.msra.mxu0 %v179_v10  ;;  %v387_v13 = vld [vmem:[%s6317_s3 + $0x838] sm:$0xff]  ;;  %v2175_v27 = vpop.f32.mrf.mxu3 }
 0x2ff   :  { %2486 = vmatpush.msra.mxu1 %v307_v28  ;;  %2509 = vmatpush.msra.mxu2 %v435_v55  ;;  %v515_v6 = vld [vmem:[%s6317_s3 + $0xc38] sm:$0xff] }
 0x300   :  { %2532 = vmatpush.msra.mxu3 %v563_v8  ;;  %2464 = vmatpush.msra.mxu0 %v171_v26  ;;  %v763_v47 = vld [vmem:[%s6317_s3 + $0x13f8] sm:$0xff] }
 0x301   :  { %2487 = vmatpush.msra.mxu1 %v299_v45  ;;  %2510 = vmatpush.msra.mxu2 %v427_v2  ;;  %v891_v30 = vld [vmem:[%s6317_s3 + $0x17f8] sm:$0xff] }
 0x302   :  { %2533 = vmatpush.msra.mxu3 %v555_v16  ;;  %2465 = vmatpush.msra.mxu0 %v163_v20  ;;  %v1019_v63 = vld [vmem:[%s6317_s3 + $0x1bf8] sm:$0xff] }
 0x303   :  { %2488 = vmatpush.msra.mxu1 %v291_v17  ;;  %2511 = vmatpush.msra.mxu2 %v419_v19  ;;  %v1147_v18 = vld [vmem:[%s6317_s3 + $0x1ff8] sm:$0xff] }
 0x304   :  { %2534 = vmatpush.msra.mxu3 %v547_v4  ;;  %2466 = vmatpush.msra.mxu0 %v155_v62  ;;  %v755_v49 = vld [vmem:[%s6317_s3 + $0x13b8] sm:$0xff] }
 0x305   :  { %2489 = vmatpush.msra.mxu1 %v283_v39  ;;  %2512 = vmatpush.msra.mxu2 %v411_v5  ;;  %v1011_v10 = vld [vmem:[%s6317_s3 + $0x1bb8] sm:$0xff] }
 0x306   :  { %2535 = vmatpush.msra.mxu3 %v539_v42  ;;  %2467 = vmatpush.msra.mxu0 %v147_v9  ;;  %v875_v28 = vld [vmem:[%s6317_s3 + $0x1778] sm:$0xff] }
 0x307   :  { %2490 = vmatpush.msra.mxu1 %v275_v38  ;;  %2513 = vmatpush.msra.mxu2 %v403_v7  ;;  %v1003_v60 = vld [vmem:[%s6317_s3 + $0x1b78] sm:$0xff]  ;;  %v2195_v38 = vpop.f32.mrf.mxu0 }
 0x308   :  { %2536 = vmatpush.msra.mxu3 %v531_v53  ;;  %2468 = vmatpush.msra.mxu0 %v139_v15  ;;  %v1131_v55 = vld [vmem:[%s6317_s3 + $0x1f78] sm:$0xff]  ;;  %v2196_v15 = vadd.f32 %v2195_v38, %v6042_v61 }
 0x309   :  { %2491 = vmatpush.msra.mxu1 %v267_v21  ;;  %2514 = vmatpush.msra.mxu2 %v395_v36  ;;  %v739_v8 = vld [vmem:[%s6317_s3 + $0x1338] sm:$0xff] }
 0x30a   :  { %2537 = vmatpush.msra.mxu3 %v523_v46  ;;  %2469 = vmatpush.msra.mxu0 %v131_v43  ;;  %v867_v44 = vld [vmem:[%s6317_s3 + $0x1738] sm:$0xff]  ;;  %v2218_v43 = vpop.f32.mrf.mxu1 }
 0x30b   :  { %2492 = vmatpush.msra.mxu1 %v259_v56  ;;  %2515 = vmatpush.msra.mxu2 %v387_v13  ;;  %v995_v26 = vld [vmem:[%s6317_s3 + $0x1b38] sm:$0xff] }
 0x30c   :  { %2538 = vmatpush.msra.mxu3 %v515_v6  ;;  %2470 = vmatmul.f32.vlgmr.msra.gmra.mxu0 %v3180_v22  ;;  %v883_v22 = vld [vmem:[%s6317_s3 + $0x17b8] sm:$0xff]  ;;  %v2219_v6 = vadd.f32 %v2218_v43, %v2196_v15 }
 0x30d   :  { %2493 = vmatmul.f32.vlgmr.msra.gmra.mxu1 %v3182_v23  ;;  %2516 = vmatmul.f32.vlgmr.msra.gmra.mxu2 %v3184_v24  ;;  %v6098_v23 = vadd.f32 %v2175_v27, %v2153_v14  ;;  %v1139_v24 = vld [vmem:[%s6317_s3 + $0x1fb8] sm:$0xff] }
 0x30e   :  { %2539 = vmatmul.f32.vlgmr.msra.gmra.mxu3 %v3186_v25  ;;  %2546 = vmatpush.msrb.mxu0 %v763_v47  ;;  %v747_v25 = vld [vmem:[%s6317_s3 + $0x1378] sm:$0xff] }
 0x30f   :  { %2569 = vmatpush.msrb.mxu1 %v891_v30  ;;  %2592 = vmatpush.msrb.mxu2 %v1019_v63  ;;  %v1123_v45 = vld [vmem:[%s6317_s3 + $0x1f38] sm:$0xff]  ;;  %v2241_v30 = vpop.f32.mrf.mxu2 }
 0x310   :  { %2615 = vmatpush.msrb.mxu3 %v1147_v18  ;;  %2547 = vmatpush.msrb.mxu0 %v755_v49  ;;  %v731_v2 = vld [vmem:[%s6317_s3 + $0x12f8] sm:$0xff]  ;;  %v2242_v18 = vadd.f32 %v2241_v30, %v2219_v6 }
 0x311   :  { %2570 = vmatpush.msrb.mxu1 %v883_v22  ;;  %2593 = vmatpush.msrb.mxu2 %v1011_v10  ;;  %v859_v16 = vld [vmem:[%s6317_s3 + $0x16f8] sm:$0xff]  ;;  %v2264_v22 = vpop.f32.mrf.mxu3 }
 0x312   :  { %2616 = vmatpush.msrb.mxu3 %v1139_v24  ;;  %2548 = vmatpush.msrb.mxu0 %v747_v25  ;;  %v987_v20 = vld [vmem:[%s6317_s3 + $0x1af8] sm:$0xff]  ;;  %v2265_v25 = vadd.f32 %v2264_v22, %v2242_v18  ;;  %v12_v22 = vstv %s6322_s6 }
 0x313   :  { %2571 = vmatpush.msrb.mxu1 %v875_v28  ;;  %2594 = vmatpush.msrb.mxu2 %v1003_v60  ;;  %v1115_v17 = vld [vmem:[%s6317_s3 + $0x1ef8] sm:$0xff]  ;;  %v6252_v28 = vld [vmem:[%s6321_s5] sm:$0xff]  ;;  %13 = vst [vmem:[#allocation2] sm:$0x1] %v12_v22 }
 0x314   :  { %2617 = vmatpush.msrb.mxu3 %v1131_v55  ;;  %2549 = vmatpush.msrb.mxu0 %v739_v8  ;;  %v723_v19 = vld [vmem:[%s6317_s3 + $0x12b8] sm:$0xff]  ;;  %v2661_v60 = vperm.slane %v6252_v28, 5  ;;  %v2198_v55 = vpop.f32.mrf.mxu0 }
 0x315   :  { %2572 = vmatpush.msrb.mxu1 %v867_v44  ;;  %2595 = vmatpush.msrb.mxu2 %v995_v26  ;;  %v843_v4 = vld [vmem:[%s6317_s3 + $0x1678] sm:$0xff] }
 0x316   :  { %2618 = vmatpush.msrb.mxu3 %v1123_v45  ;;  %2473 = vmatmul.f32.gmra.mxu0 %v3242_v51  ;;  %v851_v51 = vld [vmem:[%s6317_s3 + $0x16b8] sm:$0xff] }
 0x317   :  { %2496 = vmatmul.f32.gmra.mxu1 %v3244_v52  ;;  %2519 = vmatmul.f32.gmra.mxu2 %v3254_v57  ;;  %v979_v52 = vld [vmem:[%s6317_s3 + $0x1ab8] sm:$0xff] }
 0x318   :  { %2542 = vmatmul.f32.gmra.mxu3 %v3256_v58  ;;  %2550 = vmatpush.msrb.mxu0 %v731_v2  ;;  %v1107_v57 = vld [vmem:[%s6317_s3 + $0x1eb8] sm:$0xff]  ;;  %v2643_v2 = vmax.f32 %v2265_v25, 0.0 }
 0x319   :  { %2573 = vmatpush.msrb.mxu1 %v859_v16  ;;  %2596 = vmatpush.msrb.mxu2 %v987_v20  ;;  %v715_v58 = vld [vmem:[%s6317_s3 + $0x1278] sm:$0xff]  ;;  %v2199_v16 = vadd.f32 %v2198_v55, %v6098_v23 }
 0x31a   :  { %2619 = vmatpush.msrb.mxu3 %v1115_v17  ;;  %2551 = vmatpush.msrb.mxu0 %v723_v19  ;;  %v971_v50 = vld [vmem:[%s6317_s3 + $0x1a78] sm:$0xff] }
 0x31b   :  { %2574 = vmatpush.msrb.mxu1 %v851_v51  ;;  %v1099_v62 = vld [vmem:[%s6317_s3 + $0x1e78] sm:$0xff]  ;;  %2597 = vmatpush.msrb.mxu2 %v979_v52  ;;  %v2677_v51 = vmul.f32 %v2661_v60, %v2643_v2 }
 0x31c   :  { %2620 = vmatpush.msrb.mxu3 %v1107_v57  ;;  %v707_v39 = vld [vmem:[%s6317_s3 + $0x1238] sm:$0xff]  ;;  %2552 = vmatpush.msrb.mxu0 %v715_v58  ;;  %v2221_v58 = vpop.f32.mrf.mxu1 }
 0x31d   :  { %v835_v34 = vld [vmem:[%s6317_s3 + $0x1638] sm:$0xff]  ;;  %2575 = vmatpush.msrb.mxu1 %v843_v4  ;;  %2598 = vmatpush.msrb.mxu2 %v971_v50  ;;  %v2222_v4 = vadd.f32 %v2221_v58, %v2199_v16  ;;  %v6287_v50 = vadd.f32 %v5862_v3, %v2677_v51  ;;  %v2662_v58 = vperm.slane %v6252_v28, 6 }
 0x31e   :  { %v963_v5 = vld [vmem:[%s6317_s3 + $0x1a38] sm:$0xff]  ;;  %2621 = vmatpush.msrb.mxu3 %v1099_v62  ;;  %2553 = vmatpush.msrb.mxu0 %v707_v39  ;;  %v2244_v62 = vpop.f32.mrf.mxu2 }
 0x31f   :  { %v1091_v42 = vld [vmem:[%s6317_s3 + $0x1e38] sm:$0xff]  ;;  %2576 = vmatpush.msrb.mxu1 %v835_v34  ;;  %2599 = vmatpush.msrb.mxu2 %v963_v5  ;;  %v2245_v39 = vadd.f32 %v2244_v62, %v2222_v4  ;;  %v2267_v34 = vpop.f32.mrf.mxu3 }
 0x320   :  { %v699_v54 = vld [vmem:[%s6317_s3 + $0x11f8] sm:$0xff]  ;;  %2622 = vmatpush.msrb.mxu3 %v1091_v42 }
 0x321   :  { %v827_v9 = vld [vmem:[%s6317_s3 + $0x15f8] sm:$0xff]  ;;  %2554 = vmatpush.msrb.mxu0 %v699_v54  ;;  %v2268_v5 = vadd.f32 %v2267_v34, %v2245_v39 }
 0x322   :  { %v955_v12 = vld [vmem:[%s6317_s3 + $0x19f8] sm:$0xff]  ;;  %2577 = vmatpush.msrb.mxu1 %v827_v9 }
 0x323   :  { %v1083_v7 = vld [vmem:[%s6317_s3 + $0x1df8] sm:$0xff]  ;;  %2600 = vmatpush.msrb.mxu2 %v955_v12  ;;  %v2651_v42 = vmax.f32 %v2268_v5, 0.0 }
 0x324   :  { %v691_v53 = vld [vmem:[%s6317_s3 + $0x11b8] sm:$0xff]  ;;  %2623 = vmatpush.msrb.mxu3 %v1083_v7 }
 0x325   :  { %v819_v11 = vld [vmem:[%s6317_s3 + $0x15b8] sm:$0xff]  ;;  %2555 = vmatpush.msrb.mxu0 %v691_v53  ;;  %v2685_v54 = vmul.f32 %v2661_v60, %v2651_v42 }
 0x326   :  { %v947_v21 = vld [vmem:[%s6317_s3 + $0x19b8] sm:$0xff]  ;;  %2578 = vmatpush.msrb.mxu1 %v819_v11 }
 0x327   :  { %v1075_v48 = vld [vmem:[%s6317_s3 + $0x1db8] sm:$0xff]  ;;  %2601 = vmatpush.msrb.mxu2 %v947_v21  ;;  %v6294_v3 = vadd.f32 %v5919_v40, %v2685_v54 }
 0x328   :  { %v683_v36 = vld [vmem:[%s6317_s3 + $0x1178] sm:$0xff]  ;;  %2624 = vmatpush.msrb.mxu3 %v1075_v48 }
 0x329   :  { %v811_v61 = vld [vmem:[%s6317_s3 + $0x1578] sm:$0xff]  ;;  %2556 = vmatpush.msrb.mxu0 %v683_v36 }
 0x32a   :  { %v939_v46 = vld [vmem:[%s6317_s3 + $0x1978] sm:$0xff]  ;;  %2579 = vmatpush.msrb.mxu1 %v811_v61 }
 0x32b   :  { %v1067_v37 = vld [vmem:[%s6317_s3 + $0x1d78] sm:$0xff]  ;;  %2602 = vmatpush.msrb.mxu2 %v939_v46 }
 0x32c   :  { %v675_v56 = vld [vmem:[%s6317_s3 + $0x1138] sm:$0xff]  ;;  %2625 = vmatpush.msrb.mxu3 %v1067_v37 }
 0x32d   :  { %v803_v13 = vld [vmem:[%s6317_s3 + $0x1538] sm:$0xff]  ;;  %2557 = vmatpush.msrb.mxu0 %v675_v56 }
 0x32e   :  { %v931_v41 = vld [vmem:[%s6317_s3 + $0x1938] sm:$0xff]  ;;  %2580 = vmatpush.msrb.mxu1 %v803_v13  ;;  %v2333_v9 = vpop.f32.mrf.mxu2 }
 0x32f   :  { %v1059_v47 = vld [vmem:[%s6317_s3 + $0x1d38] sm:$0xff]  ;;  %2603 = vmatpush.msrb.mxu2 %v931_v41 }
 0x330   :  { %v667_v14 = vld [vmem:[%s6317_s3 + $0x10f8] sm:$0xff]  ;;  %2626 = vmatpush.msrb.mxu3 %v1059_v47 }
 0x331   :  { %v795_v63 = vld [vmem:[%s6317_s3 + $0x14f8] sm:$0xff]  ;;  %2558 = vmatpush.msrb.mxu0 %v667_v14 }
 0x332   :  { %v923_v27 = vld [vmem:[%s6317_s3 + $0x18f8] sm:$0xff]  ;;  %2581 = vmatpush.msrb.mxu1 %v795_v63 }
 0x333   :  { %v1051_v49 = vld [vmem:[%s6317_s3 + $0x1cf8] sm:$0xff]  ;;  %2604 = vmatpush.msrb.mxu2 %v923_v27 }
 0x334   :  { %v659_v10 = vld [vmem:[%s6317_s3 + $0x10b8] sm:$0xff]  ;;  %2627 = vmatpush.msrb.mxu3 %v1051_v49 }
 0x335   :  { %v787_v24 = vld [vmem:[%s6317_s3 + $0x14b8] sm:$0xff]  ;;  %2559 = vmatpush.msrb.mxu0 %v659_v10 }
 0x336   :  { %v915_v8 = vld [vmem:[%s6317_s3 + $0x18b8] sm:$0xff]  ;;  %2582 = vmatpush.msrb.mxu1 %v787_v24 }
 0x337   :  { %v1043_v44 = vld [vmem:[%s6317_s3 + $0x1cb8] sm:$0xff]  ;;  %2605 = vmatpush.msrb.mxu2 %v915_v8 }
 0x338   :  { %v651_v26 = vld [vmem:[%s6317_s3 + $0x1078] sm:$0xff]  ;;  %2628 = vmatpush.msrb.mxu3 %v1043_v44  ;;  %v2336_v12 = vpop.f32.mrf.mxu2 }
 0x339   :  { %v779_v45 = vld [vmem:[%s6317_s3 + $0x1478] sm:$0xff]  ;;  %2560 = vmatpush.msrb.mxu0 %v651_v26 }
 0x33a   :  { %v907_v20 = vld [vmem:[%s6317_s3 + $0x1878] sm:$0xff]  ;;  %2583 = vmatpush.msrb.mxu1 %v779_v45 }
 0x33b   :  { %v1035_v17 = vld [vmem:[%s6317_s3 + $0x1c78] sm:$0xff]  ;;  %2606 = vmatpush.msrb.mxu2 %v907_v20 }
 0x33c   :  { %v643_v19 = vld [vmem:[%s6317_s3 + $0x1038] sm:$0xff]  ;;  %2629 = vmatpush.msrb.mxu3 %v1035_v17 }
 0x33d   :  { %v771_v23 = vld [vmem:[%s6317_s3 + $0x1438] sm:$0xff]  ;;  %2561 = vmatpush.msrb.mxu0 %v643_v19 }
 0x33e   :  { %v899_v52 = vld [vmem:[%s6317_s3 + $0x1838] sm:$0xff]  ;;  %2584 = vmatpush.msrb.mxu1 %v771_v23  ;;  %2562 = vmatmul.f32.vlgmr.msrb.gmra.mxu0 %v3334_v29  ;;  %v2287_v29 = vpop.f32.mrf.mxu0 }
 0x33f   :  { %v1027_v57 = vld [vmem:[%s6317_s3 + $0x1c38] sm:$0xff]  ;;  %2607 = vmatpush.msrb.mxu2 %v899_v52  ;;  %2585 = vmatmul.f32.vlgmr.msrb.gmra.mxu1 %v3336_v31  ;;  %v2310_v31 = vpop.f32.mrf.mxu1 }
 0x340   :  { %2630 = vmatpush.msrb.mxu3 %v1027_v57  ;;  %2608 = vmatmul.f32.vlgmr.msrb.gmra.mxu2 %v3338_v32  ;;  %v2356_v32 = vpop.f32.mrf.mxu3 }
 0x341   :  { %2631 = vmatmul.f32.vlgmr.msrb.gmra.mxu3 %v3340_v33 }
 0x346   :  { %2565 = vmatmul.f32.gmra.mxu0 %v3414_v59  ;;  %v2290_v38 = vpop.f32.mrf.mxu0  ;;  %v2724_v59 = vld [vmem:[%s6320_s4] sm:$0xff] }
 0x347   :  { %2588 = vmatmul.f32.gmra.mxu1 %v6337_v35  ;;  %v2313_v33 = vpop.f32.mrf.mxu1  ;;  %v1156_v35 = vperm.slane %v2724_v59, 6  ;;  %v1157_v56 = vperm.slane %v2724_v59, 7 }
 0x348   :  { %2611 = vmatmul.f32.gmra.mxu2 %v6338_v1  ;;  %v2359_v7 = vpop.f32.mrf.mxu3 }
 0x349   :  { %2634 = vmatmul.f32.gmra.mxu3 %v6339_v0  ;;  %v2288_v0 = vadd.f32 %v2287_v29, %v1156_v35  ;;  %v2291_v13 = vadd.f32 %v2290_v38, %v1156_v35  ;;  %v2663_v38 = vperm.slane %v6252_v28, 7  ;;  %v2721_v28 = vld [vmem:[#allocation2] ss:$0 sm:$0xff] }
 0x34b   :  { %v2311_v46 = vadd.f32 %v2310_v31, %v2288_v0  ;;  %v2314_v63 = vadd.f32 %v2313_v33, %v2291_v13 }
 0x34d   :  { %v2334_v37 = vadd.f32 %v2333_v9, %v2311_v46  ;;  %v2337_v27 = vadd.f32 %v2336_v12, %v2314_v63 }
 0x34f   :  { %v2357_v6 = vadd.f32 %v2356_v32, %v2334_v37  ;;  %v2360_v55 = vadd.f32 %v2359_v7, %v2337_v27 }
 0x364   :  { %v2379_v53 = vpop.f32.mrf.mxu0 }
 0x365   :  { %v2402_v11 = vpop.f32.mrf.mxu1  ;;  %v2380_v14 = vadd.f32 %v2379_v53, %v2357_v6 }
 0x367   :  { %v2403_v10 = vadd.f32 %v2402_v11, %v2380_v14 }
 0x36c   :  { %v2425_v40 = vpop.f32.mrf.mxu2 }
 0x36d   :  { %v2448_v15 = vpop.f32.mrf.mxu3  ;;  %v2426_v60 = vadd.f32 %v2425_v40, %v2403_v10 }
 0x36f   :  { %v2382_v21 = vpop.f32.mrf.mxu0  ;;  %v2449_v20 = vadd.f32 %v2448_v15, %v2426_v60 }
 0x370   :  { %v2405_v1 = vpop.f32.mrf.mxu1  ;;  %v2383_v45 = vadd.f32 %v2382_v21, %v2360_v55 }
 0x371   :  { %v2644_v57 = vmax.f32 %v2449_v20, 0.0 }
 0x372   :  { %v2406_v51 = vadd.f32 %v2405_v1, %v2383_v45 }
 0x373   :  { %v2678_v29 = vmul.f32 %v2662_v58, %v2644_v57 }
 0x375   :  { %v2693_v40 = vadd.f32 %v6287_v50, %v2678_v29 }
 0x376   :  { %v2428_v48 = vpop.f32.mrf.mxu2 }
 0x377   :  { %v2451_v36 = vpop.f32.mrf.mxu3  ;;  %v2429_v4 = vadd.f32 %v2428_v48, %v2406_v51 }
 0x379   :  { %v2452_v31 = vadd.f32 %v2451_v36, %v2429_v4 }
 0x37b   :  { %v2652_v7 = vmax.f32 %v2452_v31, 0.0 }
 0x37d   :  { %v2686_v1 = vmul.f32 %v2662_v58, %v2652_v7 }
 0x389   :  { %v2471_v61 = vpop.f32.mrf.mxu0 }
 0x38a   :  { %v2494_v43 = vpop.f32.mrf.mxu1  ;;  %v2472_v30 = vadd.f32 %v2471_v61, %v1157_v56  ;;  %v2702_v61 = vadd.f32 %v6294_v3, %v2686_v1 }
 0x38c   :  { %v2495_v49 = vadd.f32 %v2494_v43, %v2472_v30 }
 0x390   :  { %v2517_v41 = vpop.f32.mrf.mxu2 }
 0x391   :  { %v2540_v47 = vpop.f32.mrf.mxu3  ;;  %v2518_v25 = vadd.f32 %v2517_v41, %v2495_v49 }
 0x393   :  { %v2474_v18 = vpop.f32.mrf.mxu0  ;;  %v2541_v2 = vadd.f32 %v2540_v47, %v2518_v25 }
 0x394   :  { %v2497_v24 = vpop.f32.mrf.mxu1  ;;  %v2475_v8 = vadd.f32 %v2474_v18, %v1157_v56 }
 0x396   :  { %v2498_v17 = vadd.f32 %v2497_v24, %v2475_v8 }
 0x39a   :  { %v2520_v44 = vpop.f32.mrf.mxu2 }
 0x39b   :  { %v2543_v26 = vpop.f32.mrf.mxu3  ;;  %v2521_v52 = vadd.f32 %v2520_v44, %v2498_v17 }
 0x39d   :  { %v2544_v5 = vadd.f32 %v2543_v26, %v2521_v52 }
 0x3bb   :  { %v2563_v16 = vpop.f32.mrf.mxu0 }
 0x3bc   :  { %v2564_v19 = vadd.f32 %v2563_v16, %v2541_v2  ;;  %v2586_v23 = vpop.f32.mrf.mxu1 }
 0x3be   :  { %v2587_v62 = vadd.f32 %v2586_v23, %v2564_v19 }
 0x3c3   :  { %v2609_v39 = vpop.f32.mrf.mxu2  ;;  %v2566_v54 = vpop.f32.mrf.mxu0 }
 0x3c4   :  { %v2632_v34 = vpop.f32.mrf.mxu3  ;;  %v2610_v42 = vadd.f32 %v2609_v39, %v2587_v62  ;;  %v2567_v32 = vadd.f32 %v2566_v54, %v2544_v5  ;;  %v2589_v12 = vpop.f32.mrf.mxu1 }
 0x3c6   :  { %v2633_v9 = vadd.f32 %v2632_v34, %v2610_v42  ;;  %v2590_v53 = vadd.f32 %v2589_v12, %v2567_v32 }
 0x3c8   :  { %v2645_v33 = vmax.f32 %v2633_v9, 0.0 }
 0x3ca   :  { %v2679_v11 = vmul.f32 %v2663_v38, %v2645_v33 }
 0x3cb   :  { %v2612_v15 = vpop.f32.mrf.mxu2 }
 0x3cc   :  { %v2613_v21 = vadd.f32 %v2612_v15, %v2590_v53  ;;  %v2694_v59 = vadd.f32 %v2693_v40, %v2679_v11  ;;  %v2635_v35 = vpop.f32.mrf.mxu3 }
 0x3ce   :  { %v2636_v0 = vadd.f32 %v2635_v35, %v2613_v21  ;;  %2695 = vadd.xlane.f32.xlu1 %v2694_v59 }
 0x3d0   :  { %v2653_v48 = vmax.f32 %v2636_v0, 0.0 }
 0x3d2   :  { %v2687_v36 = vmul.f32 %v2663_v38, %v2653_v48 }
 0x3d4   :  { %v2703_v46 = vadd.f32 %v2702_v61, %v2687_v36 }
 0x3d6   :  { %2704 = vadd.xlane.f32.xlu1 %v2703_v46 }
 0x441   :  { %v2696_v37 = vpop.xlane.xlu1 %2695 }
 0x442   :  { %v2710_v43 = vadd.f32 %v2721_v28, %v2696_v37 }
 0x444   :  { %2713 = vst.msk [vmem:[%s6323_s7] sm:$0xff] %vm2712_vm0, %v2710_v43 }
 0x449   :  { %v2705_v50 = vpop.xlane.xlu1 %2704 }
 0x44a   :  { %v2711_v56 = vadd.f32 %v2721_v28, %v2705_v50 }
 0x44c   :  { %2714 = vst.msk [vmem:[%s6323_s7 + $0x8] sm:$0xff] %vm2712_vm0, %v2711_v56 }

</bundles_post_ra>
